<compile_context>
chip_gen: v7x
topology: tpu7x:2x2x1
jax: 0.10.0
libtpu: 0.0.40
codegen_flags: <defaults>
</compile_context>

<pallas_src>
import functools

import jax
import jax.numpy as jnp
import numpy as np
from jax.experimental import pallas as pl
from jax.experimental.pallas import tpu as pltpu


# ----------------------------------------------------------------------------
# Fused encoder kernel: conv1..conv4 + fc for ONE image per grid step.
# ----------------------------------------------------------------------------
def _encoder_kernel(x_ref, *refs, ks, relus):
    """refs = [S1, U1, b1, S2, U2, b2, ..., S5, U5, b5, out_ref]."""
    out_ref = refs[-1]
    tabs = refs[:-1]

    act = x_ref[0]                                   # (H, W*C) bf16 image rows
    for layer, k in enumerate(ks):
        s_ref = tabs[3 * layer + 0]                  # (k, H_out, H_in)            bf16 (0/1)
        u_ref = tabs[3 * layer + 1]                  # (k, W_in*C_in, W_out*C_out) bf16
        b_ref = tabs[3 * layer + 2]                  # (1, W_out*C_out)            f32

        act_b = act.astype(jnp.bfloat16)
        acc = None
        for di in range(k):
            # Row selection (rows stride*i + di) expressed as a matmul -> MXU.
            # S is 0/1 so the selection is exact; the bf16 re-cast is lossless.
            rows = jnp.dot(s_ref[di], act_b,
                           preferred_element_type=jnp.float32).astype(jnp.bfloat16)
            # k-wide window + stride along W + channel mixing, as one matmul.
            term = jnp.dot(rows, u_ref[di], preferred_element_type=jnp.float32)
            acc = term if acc is None else acc + term
        acc = acc + b_ref[...]
        act = jnp.maximum(acc, 0.0) if relus[layer] else acc

    out_ref[0] = act.astype(out_ref.dtype)           # (1, latent_dim)


# ----------------------------------------------------------------------------
# One-time weight preprocessing: lower every layer to (S, U, b_row) tables.
# ----------------------------------------------------------------------------
_CONV_LAYERS = (("conv1", 7, 2), ("conv2", 5, 2), ("conv3", 3, 2), ("conv4", 3, 2))


def prepare_encoder_tables(params, image_hw=84):
    tables = []
    H = W = image_hw
    for idx, (name, k, stride) in enumerate(_CONV_LAYERS):
        w = params[name + "_w"]                      # (C_out, C_in, k, k)  PyTorch layout
        b = params[name + "_b"]                      # (C_out,)
        C_out, C_in = int(w.shape[0]), int(w.shape[1])
        H_out = (H - k) // stride + 1
        W_out = (W - k) // stride + 1

        # S[di, i, stride*i + di] = 1  (row selection).
        S = np.zeros((k, H_out, H), np.float32)
        rows = np.arange(H_out)
        for di in range(k):
            S[di, rows, stride * rows + di] = 1.0

        # U[di, w*C_in+ci, j*C_out+co] = w[co, ci, di, w - stride*j]  (band matrix).
        w_t = jnp.transpose(w, (2, 3, 1, 0))         # (k, k, C_in, C_out)
        dj = np.arange(W)[:, None] - stride * np.arange(W_out)[None, :]   # (W, W_out)
        valid = (dj >= 0) & (dj < k)
        dj_c = np.clip(dj, 0, k - 1)
        U = w_t[:, dj_c]                             # (k, W, W_out, C_in, C_out)
        U = jnp.where(jnp.asarray(valid)[None, :, :, None, None], U, 0.0)
        U = jnp.transpose(U, (0, 1, 3, 2, 4)).reshape(k, W * C_in, W_out * C_out)
        if idx == 0:
            U = U * (1.0 / 255.0)                    # fold x/255 into conv1 weights

        b_row = jnp.tile(b, W_out)[None, :]          # (1, W_out*C_out)

        tables += [jnp.asarray(S, jnp.bfloat16),
                   U.astype(jnp.bfloat16),
                   b_row.astype(jnp.float32)]
        H, W = H_out, W_out

    # Final Linear as a 5th "layer": S picks one activation row at a time and
    # U holds fc_w pre-permuted from PyTorch (C,H,W) flatten order to NHWC rows.
    fc_w, fc_b = params["fc_w"], params["fc_b"]      # (L, C*H*W), (L,)
    L = int(fc_w.shape[0])
    C_last = int(params[_CONV_LAYERS[-1][0] + "_w"].shape[0])
    Wp = fc_w.reshape(L, C_last, H, W)
    Wp = jnp.transpose(Wp, (2, 3, 1, 0)).reshape(H, W * C_last, L)   # (3, 3*C, L)
    S5 = np.zeros((H, 1, H), np.float32)
    for di in range(H):
        S5[di, 0, di] = 1.0
    tables += [jnp.asarray(S5, jnp.bfloat16),
               Wp.astype(jnp.bfloat16),
               fc_b[None, :].astype(jnp.float32)]
    return tuple(tables)


# ----------------------------------------------------------------------------
# Forward: a single pallas_call over the batch.
# ----------------------------------------------------------------------------
def encoder_apply(tables, x_nchw):
    """x_nchw: (B, C, 84, 84) float32 in [0, 255] -> z: (B, latent_dim)."""
    B, C, H, W = x_nchw.shape
    # Only per-call XLA glue: lay the image out as NHWC rows (H, W*C), bf16.
    x_rows = jnp.transpose(x_nchw, (0, 2, 3, 1)).reshape(B, H, W * C).astype(jnp.bfloat16)

    ks = tuple(int(s.shape[0]) for s in tables[0::3])
    relus = (True,) * (len(ks) - 1) + (False,)
    latent_dim = int(tables[-1].shape[1])

    in_specs = [pl.BlockSpec((1, H, W * C), lambda b: (b, 0, 0))]
    for t in tables:                                  # tables stay fully resident in VMEM
        if t.ndim == 3:
            in_specs.append(pl.BlockSpec(t.shape, lambda b: (0, 0, 0)))
        else:
            in_specs.append(pl.BlockSpec(t.shape, lambda b: (0, 0)))

    out = pl.pallas_call(
        functools.partial(_encoder_kernel, ks=ks, relus=relus),
        out_shape=jax.ShapeDtypeStruct((B, 1, latent_dim), jnp.float32),
        grid=(B,),
        in_specs=in_specs,
        out_specs=pl.BlockSpec((1, 1, latent_dim), lambda b: (b, 0, 0)),
        compiler_params=pltpu.CompilerParams(dimension_semantics=("parallel",)),
    )(x_rows, *tables)
    return out.reshape(B, latent_dim)


def encoder_forward(params, x_nchw):
    """Convenience wrapper (table prep + fused kernel)."""
    return encoder_apply(prepare_encoder_tables(params, int(x_nchw.shape[-1])), x_nchw)


# ----------------------------------------------------------------------------
# Parameter init (PyTorch nn.Conv2d / nn.Linear default uniform init).
# ----------------------------------------------------------------------------
def init_encoder_params(key, input_channels, num_channels, latent_dim, frame_stack):
    C = input_channels * frame_stack
    specs = [
        ("conv1", (num_channels, C, 7, 7)),
        ("conv2", (num_channels, num_channels, 5, 5)),
        ("conv3", (num_channels, num_channels, 3, 3)),
        ("conv4", (num_channels, num_channels, 3, 3)),
    ]
    params = {}
    keys = jax.random.split(key, 2 * len(specs) + 2)
    ki = 0
    for name, shape in specs:
        fan_in = shape[1] * shape[2] * shape[3]
        bound = 1.0 / np.sqrt(fan_in)
        params[name + "_w"] = jax.random.uniform(keys[ki], shape, jnp.float32, -bound, bound); ki += 1
        params[name + "_b"] = jax.random.uniform(keys[ki], (shape[0],), jnp.float32, -bound, bound); ki += 1
    fc_in = 3 * 3 * num_channels
    bound = 1.0 / np.sqrt(fc_in)
    params["fc_w"] = jax.random.uniform(keys[ki], (latent_dim, fc_in), jnp.float32, -bound, bound); ki += 1
    params["fc_b"] = jax.random.uniform(keys[ki], (latent_dim,), jnp.float32, -bound, bound)
    return params


# ----------------------------------------------------------------------------
# Pure-JAX reference (sanity check of the Pallas path).
# ----------------------------------------------------------------------------
def encoder_reference(params, x_nchw):
    x = x_nchw.astype(jnp.float32) / 255.0
    dn = jax.lax.conv_dimension_numbers(x.shape, params["conv1_w"].shape, ("NCHW", "OIHW", "NCHW"))
    for name in ("conv1", "conv2", "conv3", "conv4"):
        w, b = params[name + "_w"], params[name + "_b"]
        x = jax.lax.conv_general_dilated(x, w, (2, 2), "VALID", dimension_numbers=dn)
        x = jax.nn.relu(x + b.reshape(1, -1, 1, 1))
    x = x.reshape(x.shape[0], -1)
    return x @ params["fc_w"].T + params["fc_b"]


if __name__ == "__main__":
    # Small config consistent with the module (spatial size must be 84 so the
    # conv stack ends at 3x3 before the 3*3*num_channels -> latent_dim Linear).
    input_channels, frame_stack = 1, 3       # C = 3
    num_channels, latent_dim = 8, 32
    batch = 2

    key = jax.random.PRNGKey(0)
    k_param, k_x = jax.random.split(key)
    params = init_encoder_params(k_param, input_channels, num_channels, latent_dim, frame_stack)
    x = jax.random.uniform(k_x, (batch, input_channels * frame_stack, 84, 84),
                           jnp.float32, 0.0, 255.0)

    # One-time weight preprocessing (outside the hot path), then a single fused
    # pallas_call per forward.
    tables = jax.block_until_ready(prepare_encoder_tables(params))
    fwd = jax.jit(encoder_apply)
    z = jax.block_until_ready(fwd(tables, x))
    assert z.shape == (batch, latent_dim)

    z_ref = jax.block_until_ready(encoder_reference(params, x))
    np.testing.assert_allclose(np.asarray(z), np.asarray(z_ref), atol=5e-2, rtol=5e-2)

    print("KERNEL_OK")
</pallas_src>

<mosaic_0001>
module attributes {stable_mosaic.version = 11 : i64} {
  func.func @_encoder_kernel(%arg0: i32, %arg1: memref<1x84x252xbf16, #tpu.memory_space<vmem>>, %arg2: memref<7x39x84xbf16, #tpu.memory_space<vmem>>, %arg3: memref<7x252x312xbf16, #tpu.memory_space<vmem>>, %arg4: memref<1x312xf32, #tpu.memory_space<vmem>>, %arg5: memref<5x18x39xbf16, #tpu.memory_space<vmem>>, %arg6: memref<5x312x144xbf16, #tpu.memory_space<vmem>>, %arg7: memref<1x144xf32, #tpu.memory_space<vmem>>, %arg8: memref<3x8x18xbf16, #tpu.memory_space<vmem>>, %arg9: memref<3x144x64xbf16, #tpu.memory_space<vmem>>, %arg10: memref<1x64xf32, #tpu.memory_space<vmem>>, %arg11: memref<3x3x8xbf16, #tpu.memory_space<vmem>>, %arg12: memref<3x64x24xbf16, #tpu.memory_space<vmem>>, %arg13: memref<1x24xf32, #tpu.memory_space<vmem>>, %arg14: memref<3x1x3xbf16, #tpu.memory_space<vmem>>, %arg15: memref<3x24x32xbf16, #tpu.memory_space<vmem>>, %arg16: memref<1x32xf32, #tpu.memory_space<vmem>>, %arg17: memref<1x1x32xf32, #tpu.memory_space<vmem>>) attributes {dimension_semantics = [#tpu.dimension_semantics<parallel>], iteration_bounds = array<i64: 2>, scalar_prefetch = 0 : i64, scratch_operands = 0 : i64, tpu.core_type = #tpu.core_type<tc>, window_params = [{transform_indices = @transform_0, window_bounds = array<i64: 1, 84, 252>}, {pipeline_mode = #tpu.pipeline_mode<synchronous>, transform_indices = @transform_1, window_bounds = array<i64: 7, 39, 84>}, {pipeline_mode = #tpu.pipeline_mode<synchronous>, transform_indices = @transform_2, window_bounds = array<i64: 7, 252, 312>}, {pipeline_mode = #tpu.pipeline_mode<synchronous>, transform_indices = @transform_3, window_bounds = array<i64: 1, 312>}, {pipeline_mode = #tpu.pipeline_mode<synchronous>, transform_indices = @transform_4, window_bounds = array<i64: 5, 18, 39>}, {pipeline_mode = #tpu.pipeline_mode<synchronous>, transform_indices = @transform_5, window_bounds = array<i64: 5, 312, 144>}, {pipeline_mode = #tpu.pipeline_mode<synchronous>, transform_indices = @transform_6, window_bounds = array<i64: 1, 144>}, {pipeline_mode = #tpu.pipeline_mode<synchronous>, transform_indices = @transform_7, window_bounds = array<i64: 3, 8, 18>}, {pipeline_mode = #tpu.pipeline_mode<synchronous>, transform_indices = @transform_8, window_bounds = array<i64: 3, 144, 64>}, {pipeline_mode = #tpu.pipeline_mode<synchronous>, transform_indices = @transform_9, window_bounds = array<i64: 1, 64>}, {pipeline_mode = #tpu.pipeline_mode<synchronous>, transform_indices = @transform_10, window_bounds = array<i64: 3, 3, 8>}, {pipeline_mode = #tpu.pipeline_mode<synchronous>, transform_indices = @transform_11, window_bounds = array<i64: 3, 64, 24>}, {pipeline_mode = #tpu.pipeline_mode<synchronous>, transform_indices = @transform_12, window_bounds = array<i64: 1, 24>}, {pipeline_mode = #tpu.pipeline_mode<synchronous>, transform_indices = @transform_13, window_bounds = array<i64: 3, 1, 3>}, {pipeline_mode = #tpu.pipeline_mode<synchronous>, transform_indices = @transform_14, window_bounds = array<i64: 3, 24, 32>}, {pipeline_mode = #tpu.pipeline_mode<synchronous>, transform_indices = @transform_15, window_bounds = array<i64: 1, 32>}, {transform_indices = @transform_16, window_bounds = array<i64: 1, 1, 32>}]} {
    %c0 = arith.constant 0 : index
    %c0_0 = arith.constant 0 : index
    %c0_1 = arith.constant 0 : index
    %0 = vector.load %arg1[%c0, %c0_0, %c0_1] : memref<1x84x252xbf16, #tpu.memory_space<vmem>>, vector<1x84x252xbf16>
    %1 = vector.shape_cast %0 : vector<1x84x252xbf16> to vector<84x252xbf16>
    %c0_2 = arith.constant 0 : index
    %c0_3 = arith.constant 0 : index
    %c0_4 = arith.constant 0 : index
    %2 = vector.load %arg2[%c0_2, %c0_3, %c0_4] : memref<7x39x84xbf16, #tpu.memory_space<vmem>>, vector<1x39x84xbf16>
    %3 = vector.shape_cast %2 : vector<1x39x84xbf16> to vector<39x84xbf16>
    %cst = arith.constant dense<0.000000e+00> : vector<39x252xf32>
    %4 = tpu.matmul %3, %1, %cst {dimension_numbers = #tpu.dot_dimension_numbers<[1], [0], [0], [1], [0, 0, 1, 1], [], []>} : vector<39x84xbf16>, vector<84x252xbf16>, vector<39x252xf32> -> vector<39x252xf32>
    %5 = arith.truncf %4 : vector<39x252xf32> to vector<39x252xbf16>
    %c0_5 = arith.constant 0 : index
    %c0_6 = arith.constant 0 : index
    %c0_7 = arith.constant 0 : index
    %6 = vector.load %arg3[%c0_5, %c0_6, %c0_7] : memref<7x252x312xbf16, #tpu.memory_space<vmem>>, vector<1x252x312xbf16>
    %7 = vector.shape_cast %6 : vector<1x252x312xbf16> to vector<252x312xbf16>
    %cst_8 = arith.constant dense<0.000000e+00> : vector<39x312xf32>
    %8 = tpu.matmul %5, %7, %cst_8 {dimension_numbers = #tpu.dot_dimension_numbers<[1], [0], [0], [1], [0, 0, 1, 1], [], []>} : vector<39x252xbf16>, vector<252x312xbf16>, vector<39x312xf32> -> vector<39x312xf32>
    %c1 = arith.constant 1 : index
    %c0_9 = arith.constant 0 : index
    %c0_10 = arith.constant 0 : index
    %9 = vector.load %arg2[%c1, %c0_9, %c0_10] : memref<7x39x84xbf16, #tpu.memory_space<vmem>>, vector<1x39x84xbf16>
    %10 = vector.shape_cast %9 : vector<1x39x84xbf16> to vector<39x84xbf16>
    %cst_11 = arith.constant dense<0.000000e+00> : vector<39x252xf32>
    %11 = tpu.matmul %10, %1, %cst_11 {dimension_numbers = #tpu.dot_dimension_numbers<[1], [0], [0], [1], [0, 0, 1, 1], [], []>} : vector<39x84xbf16>, vector<84x252xbf16>, vector<39x252xf32> -> vector<39x252xf32>
    %12 = arith.truncf %11 : vector<39x252xf32> to vector<39x252xbf16>
    %c1_12 = arith.constant 1 : index
    %c0_13 = arith.constant 0 : index
    %c0_14 = arith.constant 0 : index
    %13 = vector.load %arg3[%c1_12, %c0_13, %c0_14] : memref<7x252x312xbf16, #tpu.memory_space<vmem>>, vector<1x252x312xbf16>
    %14 = vector.shape_cast %13 : vector<1x252x312xbf16> to vector<252x312xbf16>
    %cst_15 = arith.constant dense<0.000000e+00> : vector<39x312xf32>
    %15 = tpu.matmul %12, %14, %cst_15 {dimension_numbers = #tpu.dot_dimension_numbers<[1], [0], [0], [1], [0, 0, 1, 1], [], []>} : vector<39x252xbf16>, vector<252x312xbf16>, vector<39x312xf32> -> vector<39x312xf32>
    %16 = arith.addf %8, %15 : vector<39x312xf32>
    %c2 = arith.constant 2 : index
    %c0_16 = arith.constant 0 : index
    %c0_17 = arith.constant 0 : index
    %17 = vector.load %arg2[%c2, %c0_16, %c0_17] : memref<7x39x84xbf16, #tpu.memory_space<vmem>>, vector<1x39x84xbf16>
    %18 = vector.shape_cast %17 : vector<1x39x84xbf16> to vector<39x84xbf16>
    %cst_18 = arith.constant dense<0.000000e+00> : vector<39x252xf32>
    %19 = tpu.matmul %18, %1, %cst_18 {dimension_numbers = #tpu.dot_dimension_numbers<[1], [0], [0], [1], [0, 0, 1, 1], [], []>} : vector<39x84xbf16>, vector<84x252xbf16>, vector<39x252xf32> -> vector<39x252xf32>
    %20 = arith.truncf %19 : vector<39x252xf32> to vector<39x252xbf16>
    %c2_19 = arith.constant 2 : index
    %c0_20 = arith.constant 0 : index
    %c0_21 = arith.constant 0 : index
    %21 = vector.load %arg3[%c2_19, %c0_20, %c0_21] : memref<7x252x312xbf16, #tpu.memory_space<vmem>>, vector<1x252x312xbf16>
    %22 = vector.shape_cast %21 : vector<1x252x312xbf16> to vector<252x312xbf16>
    %cst_22 = arith.constant dense<0.000000e+00> : vector<39x312xf32>
    %23 = tpu.matmul %20, %22, %cst_22 {dimension_numbers = #tpu.dot_dimension_numbers<[1], [0], [0], [1], [0, 0, 1, 1], [], []>} : vector<39x252xbf16>, vector<252x312xbf16>, vector<39x312xf32> -> vector<39x312xf32>
    %24 = arith.addf %16, %23 : vector<39x312xf32>
    %c3 = arith.constant 3 : index
    %c0_23 = arith.constant 0 : index
    %c0_24 = arith.constant 0 : index
    %25 = vector.load %arg2[%c3, %c0_23, %c0_24] : memref<7x39x84xbf16, #tpu.memory_space<vmem>>, vector<1x39x84xbf16>
    %26 = vector.shape_cast %25 : vector<1x39x84xbf16> to vector<39x84xbf16>
    %cst_25 = arith.constant dense<0.000000e+00> : vector<39x252xf32>
    %27 = tpu.matmul %26, %1, %cst_25 {dimension_numbers = #tpu.dot_dimension_numbers<[1], [0], [0], [1], [0, 0, 1, 1], [], []>} : vector<39x84xbf16>, vector<84x252xbf16>, vector<39x252xf32> -> vector<39x252xf32>
    %28 = arith.truncf %27 : vector<39x252xf32> to vector<39x252xbf16>
    %c3_26 = arith.constant 3 : index
    %c0_27 = arith.constant 0 : index
    %c0_28 = arith.constant 0 : index
    %29 = vector.load %arg3[%c3_26, %c0_27, %c0_28] : memref<7x252x312xbf16, #tpu.memory_space<vmem>>, vector<1x252x312xbf16>
    %30 = vector.shape_cast %29 : vector<1x252x312xbf16> to vector<252x312xbf16>
    %cst_29 = arith.constant dense<0.000000e+00> : vector<39x312xf32>
    %31 = tpu.matmul %28, %30, %cst_29 {dimension_numbers = #tpu.dot_dimension_numbers<[1], [0], [0], [1], [0, 0, 1, 1], [], []>} : vector<39x252xbf16>, vector<252x312xbf16>, vector<39x312xf32> -> vector<39x312xf32>
    %32 = arith.addf %24, %31 : vector<39x312xf32>
    %c4 = arith.constant 4 : index
    %c0_30 = arith.constant 0 : index
    %c0_31 = arith.constant 0 : index
    %33 = vector.load %arg2[%c4, %c0_30, %c0_31] : memref<7x39x84xbf16, #tpu.memory_space<vmem>>, vector<1x39x84xbf16>
    %34 = vector.shape_cast %33 : vector<1x39x84xbf16> to vector<39x84xbf16>
    %cst_32 = arith.constant dense<0.000000e+00> : vector<39x252xf32>
    %35 = tpu.matmul %34, %1, %cst_32 {dimension_numbers = #tpu.dot_dimension_numbers<[1], [0], [0], [1], [0, 0, 1, 1], [], []>} : vector<39x84xbf16>, vector<84x252xbf16>, vector<39x252xf32> -> vector<39x252xf32>
    %36 = arith.truncf %35 : vector<39x252xf32> to vector<39x252xbf16>
    %c4_33 = arith.constant 4 : index
    %c0_34 = arith.constant 0 : index
    %c0_35 = arith.constant 0 : index
    %37 = vector.load %arg3[%c4_33, %c0_34, %c0_35] : memref<7x252x312xbf16, #tpu.memory_space<vmem>>, vector<1x252x312xbf16>
    %38 = vector.shape_cast %37 : vector<1x252x312xbf16> to vector<252x312xbf16>
    %cst_36 = arith.constant dense<0.000000e+00> : vector<39x312xf32>
    %39 = tpu.matmul %36, %38, %cst_36 {dimension_numbers = #tpu.dot_dimension_numbers<[1], [0], [0], [1], [0, 0, 1, 1], [], []>} : vector<39x252xbf16>, vector<252x312xbf16>, vector<39x312xf32> -> vector<39x312xf32>
    %40 = arith.addf %32, %39 : vector<39x312xf32>
    %c5 = arith.constant 5 : index
    %c0_37 = arith.constant 0 : index
    %c0_38 = arith.constant 0 : index
    %41 = vector.load %arg2[%c5, %c0_37, %c0_38] : memref<7x39x84xbf16, #tpu.memory_space<vmem>>, vector<1x39x84xbf16>
    %42 = vector.shape_cast %41 : vector<1x39x84xbf16> to vector<39x84xbf16>
    %cst_39 = arith.constant dense<0.000000e+00> : vector<39x252xf32>
    %43 = tpu.matmul %42, %1, %cst_39 {dimension_numbers = #tpu.dot_dimension_numbers<[1], [0], [0], [1], [0, 0, 1, 1], [], []>} : vector<39x84xbf16>, vector<84x252xbf16>, vector<39x252xf32> -> vector<39x252xf32>
    %44 = arith.truncf %43 : vector<39x252xf32> to vector<39x252xbf16>
    %c5_40 = arith.constant 5 : index
    %c0_41 = arith.constant 0 : index
    %c0_42 = arith.constant 0 : index
    %45 = vector.load %arg3[%c5_40, %c0_41, %c0_42] : memref<7x252x312xbf16, #tpu.memory_space<vmem>>, vector<1x252x312xbf16>
    %46 = vector.shape_cast %45 : vector<1x252x312xbf16> to vector<252x312xbf16>
    %cst_43 = arith.constant dense<0.000000e+00> : vector<39x312xf32>
    %47 = tpu.matmul %44, %46, %cst_43 {dimension_numbers = #tpu.dot_dimension_numbers<[1], [0], [0], [1], [0, 0, 1, 1], [], []>} : vector<39x252xbf16>, vector<252x312xbf16>, vector<39x312xf32> -> vector<39x312xf32>
    %48 = arith.addf %40, %47 : vector<39x312xf32>
    %c6 = arith.constant 6 : index
    %c0_44 = arith.constant 0 : index
    %c0_45 = arith.constant 0 : index
    %49 = vector.load %arg2[%c6, %c0_44, %c0_45] : memref<7x39x84xbf16, #tpu.memory_space<vmem>>, vector<1x39x84xbf16>
    %50 = vector.shape_cast %49 : vector<1x39x84xbf16> to vector<39x84xbf16>
    %cst_46 = arith.constant dense<0.000000e+00> : vector<39x252xf32>
    %51 = tpu.matmul %50, %1, %cst_46 {dimension_numbers = #tpu.dot_dimension_numbers<[1], [0], [0], [1], [0, 0, 1, 1], [], []>} : vector<39x84xbf16>, vector<84x252xbf16>, vector<39x252xf32> -> vector<39x252xf32>
    %52 = arith.truncf %51 : vector<39x252xf32> to vector<39x252xbf16>
    %c6_47 = arith.constant 6 : index
    %c0_48 = arith.constant 0 : index
    %c0_49 = arith.constant 0 : index
    %53 = vector.load %arg3[%c6_47, %c0_48, %c0_49] : memref<7x252x312xbf16, #tpu.memory_space<vmem>>, vector<1x252x312xbf16>
    %54 = vector.shape_cast %53 : vector<1x252x312xbf16> to vector<252x312xbf16>
    %cst_50 = arith.constant dense<0.000000e+00> : vector<39x312xf32>
    %55 = tpu.matmul %52, %54, %cst_50 {dimension_numbers = #tpu.dot_dimension_numbers<[1], [0], [0], [1], [0, 0, 1, 1], [], []>} : vector<39x252xbf16>, vector<252x312xbf16>, vector<39x312xf32> -> vector<39x312xf32>
    %56 = arith.addf %48, %55 : vector<39x312xf32>
    %c0_51 = arith.constant 0 : index
    %c0_52 = arith.constant 0 : index
    %57 = vector.load %arg4[%c0_51, %c0_52] : memref<1x312xf32, #tpu.memory_space<vmem>>, vector<1x312xf32>
    %58 = vector.broadcast %57 : vector<1x312xf32> to vector<39x312xf32>
    %59 = arith.addf %56, %58 : vector<39x312xf32>
    %cst_53 = arith.constant 0.000000e+00 : f32
    %60 = vector.broadcast %cst_53 : f32 to vector<39x312xf32>
    %61 = arith.maximumf %59, %60 : vector<39x312xf32>
    %62 = arith.truncf %61 : vector<39x312xf32> to vector<39x312xbf16>
    %c0_54 = arith.constant 0 : index
    %c0_55 = arith.constant 0 : index
    %c0_56 = arith.constant 0 : index
    %63 = vector.load %arg5[%c0_54, %c0_55, %c0_56] : memref<5x18x39xbf16, #tpu.memory_space<vmem>>, vector<1x18x39xbf16>
    %64 = vector.shape_cast %63 : vector<1x18x39xbf16> to vector<18x39xbf16>
    %cst_57 = arith.constant dense<0.000000e+00> : vector<18x312xf32>
    %65 = tpu.matmul %64, %62, %cst_57 {dimension_numbers = #tpu.dot_dimension_numbers<[1], [0], [0], [1], [0, 0, 1, 1], [], []>} : vector<18x39xbf16>, vector<39x312xbf16>, vector<18x312xf32> -> vector<18x312xf32>
    %66 = arith.truncf %65 : vector<18x312xf32> to vector<18x312xbf16>
    %c0_58 = arith.constant 0 : index
    %c0_59 = arith.constant 0 : index
    %c0_60 = arith.constant 0 : index
    %67 = vector.load %arg6[%c0_58, %c0_59, %c0_60] : memref<5x312x144xbf16, #tpu.memory_space<vmem>>, vector<1x312x144xbf16>
    %68 = vector.shape_cast %67 : vector<1x312x144xbf16> to vector<312x144xbf16>
    %cst_61 = arith.constant dense<0.000000e+00> : vector<18x144xf32>
    %69 = tpu.matmul %66, %68, %cst_61 {dimension_numbers = #tpu.dot_dimension_numbers<[1], [0], [0], [1], [0, 0, 1, 1], [], []>} : vector<18x312xbf16>, vector<312x144xbf16>, vector<18x144xf32> -> vector<18x144xf32>
    %c1_62 = arith.constant 1 : index
    %c0_63 = arith.constant 0 : index
    %c0_64 = arith.constant 0 : index
    %70 = vector.load %arg5[%c1_62, %c0_63, %c0_64] : memref<5x18x39xbf16, #tpu.memory_space<vmem>>, vector<1x18x39xbf16>
    %71 = vector.shape_cast %70 : vector<1x18x39xbf16> to vector<18x39xbf16>
    %cst_65 = arith.constant dense<0.000000e+00> : vector<18x312xf32>
    %72 = tpu.matmul %71, %62, %cst_65 {dimension_numbers = #tpu.dot_dimension_numbers<[1], [0], [0], [1], [0, 0, 1, 1], [], []>} : vector<18x39xbf16>, vector<39x312xbf16>, vector<18x312xf32> -> vector<18x312xf32>
    %73 = arith.truncf %72 : vector<18x312xf32> to vector<18x312xbf16>
    %c1_66 = arith.constant 1 : index
    %c0_67 = arith.constant 0 : index
    %c0_68 = arith.constant 0 : index
    %74 = vector.load %arg6[%c1_66, %c0_67, %c0_68] : memref<5x312x144xbf16, #tpu.memory_space<vmem>>, vector<1x312x144xbf16>
    %75 = vector.shape_cast %74 : vector<1x312x144xbf16> to vector<312x144xbf16>
    %cst_69 = arith.constant dense<0.000000e+00> : vector<18x144xf32>
    %76 = tpu.matmul %73, %75, %cst_69 {dimension_numbers = #tpu.dot_dimension_numbers<[1], [0], [0], [1], [0, 0, 1, 1], [], []>} : vector<18x312xbf16>, vector<312x144xbf16>, vector<18x144xf32> -> vector<18x144xf32>
    %77 = arith.addf %69, %76 : vector<18x144xf32>
    %c2_70 = arith.constant 2 : index
    %c0_71 = arith.constant 0 : index
    %c0_72 = arith.constant 0 : index
    %78 = vector.load %arg5[%c2_70, %c0_71, %c0_72] : memref<5x18x39xbf16, #tpu.memory_space<vmem>>, vector<1x18x39xbf16>
    %79 = vector.shape_cast %78 : vector<1x18x39xbf16> to vector<18x39xbf16>
    %cst_73 = arith.constant dense<0.000000e+00> : vector<18x312xf32>
    %80 = tpu.matmul %79, %62, %cst_73 {dimension_numbers = #tpu.dot_dimension_numbers<[1], [0], [0], [1], [0, 0, 1, 1], [], []>} : vector<18x39xbf16>, vector<39x312xbf16>, vector<18x312xf32> -> vector<18x312xf32>
    %81 = arith.truncf %80 : vector<18x312xf32> to vector<18x312xbf16>
    %c2_74 = arith.constant 2 : index
    %c0_75 = arith.constant 0 : index
    %c0_76 = arith.constant 0 : index
    %82 = vector.load %arg6[%c2_74, %c0_75, %c0_76] : memref<5x312x144xbf16, #tpu.memory_space<vmem>>, vector<1x312x144xbf16>
    %83 = vector.shape_cast %82 : vector<1x312x144xbf16> to vector<312x144xbf16>
    %cst_77 = arith.constant dense<0.000000e+00> : vector<18x144xf32>
    %84 = tpu.matmul %81, %83, %cst_77 {dimension_numbers = #tpu.dot_dimension_numbers<[1], [0], [0], [1], [0, 0, 1, 1], [], []>} : vector<18x312xbf16>, vector<312x144xbf16>, vector<18x144xf32> -> vector<18x144xf32>
    %85 = arith.addf %77, %84 : vector<18x144xf32>
    %c3_78 = arith.constant 3 : index
    %c0_79 = arith.constant 0 : index
    %c0_80 = arith.constant 0 : index
    %86 = vector.load %arg5[%c3_78, %c0_79, %c0_80] : memref<5x18x39xbf16, #tpu.memory_space<vmem>>, vector<1x18x39xbf16>
    %87 = vector.shape_cast %86 : vector<1x18x39xbf16> to vector<18x39xbf16>
    %cst_81 = arith.constant dense<0.000000e+00> : vector<18x312xf32>
    %88 = tpu.matmul %87, %62, %cst_81 {dimension_numbers = #tpu.dot_dimension_numbers<[1], [0], [0], [1], [0, 0, 1, 1], [], []>} : vector<18x39xbf16>, vector<39x312xbf16>, vector<18x312xf32> -> vector<18x312xf32>
    %89 = arith.truncf %88 : vector<18x312xf32> to vector<18x312xbf16>
    %c3_82 = arith.constant 3 : index
    %c0_83 = arith.constant 0 : index
    %c0_84 = arith.constant 0 : index
    %90 = vector.load %arg6[%c3_82, %c0_83, %c0_84] : memref<5x312x144xbf16, #tpu.memory_space<vmem>>, vector<1x312x144xbf16>
    %91 = vector.shape_cast %90 : vector<1x312x144xbf16> to vector<312x144xbf16>
    %cst_85 = arith.constant dense<0.000000e+00> : vector<18x144xf32>
    %92 = tpu.matmul %89, %91, %cst_85 {dimension_numbers = #tpu.dot_dimension_numbers<[1], [0], [0], [1], [0, 0, 1, 1], [], []>} : vector<18x312xbf16>, vector<312x144xbf16>, vector<18x144xf32> -> vector<18x144xf32>
    %93 = arith.addf %85, %92 : vector<18x144xf32>
    %c4_86 = arith.constant 4 : index
    %c0_87 = arith.constant 0 : index
    %c0_88 = arith.constant 0 : index
    %94 = vector.load %arg5[%c4_86, %c0_87, %c0_88] : memref<5x18x39xbf16, #tpu.memory_space<vmem>>, vector<1x18x39xbf16>
    %95 = vector.shape_cast %94 : vector<1x18x39xbf16> to vector<18x39xbf16>
    %cst_89 = arith.constant dense<0.000000e+00> : vector<18x312xf32>
    %96 = tpu.matmul %95, %62, %cst_89 {dimension_numbers = #tpu.dot_dimension_numbers<[1], [0], [0], [1], [0, 0, 1, 1], [], []>} : vector<18x39xbf16>, vector<39x312xbf16>, vector<18x312xf32> -> vector<18x312xf32>
    %97 = arith.truncf %96 : vector<18x312xf32> to vector<18x312xbf16>
    %c4_90 = arith.constant 4 : index
    %c0_91 = arith.constant 0 : index
    %c0_92 = arith.constant 0 : index
    %98 = vector.load %arg6[%c4_90, %c0_91, %c0_92] : memref<5x312x144xbf16, #tpu.memory_space<vmem>>, vector<1x312x144xbf16>
    %99 = vector.shape_cast %98 : vector<1x312x144xbf16> to vector<312x144xbf16>
    %cst_93 = arith.constant dense<0.000000e+00> : vector<18x144xf32>
    %100 = tpu.matmul %97, %99, %cst_93 {dimension_numbers = #tpu.dot_dimension_numbers<[1], [0], [0], [1], [0, 0, 1, 1], [], []>} : vector<18x312xbf16>, vector<312x144xbf16>, vector<18x144xf32> -> vector<18x144xf32>
    %101 = arith.addf %93, %100 : vector<18x144xf32>
    %c0_94 = arith.constant 0 : index
    %c0_95 = arith.constant 0 : index
    %102 = vector.load %arg7[%c0_94, %c0_95] : memref<1x144xf32, #tpu.memory_space<vmem>>, vector<1x144xf32>
    %103 = vector.broadcast %102 : vector<1x144xf32> to vector<18x144xf32>
    %104 = arith.addf %101, %103 : vector<18x144xf32>
    %cst_96 = arith.constant 0.000000e+00 : f32
    %105 = vector.broadcast %cst_96 : f32 to vector<18x144xf32>
    %106 = arith.maximumf %104, %105 : vector<18x144xf32>
    %107 = arith.truncf %106 : vector<18x144xf32> to vector<18x144xbf16>
    %c0_97 = arith.constant 0 : index
    %c0_98 = arith.constant 0 : index
    %c0_99 = arith.constant 0 : index
    %108 = vector.load %arg8[%c0_97, %c0_98, %c0_99] : memref<3x8x18xbf16, #tpu.memory_space<vmem>>, vector<1x8x18xbf16>
    %109 = vector.shape_cast %108 : vector<1x8x18xbf16> to vector<8x18xbf16>
    %cst_100 = arith.constant dense<0.000000e+00> : vector<8x144xf32>
    %110 = tpu.matmul %109, %107, %cst_100 {dimension_numbers = #tpu.dot_dimension_numbers<[1], [0], [0], [1], [0, 0, 1, 1], [], []>} : vector<8x18xbf16>, vector<18x144xbf16>, vector<8x144xf32> -> vector<8x144xf32>
    %111 = arith.truncf %110 : vector<8x144xf32> to vector<8x144xbf16>
    %c0_101 = arith.constant 0 : index
    %c0_102 = arith.constant 0 : index
    %c0_103 = arith.constant 0 : index
    %112 = vector.load %arg9[%c0_101, %c0_102, %c0_103] : memref<3x144x64xbf16, #tpu.memory_space<vmem>>, vector<1x144x64xbf16>
    %113 = vector.shape_cast %112 : vector<1x144x64xbf16> to vector<144x64xbf16>
    %cst_104 = arith.constant dense<0.000000e+00> : vector<8x64xf32>
    %114 = tpu.matmul %111, %113, %cst_104 {dimension_numbers = #tpu.dot_dimension_numbers<[1], [0], [0], [1], [0, 0, 1, 1], [], []>} : vector<8x144xbf16>, vector<144x64xbf16>, vector<8x64xf32> -> vector<8x64xf32>
    %c1_105 = arith.constant 1 : index
    %c0_106 = arith.constant 0 : index
    %c0_107 = arith.constant 0 : index
    %115 = vector.load %arg8[%c1_105, %c0_106, %c0_107] : memref<3x8x18xbf16, #tpu.memory_space<vmem>>, vector<1x8x18xbf16>
    %116 = vector.shape_cast %115 : vector<1x8x18xbf16> to vector<8x18xbf16>
    %cst_108 = arith.constant dense<0.000000e+00> : vector<8x144xf32>
    %117 = tpu.matmul %116, %107, %cst_108 {dimension_numbers = #tpu.dot_dimension_numbers<[1], [0], [0], [1], [0, 0, 1, 1], [], []>} : vector<8x18xbf16>, vector<18x144xbf16>, vector<8x144xf32> -> vector<8x144xf32>
    %118 = arith.truncf %117 : vector<8x144xf32> to vector<8x144xbf16>
    %c1_109 = arith.constant 1 : index
    %c0_110 = arith.constant 0 : index
    %c0_111 = arith.constant 0 : index
    %119 = vector.load %arg9[%c1_109, %c0_110, %c0_111] : memref<3x144x64xbf16, #tpu.memory_space<vmem>>, vector<1x144x64xbf16>
    %120 = vector.shape_cast %119 : vector<1x144x64xbf16> to vector<144x64xbf16>
    %cst_112 = arith.constant dense<0.000000e+00> : vector<8x64xf32>
    %121 = tpu.matmul %118, %120, %cst_112 {dimension_numbers = #tpu.dot_dimension_numbers<[1], [0], [0], [1], [0, 0, 1, 1], [], []>} : vector<8x144xbf16>, vector<144x64xbf16>, vector<8x64xf32> -> vector<8x64xf32>
    %122 = arith.addf %114, %121 : vector<8x64xf32>
    %c2_113 = arith.constant 2 : index
    %c0_114 = arith.constant 0 : index
    %c0_115 = arith.constant 0 : index
    %123 = vector.load %arg8[%c2_113, %c0_114, %c0_115] : memref<3x8x18xbf16, #tpu.memory_space<vmem>>, vector<1x8x18xbf16>
    %124 = vector.shape_cast %123 : vector<1x8x18xbf16> to vector<8x18xbf16>
    %cst_116 = arith.constant dense<0.000000e+00> : vector<8x144xf32>
    %125 = tpu.matmul %124, %107, %cst_116 {dimension_numbers = #tpu.dot_dimension_numbers<[1], [0], [0], [1], [0, 0, 1, 1], [], []>} : vector<8x18xbf16>, vector<18x144xbf16>, vector<8x144xf32> -> vector<8x144xf32>
    %126 = arith.truncf %125 : vector<8x144xf32> to vector<8x144xbf16>
    %c2_117 = arith.constant 2 : index
    %c0_118 = arith.constant 0 : index
    %c0_119 = arith.constant 0 : index
    %127 = vector.load %arg9[%c2_117, %c0_118, %c0_119] : memref<3x144x64xbf16, #tpu.memory_space<vmem>>, vector<1x144x64xbf16>
    %128 = vector.shape_cast %127 : vector<1x144x64xbf16> to vector<144x64xbf16>
    %cst_120 = arith.constant dense<0.000000e+00> : vector<8x64xf32>
    %129 = tpu.matmul %126, %128, %cst_120 {dimension_numbers = #tpu.dot_dimension_numbers<[1], [0], [0], [1], [0, 0, 1, 1], [], []>} : vector<8x144xbf16>, vector<144x64xbf16>, vector<8x64xf32> -> vector<8x64xf32>
    %130 = arith.addf %122, %129 : vector<8x64xf32>
    %c0_121 = arith.constant 0 : index
    %c0_122 = arith.constant 0 : index
    %131 = vector.load %arg10[%c0_121, %c0_122] : memref<1x64xf32, #tpu.memory_space<vmem>>, vector<1x64xf32>
    %132 = vector.broadcast %131 : vector<1x64xf32> to vector<8x64xf32>
    %133 = arith.addf %130, %132 : vector<8x64xf32>
    %cst_123 = arith.constant 0.000000e+00 : f32
    %134 = vector.broadcast %cst_123 : f32 to vector<8x64xf32>
    %135 = arith.maximumf %133, %134 : vector<8x64xf32>
    %136 = arith.truncf %135 : vector<8x64xf32> to vector<8x64xbf16>
    %c0_124 = arith.constant 0 : index
    %c0_125 = arith.constant 0 : index
    %c0_126 = arith.constant 0 : index
    %137 = vector.load %arg11[%c0_124, %c0_125, %c0_126] : memref<3x3x8xbf16, #tpu.memory_space<vmem>>, vector<1x3x8xbf16>
    %138 = vector.shape_cast %137 : vector<1x3x8xbf16> to vector<3x8xbf16>
    %cst_127 = arith.constant dense<0.000000e+00> : vector<3x64xf32>
    %139 = tpu.matmul %138, %136, %cst_127 {dimension_numbers = #tpu.dot_dimension_numbers<[1], [0], [0], [1], [0, 0, 1, 1], [], []>} : vector<3x8xbf16>, vector<8x64xbf16>, vector<3x64xf32> -> vector<3x64xf32>
    %140 = arith.truncf %139 : vector<3x64xf32> to vector<3x64xbf16>
    %c0_128 = arith.constant 0 : index
    %c0_129 = arith.constant 0 : index
    %c0_130 = arith.constant 0 : index
    %141 = vector.load %arg12[%c0_128, %c0_129, %c0_130] : memref<3x64x24xbf16, #tpu.memory_space<vmem>>, vector<1x64x24xbf16>
    %142 = vector.shape_cast %141 : vector<1x64x24xbf16> to vector<64x24xbf16>
    %cst_131 = arith.constant dense<0.000000e+00> : vector<3x24xf32>
    %143 = tpu.matmul %140, %142, %cst_131 {dimension_numbers = #tpu.dot_dimension_numbers<[1], [0], [0], [1], [0, 0, 1, 1], [], []>} : vector<3x64xbf16>, vector<64x24xbf16>, vector<3x24xf32> -> vector<3x24xf32>
    %c1_132 = arith.constant 1 : index
    %c0_133 = arith.constant 0 : index
    %c0_134 = arith.constant 0 : index
    %144 = vector.load %arg11[%c1_132, %c0_133, %c0_134] : memref<3x3x8xbf16, #tpu.memory_space<vmem>>, vector<1x3x8xbf16>
    %145 = vector.shape_cast %144 : vector<1x3x8xbf16> to vector<3x8xbf16>
    %cst_135 = arith.constant dense<0.000000e+00> : vector<3x64xf32>
    %146 = tpu.matmul %145, %136, %cst_135 {dimension_numbers = #tpu.dot_dimension_numbers<[1], [0], [0], [1], [0, 0, 1, 1], [], []>} : vector<3x8xbf16>, vector<8x64xbf16>, vector<3x64xf32> -> vector<3x64xf32>
    %147 = arith.truncf %146 : vector<3x64xf32> to vector<3x64xbf16>
    %c1_136 = arith.constant 1 : index
    %c0_137 = arith.constant 0 : index
    %c0_138 = arith.constant 0 : index
    %148 = vector.load %arg12[%c1_136, %c0_137, %c0_138] : memref<3x64x24xbf16, #tpu.memory_space<vmem>>, vector<1x64x24xbf16>
    %149 = vector.shape_cast %148 : vector<1x64x24xbf16> to vector<64x24xbf16>
    %cst_139 = arith.constant dense<0.000000e+00> : vector<3x24xf32>
    %150 = tpu.matmul %147, %149, %cst_139 {dimension_numbers = #tpu.dot_dimension_numbers<[1], [0], [0], [1], [0, 0, 1, 1], [], []>} : vector<3x64xbf16>, vector<64x24xbf16>, vector<3x24xf32> -> vector<3x24xf32>
    %151 = arith.addf %143, %150 : vector<3x24xf32>
    %c2_140 = arith.constant 2 : index
    %c0_141 = arith.constant 0 : index
    %c0_142 = arith.constant 0 : index
    %152 = vector.load %arg11[%c2_140, %c0_141, %c0_142] : memref<3x3x8xbf16, #tpu.memory_space<vmem>>, vector<1x3x8xbf16>
    %153 = vector.shape_cast %152 : vector<1x3x8xbf16> to vector<3x8xbf16>
    %cst_143 = arith.constant dense<0.000000e+00> : vector<3x64xf32>
    %154 = tpu.matmul %153, %136, %cst_143 {dimension_numbers = #tpu.dot_dimension_numbers<[1], [0], [0], [1], [0, 0, 1, 1], [], []>} : vector<3x8xbf16>, vector<8x64xbf16>, vector<3x64xf32> -> vector<3x64xf32>
    %155 = arith.truncf %154 : vector<3x64xf32> to vector<3x64xbf16>
    %c2_144 = arith.constant 2 : index
    %c0_145 = arith.constant 0 : index
    %c0_146 = arith.constant 0 : index
    %156 = vector.load %arg12[%c2_144, %c0_145, %c0_146] : memref<3x64x24xbf16, #tpu.memory_space<vmem>>, vector<1x64x24xbf16>
    %157 = vector.shape_cast %156 : vector<1x64x24xbf16> to vector<64x24xbf16>
    %cst_147 = arith.constant dense<0.000000e+00> : vector<3x24xf32>
    %158 = tpu.matmul %155, %157, %cst_147 {dimension_numbers = #tpu.dot_dimension_numbers<[1], [0], [0], [1], [0, 0, 1, 1], [], []>} : vector<3x64xbf16>, vector<64x24xbf16>, vector<3x24xf32> -> vector<3x24xf32>
    %159 = arith.addf %151, %158 : vector<3x24xf32>
    %c0_148 = arith.constant 0 : index
    %c0_149 = arith.constant 0 : index
    %160 = vector.load %arg13[%c0_148, %c0_149] : memref<1x24xf32, #tpu.memory_space<vmem>>, vector<1x24xf32>
    %161 = vector.broadcast %160 : vector<1x24xf32> to vector<3x24xf32>
    %162 = arith.addf %159, %161 : vector<3x24xf32>
    %cst_150 = arith.constant 0.000000e+00 : f32
    %163 = vector.broadcast %cst_150 : f32 to vector<3x24xf32>
    %164 = arith.maximumf %162, %163 : vector<3x24xf32>
    %165 = arith.truncf %164 : vector<3x24xf32> to vector<3x24xbf16>
    %c0_151 = arith.constant 0 : index
    %c0_152 = arith.constant 0 : index
    %c0_153 = arith.constant 0 : index
    %166 = vector.load %arg14[%c0_151, %c0_152, %c0_153] : memref<3x1x3xbf16, #tpu.memory_space<vmem>>, vector<1x1x3xbf16>
    %167 = vector.shape_cast %166 : vector<1x1x3xbf16> to vector<1x3xbf16>
    %cst_154 = arith.constant dense<0.000000e+00> : vector<1x24xf32>
    %168 = tpu.matmul %167, %165, %cst_154 {dimension_numbers = #tpu.dot_dimension_numbers<[1], [0], [0], [1], [0, 0, 1, 1], [], []>} : vector<1x3xbf16>, vector<3x24xbf16>, vector<1x24xf32> -> vector<1x24xf32>
    %169 = arith.truncf %168 : vector<1x24xf32> to vector<1x24xbf16>
    %c0_155 = arith.constant 0 : index
    %c0_156 = arith.constant 0 : index
    %c0_157 = arith.constant 0 : index
    %170 = vector.load %arg15[%c0_155, %c0_156, %c0_157] : memref<3x24x32xbf16, #tpu.memory_space<vmem>>, vector<1x24x32xbf16>
    %171 = vector.shape_cast %170 : vector<1x24x32xbf16> to vector<24x32xbf16>
    %cst_158 = arith.constant dense<0.000000e+00> : vector<1x32xf32>
    %172 = tpu.matmul %169, %171, %cst_158 {dimension_numbers = #tpu.dot_dimension_numbers<[1], [0], [0], [1], [0, 0, 1, 1], [], []>} : vector<1x24xbf16>, vector<24x32xbf16>, vector<1x32xf32> -> vector<1x32xf32>
    %c1_159 = arith.constant 1 : index
    %c0_160 = arith.constant 0 : index
    %c0_161 = arith.constant 0 : index
    %173 = vector.load %arg14[%c1_159, %c0_160, %c0_161] : memref<3x1x3xbf16, #tpu.memory_space<vmem>>, vector<1x1x3xbf16>
    %174 = vector.shape_cast %173 : vector<1x1x3xbf16> to vector<1x3xbf16>
    %cst_162 = arith.constant dense<0.000000e+00> : vector<1x24xf32>
    %175 = tpu.matmul %174, %165, %cst_162 {dimension_numbers = #tpu.dot_dimension_numbers<[1], [0], [0], [1], [0, 0, 1, 1], [], []>} : vector<1x3xbf16>, vector<3x24xbf16>, vector<1x24xf32> -> vector<1x24xf32>
    %176 = arith.truncf %175 : vector<1x24xf32> to vector<1x24xbf16>
    %c1_163 = arith.constant 1 : index
    %c0_164 = arith.constant 0 : index
    %c0_165 = arith.constant 0 : index
    %177 = vector.load %arg15[%c1_163, %c0_164, %c0_165] : memref<3x24x32xbf16, #tpu.memory_space<vmem>>, vector<1x24x32xbf16>
    %178 = vector.shape_cast %177 : vector<1x24x32xbf16> to vector<24x32xbf16>
    %cst_166 = arith.constant dense<0.000000e+00> : vector<1x32xf32>
    %179 = tpu.matmul %176, %178, %cst_166 {dimension_numbers = #tpu.dot_dimension_numbers<[1], [0], [0], [1], [0, 0, 1, 1], [], []>} : vector<1x24xbf16>, vector<24x32xbf16>, vector<1x32xf32> -> vector<1x32xf32>
    %180 = arith.addf %172, %179 : vector<1x32xf32>
    %c2_167 = arith.constant 2 : index
    %c0_168 = arith.constant 0 : index
    %c0_169 = arith.constant 0 : index
    %181 = vector.load %arg14[%c2_167, %c0_168, %c0_169] : memref<3x1x3xbf16, #tpu.memory_space<vmem>>, vector<1x1x3xbf16>
    %182 = vector.shape_cast %181 : vector<1x1x3xbf16> to vector<1x3xbf16>
    %cst_170 = arith.constant dense<0.000000e+00> : vector<1x24xf32>
    %183 = tpu.matmul %182, %165, %cst_170 {dimension_numbers = #tpu.dot_dimension_numbers<[1], [0], [0], [1], [0, 0, 1, 1], [], []>} : vector<1x3xbf16>, vector<3x24xbf16>, vector<1x24xf32> -> vector<1x24xf32>
    %184 = arith.truncf %183 : vector<1x24xf32> to vector<1x24xbf16>
    %c2_171 = arith.constant 2 : index
    %c0_172 = arith.constant 0 : index
    %c0_173 = arith.constant 0 : index
    %185 = vector.load %arg15[%c2_171, %c0_172, %c0_173] : memref<3x24x32xbf16, #tpu.memory_space<vmem>>, vector<1x24x32xbf16>
    %186 = vector.shape_cast %185 : vector<1x24x32xbf16> to vector<24x32xbf16>
    %cst_174 = arith.constant dense<0.000000e+00> : vector<1x32xf32>
    %187 = tpu.matmul %184, %186, %cst_174 {dimension_numbers = #tpu.dot_dimension_numbers<[1], [0], [0], [1], [0, 0, 1, 1], [], []>} : vector<1x24xbf16>, vector<24x32xbf16>, vector<1x32xf32> -> vector<1x32xf32>
    %188 = arith.addf %180, %187 : vector<1x32xf32>
    %c0_175 = arith.constant 0 : index
    %c0_176 = arith.constant 0 : index
    %189 = vector.load %arg16[%c0_175, %c0_176] : memref<1x32xf32, #tpu.memory_space<vmem>>, vector<1x32xf32>
    %190 = arith.addf %188, %189 : vector<1x32xf32>
    %c0_177 = arith.constant 0 : index
    %c0_178 = arith.constant 0 : index
    %c0_179 = arith.constant 0 : index
    %191 = vector.load %arg17[%c0_177, %c0_178, %c0_179] : memref<1x1x32xf32, #tpu.memory_space<vmem>>, vector<1x1x32xf32>
    %192 = vector.shape_cast %191 : vector<1x1x32xf32> to vector<1x32xf32>
    %193 = vector.shape_cast %190 : vector<1x32xf32> to vector<1x1x32xf32>
    tpu.vector_store %arg17[%c0_177, %c0_178, %c0_179], %193 {strides = array<i32>} : memref<1x1x32xf32, #tpu.memory_space<vmem>>, vector<1x1x32xf32>,
    return
  }
  func.func @transform_0(%arg0: i32) -> (i32, i32, i32) {
    %c0_i32 = arith.constant 0 : i32
    %c0_i32_0 = arith.constant 0 : i32
    %c0_i32_1 = arith.constant 0 : i32
    return %arg0, %c0_i32, %c0_i32_0 : i32, i32, i32
  }
  func.func @transform_1(%arg0: i32) -> (i32, i32, i32) {
    %c0_i32 = arith.constant 0 : i32
    %c0_i32_0 = arith.constant 0 : i32
    %c0_i32_1 = arith.constant 0 : i32
    %c0_i32_2 = arith.constant 0 : i32
    return %c0_i32, %c0_i32_0, %c0_i32_1 : i32, i32, i32
  }
  func.func @transform_2(%arg0: i32) -> (i32, i32, i32) {
    %c0_i32 = arith.constant 0 : i32
    %c0_i32_0 = arith.constant 0 : i32
    %c0_i32_1 = arith.constant 0 : i32
    %c0_i32_2 = arith.constant 0 : i32
    return %c0_i32, %c0_i32_0, %c0_i32_1 : i32, i32, i32
  }
  func.func @transform_3(%arg0: i32) -> (i32, i32) {
    %c0_i32 = arith.constant 0 : i32
    %c0_i32_0 = arith.constant 0 : i32
    %c0_i32_1 = arith.constant 0 : i32
    return %c0_i32, %c0_i32_0 : i32, i32
  }
  func.func @transform_4(%arg0: i32) -> (i32, i32, i32) {
    %c0_i32 = arith.constant 0 : i32
    %c0_i32_0 = arith.constant 0 : i32
    %c0_i32_1 = arith.constant 0 : i32
    %c0_i32_2 = arith.constant 0 : i32
    return %c0_i32, %c0_i32_0, %c0_i32_1 : i32, i32, i32
  }
  func.func @transform_5(%arg0: i32) -> (i32, i32, i32) {
    %c0_i32 = arith.constant 0 : i32
    %c0_i32_0 = arith.constant 0 : i32
    %c0_i32_1 = arith.constant 0 : i32
    %c0_i32_2 = arith.constant 0 : i32
    return %c0_i32, %c0_i32_0, %c0_i32_1 : i32, i32, i32
  }
  func.func @transform_6(%arg0: i32) -> (i32, i32) {
    %c0_i32 = arith.constant 0 : i32
    %c0_i32_0 = arith.constant 0 : i32
    %c0_i32_1 = arith.constant 0 : i32
    return %c0_i32, %c0_i32_0 : i32, i32
  }
  func.func @transform_7(%arg0: i32) -> (i32, i32, i32) {
    %c0_i32 = arith.constant 0 : i32
    %c0_i32_0 = arith.constant 0 : i32
    %c0_i32_1 = arith.constant 0 : i32
    %c0_i32_2 = arith.constant 0 : i32
    return %c0_i32, %c0_i32_0, %c0_i32_1 : i32, i32, i32
  }
  func.func @transform_8(%arg0: i32) -> (i32, i32, i32) {
    %c0_i32 = arith.constant 0 : i32
    %c0_i32_0 = arith.constant 0 : i32
    %c0_i32_1 = arith.constant 0 : i32
    %c0_i32_2 = arith.constant 0 : i32
    return %c0_i32, %c0_i32_0, %c0_i32_1 : i32, i32, i32
  }
  func.func @transform_9(%arg0: i32) -> (i32, i32) {
    %c0_i32 = arith.constant 0 : i32
    %c0_i32_0 = arith.constant 0 : i32
    %c0_i32_1 = arith.constant 0 : i32
    return %c0_i32, %c0_i32_0 : i32, i32
  }
  func.func @transform_10(%arg0: i32) -> (i32, i32, i32) {
    %c0_i32 = arith.constant 0 : i32
    %c0_i32_0 = arith.constant 0 : i32
    %c0_i32_1 = arith.constant 0 : i32
    %c0_i32_2 = arith.constant 0 : i32
    return %c0_i32, %c0_i32_0, %c0_i32_1 : i32, i32, i32
  }
  func.func @transform_11(%arg0: i32) -> (i32, i32, i32) {
    %c0_i32 = arith.constant 0 : i32
    %c0_i32_0 = arith.constant 0 : i32
    %c0_i32_1 = arith.constant 0 : i32
    %c0_i32_2 = arith.constant 0 : i32
    return %c0_i32, %c0_i32_0, %c0_i32_1 : i32, i32, i32
  }
  func.func @transform_12(%arg0: i32) -> (i32, i32) {
    %c0_i32 = arith.constant 0 : i32
    %c0_i32_0 = arith.constant 0 : i32
    %c0_i32_1 = arith.constant 0 : i32
    return %c0_i32, %c0_i32_0 : i32, i32
  }
  func.func @transform_13(%arg0: i32) -> (i32, i32, i32) {
    %c0_i32 = arith.constant 0 : i32
    %c0_i32_0 = arith.constant 0 : i32
    %c0_i32_1 = arith.constant 0 : i32
    %c0_i32_2 = arith.constant 0 : i32
    return %c0_i32, %c0_i32_0, %c0_i32_1 : i32, i32, i32
  }
  func.func @transform_14(%arg0: i32) -> (i32, i32, i32) {
    %c0_i32 = arith.constant 0 : i32
    %c0_i32_0 = arith.constant 0 : i32
    %c0_i32_1 = arith.constant 0 : i32
    %c0_i32_2 = arith.constant 0 : i32
    return %c0_i32, %c0_i32_0, %c0_i32_1 : i32, i32, i32
  }
  func.func @transform_15(%arg0: i32) -> (i32, i32) {
    %c0_i32 = arith.constant 0 : i32
    %c0_i32_0 = arith.constant 0 : i32
    %c0_i32_1 = arith.constant 0 : i32
    return %c0_i32, %c0_i32_0 : i32, i32
  }
  func.func @transform_16(%arg0: i32) -> (i32, i32, i32) {
    %c0_i32 = arith.constant 0 : i32
    %c0_i32_0 = arith.constant 0 : i32
    %c0_i32_1 = arith.constant 0 : i32
    return %arg0, %c0_i32, %c0_i32_0 : i32, i32, i32
  }
}

</mosaic_0001>

<bundles_post_ra>
// kernel: encoder_apply.1
= control target key start
LH: loop header
LB: loop body
LE: loop exit
PB: predicated region body
PF: predicated region fallthrough
CT: control target
= control target key end

     0   :  { %s14086_s0 = inlined_call_operand.vmem [shape: bf16[2,84,252], index: 0, kind: input, shape index: {}]   ;;  %s14087_s1 = inlined_call_operand.vmem [shape: bf16[7,39,84], index: 1, kind: input, shape index: {}]   ;;  %s14088_s2 = inlined_call_operand.vmem [shape: bf16[7,252,312], index: 2, kind: input, shape index: {}]   ;;  %s14089_s3 = inlined_call_operand.vmem [shape: f32[1,312], index: 3, kind: input, shape index: {}]   ;;  %s14090_s4 = inlined_call_operand.vmem [shape: bf16[5,18,39], index: 4, kind: input, shape index: {}]   ;;  %s14091_s5 = inlined_call_operand.vmem [shape: bf16[5,312,144], index: 5, kind: input, shape index: {}]   ;;  %s14092_s6 = inlined_call_operand.vmem [shape: f32[1,144], index: 6, kind: input, shape index: {}]   ;;  %s14093_s7 = inlined_call_operand.vmem [shape: bf16[3,8,18], index: 7, kind: input, shape index: {}]   ;;  %s14094_s8 = inlined_call_operand.vmem [shape: bf16[3,144,64], index: 8, kind: input, shape index: {}]   ;;  %s14095_s9 = inlined_call_operand.vmem [shape: f32[1,64], index: 9, kind: input, shape index: {}]   ;;  %s14096_s10 = inlined_call_operand.vmem [shape: bf16[3,3,8], index: 10, kind: input, shape index: {}]   ;;  %s14097_s11 = inlined_call_operand.vmem [shape: bf16[3,64,24], index: 11, kind: input, shape index: {}]   ;;  %s14098_s12 = inlined_call_operand.vmem [shape: f32[1,24], index: 12, kind: input, shape index: {}]   ;;  %s14099_s13 = inlined_call_operand.vmem [shape: bf16[3,1,3], index: 13, kind: input, shape index: {}]   ;;  %s14100_s14 = inlined_call_operand.vmem [shape: bf16[3,24,32], index: 14, kind: input, shape index: {}]   ;;  %s14101_s15 = inlined_call_operand.vmem [shape: f32[1,32], index: 15, kind: input, shape index: {}]   ;;  %s14102_s16 = inlined_call_operand.hbm [shape: f32[2,1,32], index: 16, kind: output, shape index: {}]  }
   0x1   :  { %14109 = sst [smem:[#allocation11_spill]] %s14086_s0 }
   0x2   :  { %21 = vsyncpa [#allocation3], 0 }
   0x3   :  { %23 = vsyncpa [#allocation3 + $0x1], 0  ;;  %s11266_s21 = smov 0   ;;  %s11268_s22 = smov 0  }
   0x4   :  { %s11270_s23 = smov 0   ;;  %s11272_s24 = smov 0  }
   0x5 LB: > { %14110 = sst [smem:[#allocation5_spill]] %s11162_s21  ;;  %s11287_s25 = sadd.s32 4294967295, %s11174_s24   ;;  %s11174_s24 = sphi %s11272_s24, %s14122_s24   ;;  %s11170_s23 = sphi %s11270_s23, %s14124_s23   ;;  %s11166_s22 = sphi %s11268_s22, %s14126_s22   ;;  %s11162_s21 = sphi %s11266_s21, %s14125_s21  }
   0x6   : > { %14111 = sst [smem:[#allocation6_spill]] %s11170_s23  ;;  %s8263_s26 = sadd.s32 4294967294, %s11174_s24  }
   0x7   : > { %14112 = sst [smem:[#allocation7_spill]] %s11174_s24  ;;  %s11291_s27 = sadd.s32 1, %s11174_s24  }
   0x8   : > { %14113 = sst [smem:[#allocation8_spill]] %s11291_s27  ;;  %s377_s28 = sadd.s32 1, %s11170_s23 }
   0x9   : > { %s374_s29 = ssub.s32 %s11174_s24, %s11291_s27  ;;  %p387_p0 = scmp.ne.s32.totalorder %s11170_s23, %s11166_s22 }
   0xa   : > { %p375_p1 = scmp.eq.s32.totalorder %s374_s29, 0  ;;  %p388_p2 = scmp.eq.s32.totalorder %s11287_s25, 1 }
   0xb   : > { %p393_p3 = scmp.ne.s32.totalorder %s11166_s22, %s11162_s21  ;;  %p394_p4 = scmp.eq.s32.totalorder %s8263_s26, 1 }
   0xc   : > { %s11302_s30 = scalar_select %p375_p1, %s11170_s23, %s377_s28  }
   0xd   : > { %p11304_p5 = por %p388_p2, %p387_p0  ;;  %p11308_p6 = por %p394_p4, %p393_p3 }
   0xe   : > { %14114 = sst [smem:[#allocation9_spill]] %s11302_s30  ;;  %p8266_p7 = scmp.ge.s32.totalorder %s11174_s24, 1 }
   0xf   : > { %s14116_s17 = scalar_select %p11308_p6, 1, 0 }
  0x10   : > { %p465_p8 = scmp.lt.s32.totalorder %s11174_s24, 3 }
  0x11   : > { %14117 = sst [smem:[#allocation10_spill]] %s14116_s17 }
  0x12   : > { %p466_p9 = pnand %p8266_p7, %p465_p8 }
  0x13   : > { %p514_p10 = scmp.lt.s32.totalorder (!%p466_p9), %s11287_s25, 1  ;;  %v11176_v0 = vmov (!%p466_p9), 0   ;;  %s14118_s28 = sld [smem:[#allocation11_spill]] (!%p466_p9)  ;;  %vm614_vm0 = vcmask (!%p466_p9), 1041408   ;;  %v10281_v14 = vld [vmem:[%s14088_s2 + $0x184] ss:$12 sps:$4 sm:$0xff] (!%p466_p9)  }
  0x14   : > { %469 = sbr.rel (%p466_p9) target bundleno = 4640 (0x1220), region = 84  ;;  %812 = vmatprep.mubr.bf16.mxu1 (!%p466_p9), %v11176_v0  ;;  %653 = vmatprep.mubr.bf16.mxu0 (!%p466_p9), %v11176_v0  ;;  %v10306_v16 = vld [vmem:[%s14088_s2 + $0x248] ss:$12 sps:$4 sm:$0xff] (!%p466_p9)   ;;  %v10276_v18 = vld [vmem:[%s14087_s1] sm:$0xff] (!%p466_p9)   ;;  %vm604_vm1 = vcmask (!%p466_p9), 687104   ;;  %vm1175_vm2 = vcmask (!%p466_p9), 1045504  }
  0x15   : > { %v10273_v17 = vld [vmem:[%s14087_s1 + $0x14] sm:$0xff] (!%p466_p9)   ;;  %v10279_v19 = vld [vmem:[%s14088_s2 + $0x180] ss:$12 sps:$4 sm:$0xff] (!%p466_p9)   ;;  %v10284_v20 = vld [vmem:[%s14088_s2 + $0x19c] ss:$12 sps:$4 sm:$0xff] (!%p466_p9)   ;;  %vm1165_vm3 = vcmask (!%p466_p9), 1014784  }
  0x16   : > { %v10307_v21 = vld [vmem:[%s14088_s2 + $0x188] ss:$12 sps:$4 sm:$0xff] (!%p466_p9)   ;;  %v10311_v22 = vld [vmem:[%s14088_s2 + $0x260] ss:$12 sps:$4 sm:$0xff] (!%p466_p9)   ;;  %v10282_v23 = vld [vmem:[%s14088_s2 + $0x198] ss:$12 sps:$4 sm:$0xff] (!%p466_p9)  }
  0x17   : > { %v10287_v24 = vld [vmem:[%s14088_s2 + $0x1b4] ss:$12 sps:$4 sm:$0xff] (!%p466_p9)   ;;  %v10277_v26 = vld [vmem:[%s14087_s1 + $0x8] sm:$0xff] (!%p466_p9)   ;;  %v10316_v28 = vld [vmem:[%s14088_s2 + $0x278] ss:$12 sps:$4 sm:$0xff] (!%p466_p9)   ;;  %vm4572_vm4 = vcmask (!%p466_p9), 318464  }
  0x18   : > { %v10274_v25 = vld [vmem:[%s14087_s1 + $0x1c] sm:$0xff] (!%p466_p9)   ;;  %v10290_v30 = vld [vmem:[%s14088_s2 + $0x1cc] ss:$12 sps:$4 sm:$0xff] (!%p466_p9)   ;;  %v10288_v33 = vld [vmem:[%s14088_s2 + $0x1c8] ss:$12 sps:$4 sm:$0xff] (!%p466_p9)   ;;  %vm4579_vm5 = vcmask (!%p466_p9), 1042432  }
  0x19   : > { %v10312_v27 = vld [vmem:[%s14088_s2 + $0x1a0] ss:$12 sps:$4 sm:$0xff] (!%p466_p9)   ;;  %v10285_v29 = vld [vmem:[%s14088_s2 + $0x1b0] ss:$12 sps:$4 sm:$0xff] (!%p466_p9)   ;;  %v10317_v31 = vld [vmem:[%s14088_s2 + $0x1b8] ss:$12 sps:$4 sm:$0xff] (!%p466_p9)  }
  0x1a   : > { %v10321_v32 = vld [vmem:[%s14088_s2 + $0x290] ss:$12 sps:$4 sm:$0xff] (!%p466_p9)   ;;  %v10275_v34 = vld [vmem:[%s14087_s1 + $0x24] ss:$0 sps:$4 sm:$0xff] (!%p466_p9)   ;;  %v10326_v38 = vld [vmem:[%s14088_s2 + $0x2a8] ss:$12 sps:$4 sm:$0xff] (!%p466_p9)  }
  0x1b   : > { %s515_s18 = scalar_select %p514_p10, %s11287_s25, 1  ;;  %v10278_v35 = vld [vmem:[%s14087_s1 + $0x10] ss:$0 sps:$4 sm:$0xff]   ;;  %v10291_v39 = vld [vmem:[%s14088_s2 + $0x1e0] ss:$12 sps:$4 sm:$0xff]   ;;  %vm4580_vm6 = vcmask 1043456  }
  0x1c   : > { %v10322_v36 = vld [vmem:[%s14088_s2 + $0x1d0] ss:$12 sps:$4 sm:$0xff]   ;;  %v10327_v40 = vld [vmem:[%s14088_s2 + $0x1e8] ss:$12 sps:$4 sm:$0xff]   ;;  %v10331_v42 = vld [vmem:[%s14088_s2 + $0x2c0] ss:$12 sps:$4 sm:$0xff]  }
  0x1d   : > { %s10212_s19 = smul.u32 88, %s515_s18  ;;  %v10293_v37 = vld [vmem:[%s14088_s2 + $0x1e4] ss:$12 sps:$4 sm:$0xff]   ;;  %v10296_v41 = vld [vmem:[%s14088_s2 + $0x1fc] ss:$12 sps:$4 sm:$0xff]   ;;  %vm5094_vm7 = vcmask 457728  }
  0x1e   : > { %v10294_v43 = vld [vmem:[%s14088_s2 + $0x1f8] ss:$12 sps:$4 sm:$0xff]   ;;  %v10332_v44 = vld [vmem:[%s14088_s2 + $0x200] ss:$12 sps:$4 sm:$0xff]   ;;  %v10297_v47 = vld [vmem:[%s14088_s2 + $0x210] ss:$12 sps:$4 sm:$0xff]  }
  0x1f   : > { %s11321_s29 = scalar_lea.vmem %s14118_s28, %s10212_s19  ;;  %v10299_v45 = vld [vmem:[%s14088_s2 + $0x214] ss:$12 sps:$4 sm:$0xff]   ;;  %v10336_v46 = vld [vmem:[%s14088_s2 + $0x2d8] ss:$12 sps:$4 sm:$0xff]   ;;  %v10310_v53 = vld [vmem:[%s14088_s2 + $0x25c] ss:$12 sps:$4 sm:$0xff]  }
  0x20   : > { %v10256_v1 = vld [vmem:[%s11321_s29 + $0x4] ss:$8 sps:$4 sm:$0xff]   ;;  %v10258_v2 = vld [vmem:[%s11321_s29] ss:$8 sps:$4 sm:$0xff]   ;;  %v10259_v3 = vld [vmem:[%s11321_s29 + $0x14] ss:$8 sps:$4 sm:$0xff]  }
  0x21   : > { %780 = vmatprep.subr.bf16.mxu1 %v10256_v1  ;;  %621 = vmatprep.subr.bf16.mxu0 %v10256_v1  ;;  %v10261_v4 = vld [vmem:[%s11321_s29 + $0x10] ss:$8 sps:$4 sm:$0xff]   ;;  %v10262_v5 = vld [vmem:[%s11321_s29 + $0x24] ss:$8 sps:$4 sm:$0xff]   ;;  %v10264_v6 = vld [vmem:[%s11321_s29 + $0x20] ss:$8 sps:$4 sm:$0xff]  }
  0x22   : > { %781 = vmatpush1.bf16.msra.mxu1 %v10258_v2  ;;  %622 = vmatpush1.bf16.msra.mxu0 %v10258_v2  ;;  %v10265_v7 = vld [vmem:[%s11321_s29 + $0x34] ss:$8 sps:$4 sm:$0xff]   ;;  %v10267_v8 = vld [vmem:[%s11321_s29 + $0x30] ss:$8 sps:$4 sm:$0xff]   ;;  %v10268_v9 = vld [vmem:[%s11321_s29 + $0x44] ss:$8 sps:$4 sm:$0xff]  }
  0x23   : > { %782 = vmatprep.subr.bf16.mxu1 %v10259_v3  ;;  %623 = vmatprep.subr.bf16.mxu0 %v10259_v3  ;;  %v530_v10 = vld [vmem:[%s11321_s29 + $0x50] sm:$0x33]  ;;  %v10270_v11 = vld [vmem:[%s11321_s29 + $0x40] ss:$8 sps:$4 sm:$0xff]   ;;  %v10337_v48 = vld [vmem:[%s14088_s2 + $0x218] ss:$12 sps:$4 sm:$0xff]  }
  0x24   : > { %v11334_v12 = vcombine.high %v530_v10, %v530_v10  ;;  %v8281_v13 = vcombine.low %v530_v10, %v530_v10  ;;  %v10302_v49 = vld [vmem:[%s14088_s2 + $0x22c] ss:$12 sps:$4 sm:$0xff]   ;;  %v10300_v50 = vld [vmem:[%s14088_s2 + $0x228] ss:$12 sps:$4 sm:$0xff]   ;;  %v10305_v51 = vld [vmem:[%s14088_s2 + $0x244] ss:$12 sps:$4 sm:$0xff]  }
  0x25   : > { %v10303_v52 = vld [vmem:[%s14088_s2 + $0x240] ss:$12 sps:$4 sm:$0xff]   ;;  %v10308_v54 = vld [vmem:[%s14088_s2 + $0x258] ss:$12 sps:$4 sm:$0xff]   ;;  %v10313_v56 = vld [vmem:[%s14088_s2 + $0x270] ss:$12 sps:$4 sm:$0xff]  }
  0x26   : > { %783 = vmatpush1.bf16.msra.mxu1 %v10261_v4  ;;  %624 = vmatpush1.bf16.msra.mxu0 %v10261_v4  ;;  %v11342_v15 = vsel %vm614_vm0, %v8281_v13, 0  ;;  %v10315_v55 = vld [vmem:[%s14088_s2 + $0x274] ss:$12 sps:$4 sm:$0xff]   ;;  %v10320_v57 = vld [vmem:[%s14088_s2 + $0x28c] ss:$12 sps:$4 sm:$0xff]   ;;  %vm6985_vm8 = vcmask 1040384  }
  0x27   : > { %784 = vmatprep.subr.bf16.mxu1 %v10262_v5  ;;  %625 = vmatprep.subr.bf16.mxu0 %v10262_v5  ;;  %v10318_v58 = vld [vmem:[%s14088_s2 + $0x288] ss:$12 sps:$4 sm:$0xff]   ;;  %v10325_v59 = vld [vmem:[%s14088_s2 + $0x2a4] ss:$12 sps:$4 sm:$0xff]   ;;  %v10323_v60 = vld [vmem:[%s14088_s2 + $0x2a0] ss:$12 sps:$4 sm:$0xff]  }
  0x28   : > { %v10330_v61 = vld [vmem:[%s14088_s2 + $0x2bc] ss:$12 sps:$4 sm:$0xff]   ;;  %v10328_v62 = vld [vmem:[%s14088_s2 + $0x2b8] ss:$12 sps:$4 sm:$0xff]   ;;  %v10335_v63 = vld [vmem:[%s14088_s2 + $0x2d4] ss:$12 sps:$4 sm:$0xff]  }
  0x29   : > { %v10333_v1 = vld [vmem:[%s14088_s2 + $0x2d0] ss:$12 sps:$4 sm:$0xff]   ;;  %v10338_v2 = vld [vmem:[%s14088_s2 + $0x2ec] ss:$12 sps:$4 sm:$0x3f]   ;;  %vm6981_vm9 = vcmask 146432  }
  0x2a   : > { %785 = vmatpush1.bf16.msra.mxu1 %v10264_v6  ;;  %626 = vmatpush1.bf16.msra.mxu0 %v10264_v6  ;;  %v10340_v3 = vld [vmem:[%s14088_s2 + $0x2f0] ss:$12 sps:$4 sm:$0x3f]   ;;  %v10341_v4 = vld [vmem:[%s14088_s2 + $0x2e8] ss:$12 sps:$4 sm:$0x3f]  }
  0x2b   : > { %786 = vmatprep.subr.bf16.mxu1 %v10265_v7  ;;  %627 = vmatprep.subr.bf16.mxu0 %v10265_v7  ;;  %v10342_v5 = vld [vmem:[%s14088_s2 + $0x230] ss:$12 sps:$4 sm:$0xff]   ;;  %v1177_v6 = vsel %vm1175_vm2, %v10341_v4, 0  ;;  %v10375_v4 = vld [vmem:[%s14088_s2 + $0x94] ss:$12 sps:$4 sm:$0xff]   ;;  %vm7174_vm10 = vcmask 130048  }
  0x2c   : > { %v10345_v7 = vld [vmem:[%s14088_s2 + $0x4] ss:$12 sps:$4 sm:$0xff]   ;;  %vm11179_vm11 = vmmov 0   ;;  %vm7491_vm12 = vcmask 64512   ;;  %vm7626_vm13 = vcmask 523264   ;;  %vm7871_vm14 = vcmask 23552  }
  0x2d   : > { %vm7983_vm15 = vcmask 195584   ;;  %s512_s20 = sand.u32 1, %s11166_s22   ;;  %s9673_s24 = sshll.u32 %s11287_s25, 4 }
  0x2e   : > { %787 = vmatpush1.bf16.msra.mxu1 %v10267_v8  ;;  %628 = vmatpush1.bf16.msra.mxu0 %v10267_v8  ;;  %v10346_v8 = vld [vmem:[%s14088_s2 + $0xc8] ss:$12 sps:$4 sm:$0xff]   ;;  %s513_s28 = scalar_lea.vmem [#allocation2], %s512_s20  ;;  %s14044_s21 = scalar_lea.hbm %s14102_s16, %s9673_s24 }
  0x2f   : > { %788 = vmatprep.subr.bf16.mxu1 %v10268_v9  ;;  %629 = vmatprep.subr.bf16.mxu0 %v10268_v9  ;;  %s8196_s25 = scalar_lea.sflag [#allocation3], %s512_s20  ;;  %s11180_s27 = smov [#allocation2]  }
  0x30   : > { %s11116_s19 = sshll.u32 %s11180_s27, 4  ;;  %s11117_s19 = int_to_ptr.vmem [resolvable:$false] %s11116_s19 }
  0x31   : > { %s11118_s26 = scalar_lea.vmem %s11117_s19, 32 }
  0x32   : > { %789 = vmatpush1.bf16.msra.mxu1 %v10270_v11  ;;  %630 = vmatpush1.bf16.msra.mxu0 %v10270_v11 }
  0x33   : > { %8295 = vmatprep.subr.msk.bf16.mxu1 %vm614_vm0, %v11334_v12  ;;  %8283 = vmatprep.subr.msk.bf16.mxu0 %vm614_vm0, %v11334_v12 }
  0x36   : > { %791 = vmatpush1.bf16.msra.mxu1 %v11342_v15  ;;  %632 = vmatpush1.bf16.msra.mxu0 %v11342_v15 }
  0x37   : > { %1185 = vmatprep.subr.bf16.mxu0 %v10281_v14  ;;  %9676 = vmatprep.subr.bf16.mxu1 %v10306_v16  ;;  %v10343_v16 = vld [vmem:[%s14088_s2] ss:$12 sps:$4 sm:$0xff]  }
  0x39   : > { %8296 = vmatmul.mubr.msk.bf16.vlgmr.msra.gmra.mrb[0].mxu1 %vm604_vm1, %v10273_v17  ;;  %8284 = vmatmul.mubr.msk.bf16.vlgmr.msra.gmra.mrb[0].mxu0 %vm604_vm1, %v10276_v18  ;;  %v10347_v17 = vld [vmem:[%s14088_s2 + $0x8] ss:$12 sps:$4 sm:$0xff]  }
  0x3a   : > { %822 = vmatprep.mubr.bf16.mxu1 %v11176_v0  ;;  %663 = vmatprep.mubr.bf16.mxu0 %v11176_v0 }
  0x3b   : > { %1186 = vmatpush1.bf16.msra.mxu0 %v10279_v19  ;;  %9677 = vmatpush3.bf16.msra.mxu1 %v10307_v21  ;;  %v10350_v21 = vld [vmem:[%s14088_s2 + $0x1c] ss:$12 sps:$4 sm:$0xff]  }
  0x3c   : > { %1187 = vmatprep.subr.bf16.mxu0 %v10284_v20  ;;  %9678 = vmatprep.subr.bf16.mxu1 %v10311_v22  ;;  %v10351_v22 = vld [vmem:[%s14088_s2 + $0xe0] ss:$12 sps:$4 sm:$0xff]  }
  0x3f   : > { %1188 = vmatpush1.bf16.msra.mxu0 %v10282_v23  ;;  %9679 = vmatpush3.bf16.msra.mxu1 %v10312_v27  ;;  %v10348_v27 = vld [vmem:[%s14088_s2 + $0x18] ss:$12 sps:$4 sm:$0xff]  }
  0x40   : > { %1189 = vmatprep.subr.bf16.mxu0 %v10287_v24  ;;  %9680 = vmatprep.subr.bf16.mxu1 %v10316_v28  ;;  %v10352_v28 = vld [vmem:[%s14088_s2 + $0x20] ss:$12 sps:$4 sm:$0xff]  }
  0x41   : > { %8297 = vmatmul.mubr.msk.bf16.gmra.mrb[4].mxu1 %vm604_vm1, %v10274_v25  ;;  %8285 = vmatmul.mubr.msk.bf16.gmra.mrb[4].mxu0 %vm604_vm1, %v10277_v26 }
  0x42   : > { %832 = vmatprep.mubr.bf16.mxu1 %v11176_v0  ;;  %673 = vmatprep.mubr.bf16.mxu0 %v11176_v0 }
  0x43   : > { %1190 = vmatpush1.bf16.msra.mxu0 %v10285_v29  ;;  %9681 = vmatpush3.bf16.msra.mxu1 %v10317_v31  ;;  %v10355_v29 = vld [vmem:[%s14088_s2 + $0x34] ss:$12 sps:$4 sm:$0xff]  }
  0x44   : > { %1191 = vmatprep.subr.bf16.mxu0 %v10290_v30  ;;  %9682 = vmatprep.subr.bf16.mxu1 %v10321_v32  ;;  %v10356_v30 = vld [vmem:[%s14088_s2 + $0xf8] ss:$12 sps:$4 sm:$0xff]  }
  0x47   : > { %1192 = vmatpush1.bf16.msra.mxu0 %v10288_v33  ;;  %9683 = vmatpush3.bf16.msra.mxu1 %v10322_v36  ;;  %v10353_v36 = vld [vmem:[%s14088_s2 + $0x30] ss:$12 sps:$4 sm:$0xff]  }
  0x48   : > { %1193 = vmatprep.subr.bf16.mxu0 %v10293_v37  ;;  %9684 = vmatprep.subr.bf16.mxu1 %v10326_v38  ;;  %v10357_v37 = vld [vmem:[%s14088_s2 + $0x38] ss:$12 sps:$4 sm:$0xff]  }
  0x49   : > { %8298 = vmatmul.mubr.msk.bf16.gmra.mrb[8].mxu1 %vm604_vm1, %v10275_v34  ;;  %8286 = vmatmul.mubr.msk.bf16.gmra.mrb[8].mxu0 %vm604_vm1, %v10278_v35 }
  0x4b   : > { %1194 = vmatpush1.bf16.msra.mxu0 %v10291_v39  ;;  %9685 = vmatpush3.bf16.msra.mxu1 %v10327_v40 }
  0x4c   : > { %1195 = vmatprep.subr.bf16.mxu0 %v10296_v41  ;;  %9686 = vmatprep.subr.bf16.mxu1 %v10331_v42  ;;  %v10360_v41 = vld [vmem:[%s14088_s2 + $0x4c] ss:$12 sps:$4 sm:$0xff]   ;;  %v10361_v42 = vld [vmem:[%s14088_s2 + $0x110] ss:$12 sps:$4 sm:$0xff]  }
  0x4f   : > { %1196 = vmatpush1.bf16.msra.mxu0 %v10294_v43  ;;  %9687 = vmatpush3.bf16.msra.mxu1 %v10332_v44 }
  0x50   : > { %1197 = vmatprep.subr.bf16.mxu0 %v10299_v45  ;;  %9688 = vmatprep.subr.bf16.mxu1 %v10336_v46 }
  0x53   : > { %1198 = vmatpush1.bf16.msra.mxu0 %v10297_v47  ;;  %9689 = vmatpush3.bf16.msra.mxu1 %v10337_v48  ;;  %v10358_v47 = vld [vmem:[%s14088_s2 + $0x48] ss:$12 sps:$4 sm:$0xff]   ;;  %v10362_v48 = vld [vmem:[%s14088_s2 + $0x50] ss:$12 sps:$4 sm:$0xff]  }
  0x54   : > { %1199 = vmatprep.subr.bf16.mxu0 %v10302_v49  ;;  %10205 = vmatprep.subr.msk.bf16.mxu1 %vm1175_vm2, %v10340_v3  ;;  %v10365_v49 = vld [vmem:[%s14088_s2 + $0x64] ss:$12 sps:$4 sm:$0xff]   ;;  %v10372_v3 = vld [vmem:[%s14088_s2 + $0x80] ss:$12 sps:$4 sm:$0xff]  }
  0x57   : > { %1200 = vmatpush1.bf16.msra.mxu0 %v10300_v50  ;;  %9691 = vmatpush3.bf16.msra.mxu1 %v10342_v5  ;;  %v10366_v50 = vld [vmem:[%s14088_s2 + $0x128] ss:$12 sps:$4 sm:$0xff]   ;;  %v10376_v5 = vld [vmem:[%s14088_s2 + $0x158] ss:$12 sps:$4 sm:$0xff]  }
  0x58   : > { %1201 = vmatprep.subr.bf16.mxu0 %v10305_v51  ;;  %9710 = vmatprep.subr.bf16.mxu1 %v10346_v8  ;;  %v10380_v8 = vld [vmem:[%s14088_s2 + $0xac] ss:$12 sps:$4 sm:$0xff]  }
  0x5b   : > { %1202 = vmatpush1.bf16.msra.mxu0 %v10303_v52 }
  0x5c   : > { %1203 = vmatprep.subr.bf16.mxu0 %v10310_v53 }
  0x5f   : > { %1204 = vmatpush1.bf16.msra.mxu0 %v10308_v54 }
  0x60   : > { %1205 = vmatprep.subr.bf16.mxu0 %v10315_v55 }
  0x63   : > { %1206 = vmatpush1.bf16.msra.mxu0 %v10313_v56  ;;  %v10363_v56 = vld [vmem:[%s14088_s2 + $0x60] ss:$12 sps:$4 sm:$0xff]  }
  0x64   : > { %1207 = vmatprep.subr.bf16.mxu0 %v10320_v57  ;;  %v10367_v57 = vld [vmem:[%s14088_s2 + $0x68] ss:$12 sps:$4 sm:$0xff]  }
  0x67   : > { %1208 = vmatpush1.bf16.msra.mxu0 %v10318_v58 }
  0x68   : > { %1209 = vmatprep.subr.bf16.mxu0 %v10325_v59 }
  0x6b   : > { %1210 = vmatpush1.bf16.msra.mxu0 %v10323_v60 }
  0x6c   : > { %1211 = vmatprep.subr.bf16.mxu0 %v10330_v61 }
  0x6f   : > { %1212 = vmatpush1.bf16.msra.mxu0 %v10328_v62  ;;  %v10370_v62 = vld [vmem:[%s14088_s2 + $0x7c] ss:$12 sps:$4 sm:$0xff]  }
  0x70   : > { %1213 = vmatprep.subr.bf16.mxu0 %v10335_v63  ;;  %v10371_v63 = vld [vmem:[%s14088_s2 + $0x140] ss:$12 sps:$4 sm:$0xff]  }
  0x73   : > { %1214 = vmatpush1.bf16.msra.mxu0 %v10333_v1 }
  0x74   : > { %8411 = vmatprep.subr.msk.bf16.mxu0 %vm1175_vm2, %v10338_v2  ;;  %v10368_v2 = vld [vmem:[%s14088_s2 + $0x78] ss:$12 sps:$4 sm:$0xff]  }
  0x77   : > { %1216 = vmatpush1.bf16.msra.mxu0 %v1177_v6  ;;  %v10373_v6 = vld [vmem:[%s14088_s2 + $0x90] ss:$12 sps:$4 sm:$0xff]  }
  0x78   : > { %1573 = vmatprep.subr.bf16.mxu0 %v10345_v7  ;;  %v10377_v7 = vld [vmem:[%s14088_s2 + $0x98] ss:$12 sps:$4 sm:$0xff]  }
 0x10c   : > { %v814_v9 = vpop.f32.mrb[0].mxu1  ;;  %v655_v10 = vpop.f32.mrb[0].mxu0 }
 0x10d   : > { %v816_v11 = vpop.f32.mrb[1].mxu1  ;;  %v657_v13 = vpop.f32.mrb[1].mxu0 }
 0x10e   : > { %v818_v14 = vpop.f32.mrb[2].mxu1  ;;  %v659_v18 = vpop.f32.mrb[2].mxu0 }
 0x10f   : > { %v841_v19 = vpack.c.bf16 %v818_v14, %v814_v9  ;;  %v820_v20 = vpop.f32.mrb[3].mxu1  ;;  %v11538_v23 = vpack.c.bf16 %v659_v18, %v655_v10  ;;  %v661_v24 = vpop.f32.mrb[3].mxu0  ;;  %v10381_v9 = vld [vmem:[%s14088_s2 + $0x170] ss:$12 sps:$4 sm:$0x3f]  }
 0x110   : > { %v842_v25 = vpack.c.bf16 %v820_v20, %v816_v11  ;;  %v11540_v26 = vpack.c.bf16 %v661_v24, %v657_v13  ;;  %v10378_v10 = vld [vmem:[%s14088_s2 + $0xa8] ss:$12 sps:$4 sm:$0xff]   ;;  %v10382_v11 = vld [vmem:[%s14088_s2 + $0xb0] ss:$12 sps:$4 sm:$0xff]   ;;  %v10383_v14 = vld [vmem:[%s14088_s2 + $0xc0] ss:$12 sps:$4 sm:$0xff]  }
 0x111   : > { %v10385_v13 = vld [vmem:[%s14088_s2 + $0xc4] ss:$12 sps:$4 sm:$0xff]   ;;  %v11660_v20 = vld [vmem:[%s11321_s29] ss:$8 sps:$4 sm:$0xff]   ;;  %v10394_v24 = vld [vmem:[%s14088_s2 + $0x10c] ss:$12 sps:$4 sm:$0xff]  }
 0x112   : > { %8412 = vmatprep.mubr.msk.bf16.mxu0 %vm1165_vm3, %v842_v25  ;;  %8415 = vmatprep.mubr.msk.bf16.mxu1 %vm1165_vm3, %v842_v25  ;;  %v10386_v18 = vld [vmem:[%s14088_s2 + $0xd8] ss:$12 sps:$4 sm:$0xff]  }
 0x113   : > { %1218 = vmatmul.mubr.bf16.vlgmr.msra.gmra.mrb[12].mxu0 %v841_v19  ;;  %1279 = vmatmul.mubr.bf16.vlgmr.msra.gmra.mrb[12].mxu1 %v841_v19  ;;  %v10391_v19 = vld [vmem:[%s14088_s2 + $0xf4] ss:$12 sps:$4 sm:$0xff]   ;;  %v11676_v25 = vld [vmem:[%s11321_s29 + $0x10] ss:$8 sps:$4 sm:$0xff]  }
 0x114   : > { %1574 = vmatpush1.bf16.msra.mxu0 %v10343_v16  ;;  %9711 = vmatpush3.bf16.msra.mxu1 %v10347_v17  ;;  %v824_v31 = vpop.f32.mrb[4].mxu1  ;;  %v665_v32 = vpop.f32.mrb[4].mxu0  ;;  %v10388_v16 = vld [vmem:[%s14088_s2 + $0xdc] ss:$12 sps:$4 sm:$0xff]   ;;  %v11649_v17 = vld [vmem:[%s11321_s29 + $0x4] ss:$8 sps:$4 sm:$0xff]  }
 0x115   : > { %v826_v33 = vpop.f32.mrb[5].mxu1  ;;  %1575 = vmatprep.subr.bf16.mxu0 %v10350_v21  ;;  %9712 = vmatprep.subr.bf16.mxu1 %v10351_v22  ;;  %v667_v34 = vpop.f32.mrb[5].mxu0  ;;  %v11666_v21 = vld [vmem:[%s11321_s29 + $0x14] ss:$8 sps:$4 sm:$0xff]  }
 0x116   : > { %v828_v35 = vpop.f32.mrb[6].mxu1  ;;  %v669_v38 = vpop.f32.mrb[6].mxu0  ;;  %v10389_v22 = vld [vmem:[%s14088_s2 + $0xf0] ss:$12 sps:$4 sm:$0xff]  }
 0x117   : > { %v843_v39 = vpack.c.bf16 %v828_v35, %v824_v31  ;;  %v830_v40 = vpop.f32.mrb[7].mxu1  ;;  %v11568_v43 = vpack.c.bf16 %v669_v38, %v665_v32  ;;  %v671_v44 = vpop.f32.mrb[7].mxu0  ;;  %v11697_v31 = vld [vmem:[%s11321_s29 + $0x34] ss:$8 sps:$4 sm:$0xff]   ;;  %v10395_v32 = vld [vmem:[%s14088_s2 + $0x120] ss:$12 sps:$4 sm:$0xff]  }
 0x118   : > { %v844_v45 = vpack.c.bf16 %v830_v40, %v826_v33  ;;  %1576 = vmatpush1.bf16.msra.mxu0 %v10348_v27  ;;  %9713 = vmatpush3.bf16.msra.mxu1 %v10352_v28  ;;  %v11570_v46 = vpack.c.bf16 %v671_v44, %v667_v34  ;;  %v10392_v28 = vld [vmem:[%s14088_s2 + $0x108] ss:$12 sps:$4 sm:$0xff]   ;;  %v11708_v34 = vld [vmem:[%s11321_s29 + $0x30] ss:$8 sps:$4 sm:$0xff]  }
 0x119   : > { %1577 = vmatprep.subr.bf16.mxu0 %v10355_v29  ;;  %9714 = vmatprep.subr.bf16.mxu1 %v10356_v30  ;;  %v10397_v29 = vld [vmem:[%s14088_s2 + $0x124] ss:$12 sps:$4 sm:$0xff]   ;;  %v11693_v30 = vld [vmem:[%s11321_s29 + $0x20] ss:$8 sps:$4 sm:$0xff]  }
 0x11a   : > { %8416 = vmatprep.mubr.msk.bf16.mxu1 %vm1165_vm3, %v844_v45  ;;  %8413 = vmatprep.mubr.msk.bf16.mxu0 %vm1165_vm3, %v844_v45  ;;  %v10400_v33 = vld [vmem:[%s14088_s2 + $0x13c] ss:$12 sps:$4 sm:$0xff]   ;;  %v10403_v38 = vld [vmem:[%s14088_s2 + $0x154] ss:$12 sps:$4 sm:$0xff]  }
 0x11b   : > { %1287 = vmatmul.mubr.bf16.gmra.mrb[16].mxu1 %v843_v39  ;;  %1228 = vmatmul.mubr.bf16.gmra.mrb[16].mxu0 %v843_v39  ;;  %v11724_v39 = vld [vmem:[%s11321_s29 + $0x40] ss:$8 sps:$4 sm:$0xff]  }
 0x11c   : > { %1578 = vmatpush1.bf16.msra.mxu0 %v10353_v36  ;;  %9715 = vmatpush3.bf16.msra.mxu1 %v10357_v37  ;;  %v834_v51 = vpop.f32.mrb[8].mxu1  ;;  %v11586_v52 = vpop.f32.mrb[8].mxu0  ;;  %v11714_v36 = vld [vmem:[%s11321_s29 + $0x44] ss:$8 sps:$4 sm:$0xff]  }
 0x11d   : > { %1579 = vmatprep.subr.bf16.mxu0 %v10360_v41  ;;  %9716 = vmatprep.subr.bf16.mxu1 %v10361_v42  ;;  %v836_v53 = vpop.f32.mrb[9].mxu1  ;;  %v11588_v54 = vpop.f32.mrb[9].mxu0  ;;  %v845_v60 = vpack.c.bf16 %v834_v51, %v834_v51  ;;  %v686_v35 = vpack.c.bf16 %v11586_v52, %v11586_v52  ;;  %v10398_v37 = vld [vmem:[%s14088_s2 + $0x138] ss:$12 sps:$4 sm:$0xff]   ;;  %v10404_v40 = vld [vmem:[%s14087_s1 + $0x28] sm:$0xff]  }
 0x11e   : > { %v846_v55 = vpack.c.bf16 %v836_v53, %v836_v53  ;;  %v838_v58 = vpop.f32.mrb[10].mxu1  ;;  %v679_v59 = vpop.f32.mrb[10].mxu0  ;;  %v687_v27 = vpack.c.bf16 %v11588_v54, %v11588_v54  ;;  %v10401_v41 = vld [vmem:[%s14088_s2 + $0x150] ss:$12 sps:$4 sm:$0xff]   ;;  %v10421_v52 = vld [vmem:[%s14088_s2 + $0x34c] ss:$12 sps:$4 sm:$0xff]  }
 0x11f   : > { %v839_v61 = vpop.f32.mrb[11].mxu1  ;;  %v680_v1 = vpop.f32.mrb[11].mxu0  ;;  %v10405_v42 = vld [vmem:[%s14088_s2 + $0x16c] ss:$12 sps:$4 sm:$0x3f]  }
 0x120   : > { %1580 = vmatpush1.bf16.msra.mxu0 %v10358_v47  ;;  %9717 = vmatpush3.bf16.msra.mxu1 %v10362_v48  ;;  %v10407_v44 = vld [vmem:[%s14088_s2 + $0x168] ss:$12 sps:$4 sm:$0x3f]   ;;  %v10412_v47 = vld [vmem:[%s14088_s2 + $0x304] ss:$12 sps:$4 sm:$0xff]  }
 0x121   : > { %1581 = vmatprep.subr.bf16.mxu0 %v10365_v49  ;;  %9718 = vmatprep.subr.bf16.mxu1 %v10366_v50  ;;  %v1565_v45 = vsel %vm1175_vm2, %v10407_v44, 0  ;;  %v10408_v48 = vld [vmem:[%s14087_s1 + $0x30] sm:$0xff]   ;;  %v10410_v49 = vld [vmem:[%s14088_s2 + $0x300] ss:$12 sps:$4 sm:$0xff]   ;;  %v10409_v50 = vld [vmem:[%s14087_s1 + $0x38] ss:$0 sps:$4 sm:$0xff]  }
 0x122   : > { %8414 = vmatprep.mubr.msk.bf16.mxu0 %vm1165_vm3, %v846_v55  ;;  %8417 = vmatprep.mubr.msk.bf16.mxu1 %vm1165_vm3, %v846_v55  ;;  %v10416_v51 = vld [vmem:[%s14088_s2 + $0x330] ss:$12 sps:$4 sm:$0xff]   ;;  %v10419_v53 = vld [vmem:[%s14088_s2 + $0x348] ss:$12 sps:$4 sm:$0xff]   ;;  %v10422_v54 = vld [vmem:[%s14088_s2 + $0x360] ss:$12 sps:$4 sm:$0xff]  }
 0x123   : > { %1238 = vmatmul.mubr.bf16.gmra.mrb[20].mxu0 %v845_v60  ;;  %1295 = vmatmul.mubr.bf16.gmra.mrb[20].mxu1 %v845_v60  ;;  %v10424_v55 = vld [vmem:[%s14088_s2 + $0x364] ss:$12 sps:$4 sm:$0xff]   ;;  %v10430_v58 = vld [vmem:[%s14088_s2 + $0x394] ss:$12 sps:$4 sm:$0xff]   ;;  %v10433_v60 = vld [vmem:[%s14088_s2 + $0x3ac] ss:$12 sps:$4 sm:$0xff]  }
 0x124   : > { %1582 = vmatpush1.bf16.msra.mxu0 %v10363_v56  ;;  %9719 = vmatpush3.bf16.msra.mxu1 %v10367_v57  ;;  %v10425_v56 = vld [vmem:[%s14088_s2 + $0x378] ss:$12 sps:$4 sm:$0xff]   ;;  %v10427_v57 = vld [vmem:[%s14088_s2 + $0x37c] ss:$12 sps:$4 sm:$0xff]   ;;  %v10434_v1 = vld [vmem:[%s14088_s2 + $0x3c0] ss:$12 sps:$4 sm:$0xff]  }
 0x125   : > { %1583 = vmatprep.subr.bf16.mxu0 %v10370_v62  ;;  %9720 = vmatprep.subr.bf16.mxu1 %v10371_v63  ;;  %v10428_v59 = vld [vmem:[%s14088_s2 + $0x390] ss:$12 sps:$4 sm:$0xff]   ;;  %v10437_v61 = vld [vmem:[%s14088_s2 + $0x3c8] ss:$12 sps:$4 sm:$0xff]  }
 0x126   : > { %8467 = vmatprep.mubr.msk.bf16.mxu0 %vm1165_vm3, %v11540_v26  ;;  %8470 = vmatprep.mubr.msk.bf16.mxu1 %vm1165_vm3, %v11540_v26  ;;  %v11680_v26 = vld [vmem:[%s11321_s29 + $0x24] ss:$8 sps:$4 sm:$0xff]   ;;  %v10431_v62 = vld [vmem:[%s14088_s2 + $0x3a8] ss:$12 sps:$4 sm:$0xff]   ;;  %v10473_v44 = vld [vmem:[%s14088_s2 + $0x3b0] ss:$12 sps:$4 sm:$0xff]  }
 0x127   : > { %v10436_v63 = vld [vmem:[%s14088_s2 + $0x3c4] ss:$12 sps:$4 sm:$0xff]  }
 0x128   : > { %1584 = vmatpush1.bf16.msra.mxu0 %v10368_v2  ;;  %9721 = vmatpush3.bf16.msra.mxu1 %v10372_v3  ;;  %v10438_v2 = vld [vmem:[%s14088_s2 + $0x308] ss:$12 sps:$4 sm:$0xff]  }
 0x129   : > { %1585 = vmatprep.subr.bf16.mxu0 %v10375_v4  ;;  %9722 = vmatprep.subr.bf16.mxu1 %v10376_v5  ;;  %v10441_v3 = vld [vmem:[%s14088_s2 + $0x3dc] ss:$12 sps:$4 sm:$0xff]   ;;  %v10442_v4 = vld [vmem:[%s14088_s2 + $0x3e0] ss:$12 sps:$4 sm:$0xff]   ;;  %v10439_v5 = vld [vmem:[%s14088_s2 + $0x3d8] ss:$12 sps:$4 sm:$0xff]  }
 0x12c   : > { %1586 = vmatpush1.bf16.msra.mxu0 %v10373_v6  ;;  %9723 = vmatpush3.bf16.msra.mxu1 %v10377_v7  ;;  %v10443_v6 = vld [vmem:[%s14088_s2 + $0x320] ss:$12 sps:$4 sm:$0xff]  }
 0x12d   : > { %1587 = vmatprep.subr.bf16.mxu0 %v10380_v8  ;;  %10206 = vmatprep.subr.msk.bf16.mxu1 %vm1175_vm2, %v10381_v9  ;;  %v10446_v7 = vld [vmem:[%s14088_s2 + $0x3f4] ss:$12 sps:$4 sm:$0xff]   ;;  %v10447_v8 = vld [vmem:[%s14088_s2 + $0x3f8] ss:$12 sps:$4 sm:$0xff]   ;;  %v10444_v9 = vld [vmem:[%s14088_s2 + $0x3f0] ss:$12 sps:$4 sm:$0xff]  }
 0x130   : > { %1588 = vmatpush1.bf16.msra.mxu0 %v10378_v10  ;;  %9725 = vmatpush3.bf16.msra.mxu1 %v10382_v11  ;;  %v10448_v10 = vld [vmem:[%s14088_s2 + $0x338] ss:$12 sps:$4 sm:$0xff]  }
 0x131   : > { %1589 = vmatprep.subr.bf16.mxu0 %v10385_v13  ;;  %1718 = vmatprep.subr.bf16.mxu1 %v11649_v17  ;;  %v10451_v11 = vld [vmem:[%s14088_s2 + $0x40c] ss:$12 sps:$4 sm:$0xff]   ;;  %v10452_v13 = vld [vmem:[%s14088_s2 + $0x410] ss:$12 sps:$4 sm:$0xff]  }
 0x133   : > { %1667 = vmatmul.mubr.bf16.vlgmr.msra.gmra.mrb[24].mxu1 %v11538_v23 }
 0x134   : > { %1590 = vmatpush1.bf16.msra.mxu0 %v10383_v14  ;;  %1719 = vmatpush1.bf16.msra.mxu1 %v11660_v20  ;;  %v10449_v14 = vld [vmem:[%s14088_s2 + $0x408] ss:$12 sps:$4 sm:$0xff]  }
 0x135   : > { %1591 = vmatprep.subr.bf16.mxu0 %v10388_v16  ;;  %8471 = vmatprep.mubr.msk.bf16.mxu1 %vm1165_vm3, %v11570_v46  ;;  %v10453_v16 = vld [vmem:[%s14088_s2 + $0x350] ss:$12 sps:$4 sm:$0xff]  }
 0x136   : > { %1720 = vmatprep.subr.bf16.mxu1 %v11666_v21 }
 0x138   : > { %1592 = vmatpush1.bf16.msra.mxu0 %v10386_v18  ;;  %1721 = vmatpush1.bf16.msra.mxu1 %v11676_v25  ;;  %v10456_v18 = vld [vmem:[%s14088_s2 + $0x424] ss:$12 sps:$4 sm:$0xff]  }
 0x139   : > { %1593 = vmatprep.subr.bf16.mxu0 %v10391_v19  ;;  %1722 = vmatprep.subr.bf16.mxu1 %v11680_v26  ;;  %v10457_v19 = vld [vmem:[%s14088_s2 + $0x428] ss:$12 sps:$4 sm:$0xff]  }
 0x13b   : > { %1675 = vmatmul.mubr.bf16.gmra.mrb[28].mxu1 %v11568_v43 }
 0x13c   : > { %1594 = vmatpush1.bf16.msra.mxu0 %v10389_v22  ;;  %1723 = vmatpush1.bf16.msra.mxu1 %v11693_v30  ;;  %v10454_v22 = vld [vmem:[%s14088_s2 + $0x420] ss:$12 sps:$4 sm:$0xff]  }
 0x13d   : > { %1595 = vmatprep.subr.bf16.mxu0 %v10394_v24  ;;  %1724 = vmatprep.subr.bf16.mxu1 %v11697_v31  ;;  %v10458_v24 = vld [vmem:[%s14088_s2 + $0x368] ss:$12 sps:$4 sm:$0xff]  }
 0x13e   : > { %8472 = vmatprep.mubr.msk.bf16.mxu1 %vm1165_vm3, %v687_v27 }
 0x140   : > { %1596 = vmatpush1.bf16.msra.mxu0 %v10392_v28  ;;  %1725 = vmatpush1.bf16.msra.mxu1 %v11708_v34  ;;  %v10462_v28 = vld [vmem:[%s14088_s2 + $0x440] ss:$12 sps:$4 sm:$0xff]  }
 0x141   : > { %1597 = vmatprep.subr.bf16.mxu0 %v10397_v29  ;;  %1726 = vmatprep.subr.bf16.mxu1 %v11714_v36  ;;  %v10459_v29 = vld [vmem:[%s14088_s2 + $0x438] ss:$12 sps:$4 sm:$0xff]  }
 0x143   : > { %1683 = vmatmul.mubr.bf16.gmra.mrb[32].mxu1 %v686_v35 }
 0x144   : > { %1598 = vmatpush1.bf16.msra.mxu0 %v10395_v32  ;;  %1727 = vmatpush1.bf16.msra.mxu1 %v11724_v39  ;;  %v10463_v32 = vld [vmem:[%s14088_s2 + $0x380] ss:$12 sps:$4 sm:$0xff]  }
 0x145   : > { %1599 = vmatprep.subr.bf16.mxu0 %v10400_v33  ;;  %8481 = vmatprep.subr.msk.bf16.mxu1 %vm614_vm0, %v11334_v12  ;;  %v10464_v33 = vld [vmem:[%s14088_s2 + $0x450] ss:$12 sps:$4 sm:$0xff]  }
 0x146   : > { %1750 = vmatprep.mubr.bf16.mxu1 %v11176_v0 }
 0x148   : > { %1600 = vmatpush1.bf16.msra.mxu0 %v10398_v37  ;;  %1729 = vmatpush1.bf16.msra.mxu1 %v11342_v15  ;;  %v10467_v37 = vld [vmem:[%s14088_s2 + $0x458] ss:$12 sps:$4 sm:$0xff]  }
 0x149   : > { %1601 = vmatprep.subr.bf16.mxu0 %v10403_v38  ;;  %9744 = vmatprep.subr.bf16.mxu1 %v10437_v61  ;;  %v10468_v38 = vld [vmem:[%s14088_s2 + $0x398] ss:$12 sps:$4 sm:$0xff]  }
 0x14b   : > { %8482 = vmatmul.mubr.msk.bf16.vlgmr.msra.gmra.mrb[36].mxu1 %vm604_vm1, %v10404_v40  ;;  %v10469_v40 = vld [vmem:[%s14088_s2 + $0x46c] ss:$12 sps:$4 sm:$0x3f]  }
 0x14c   : > { %1602 = vmatpush1.bf16.msra.mxu0 %v10401_v41  ;;  %1760 = vmatprep.mubr.bf16.mxu1 %v11176_v0  ;;  %v10471_v41 = vld [vmem:[%s14088_s2 + $0x470] ss:$12 sps:$4 sm:$0x3f]  }
 0x14d   : > { %8466 = vmatprep.subr.msk.bf16.mxu0 %vm1175_vm2, %v10405_v42  ;;  %9745 = vmatpush3.bf16.msra.mxu1 %v10438_v2  ;;  %v10472_v42 = vld [vmem:[%s14088_s2 + $0x468] ss:$12 sps:$4 sm:$0x3f]  }
 0x14e   : > { %9746 = vmatprep.subr.bf16.mxu1 %v10442_v4 }
 0x150   : > { %1604 = vmatpush1.bf16.msra.mxu0 %v1565_v45  ;;  %v2113_v45 = vsel %vm1175_vm2, %v10472_v42, 0 }
 0x151   : > { %2121 = vmatprep.subr.bf16.mxu0 %v10412_v47  ;;  %9747 = vmatpush3.bf16.msra.mxu1 %v10443_v6  ;;  %v10479_v47 = vld [vmem:[%s14088_s2 + $0x484] ss:$12 sps:$4 sm:$0xff]  }
 0x152   : > { %9748 = vmatprep.subr.bf16.mxu1 %v10447_v8 }
 0x153   : > { %1606 = vmatmul.mubr.bf16.vlgmr.msra.gmra.mrb[12].mxu0 %v11538_v23  ;;  %8483 = vmatmul.mubr.msk.bf16.gmra.mrb[40].mxu1 %vm604_vm1, %v10408_v48  ;;  %v10415_v23 = vld [vmem:[%s14088_s2 + $0x31c] ss:$12 sps:$4 sm:$0xff]  }
 0x154   : > { %8468 = vmatprep.mubr.msk.bf16.mxu0 %vm1165_vm3, %v11570_v46  ;;  %1770 = vmatprep.mubr.bf16.mxu1 %v11176_v0  ;;  %v10413_v46 = vld [vmem:[%s14088_s2 + $0x318] ss:$12 sps:$4 sm:$0xff]  }
 0x155   : > { %2122 = vmatpush1.bf16.msra.mxu0 %v10410_v49  ;;  %9749 = vmatpush3.bf16.msra.mxu1 %v10448_v10 }
 0x156   : > { %2123 = vmatprep.subr.bf16.mxu0 %v10415_v23  ;;  %9750 = vmatprep.subr.bf16.mxu1 %v10452_v13 }
 0x159   : > { %2124 = vmatpush1.bf16.msra.mxu0 %v10413_v46  ;;  %9751 = vmatpush3.bf16.msra.mxu1 %v10453_v16 }
 0x15a   : > { %9752 = vmatprep.subr.bf16.mxu1 %v10457_v19 }
 0x15b   : > { %1616 = vmatmul.mubr.bf16.gmra.mrb[16].mxu0 %v11568_v43  ;;  %8484 = vmatmul.mubr.msk.bf16.gmra.mrb[44].mxu1 %vm604_vm1, %v10409_v50  ;;  %v10418_v43 = vld [vmem:[%s14088_s2 + $0x334] ss:$12 sps:$4 sm:$0xff]  }
 0x15c   : > { %8469 = vmatprep.mubr.msk.bf16.mxu0 %vm1165_vm3, %v687_v27  ;;  %2125 = vmatprep.subr.bf16.mxu0 %v10418_v43  ;;  %v10461_v27 = vld [vmem:[%s14088_s2 + $0x43c] ss:$12 sps:$4 sm:$0xff]  }
 0x15d   : > { %2126 = vmatpush1.bf16.msra.mxu0 %v10416_v51  ;;  %9753 = vmatpush3.bf16.msra.mxu1 %v10458_v24 }
 0x15e   : > { %2127 = vmatprep.subr.bf16.mxu0 %v10421_v52  ;;  %9754 = vmatprep.subr.bf16.mxu1 %v10462_v28 }
 0x161   : > { %2128 = vmatpush1.bf16.msra.mxu0 %v10419_v53  ;;  %9755 = vmatpush3.bf16.msra.mxu1 %v10463_v32 }
 0x162   : > { %2129 = vmatprep.subr.bf16.mxu0 %v10424_v55  ;;  %9756 = vmatprep.subr.bf16.mxu1 %v10467_v37 }
 0x163   : > { %1626 = vmatmul.mubr.bf16.gmra.mrb[24].mxu0 %v686_v35  ;;  %v10466_v35 = vld [vmem:[%s14088_s2 + $0x454] ss:$12 sps:$4 sm:$0xff]  }
 0x165   : > { %2130 = vmatpush1.bf16.msra.mxu0 %v10422_v54  ;;  %9757 = vmatpush3.bf16.msra.mxu1 %v10468_v38 }
 0x166   : > { %2131 = vmatprep.subr.bf16.mxu0 %v10427_v57  ;;  %10207 = vmatprep.subr.msk.bf16.mxu1 %vm1175_vm2, %v10471_v41 }
 0x169   : > { %2132 = vmatpush1.bf16.msra.mxu0 %v10425_v56  ;;  %9759 = vmatpush3.bf16.msra.mxu1 %v10473_v44 }
 0x16a   : > { %2133 = vmatprep.subr.bf16.mxu0 %v10430_v58  ;;  %2281 = vmatprep.subr.bf16.mxu1 %v11649_v17 }
 0x16d   : > { %2134 = vmatpush1.bf16.msra.mxu0 %v10428_v59 }
 0x16e   : > { %2135 = vmatprep.subr.bf16.mxu0 %v10433_v60 }
 0x171   : > { %2136 = vmatpush1.bf16.msra.mxu0 %v10431_v62 }
 0x172   : > { %2137 = vmatprep.subr.bf16.mxu0 %v10436_v63 }
 0x175   : > { %2138 = vmatpush1.bf16.msra.mxu0 %v10434_v1 }
 0x176   : > { %2139 = vmatprep.subr.bf16.mxu0 %v10441_v3 }
 0x179   : > { %2140 = vmatpush1.bf16.msra.mxu0 %v10439_v5 }
 0x17a   : > { %2141 = vmatprep.subr.bf16.mxu0 %v10446_v7 }
 0x17d   : > { %2142 = vmatpush1.bf16.msra.mxu0 %v10444_v9 }
 0x17e   : > { %2143 = vmatprep.subr.bf16.mxu0 %v10451_v11 }
 0x181   : > { %2144 = vmatpush1.bf16.msra.mxu0 %v10449_v14 }
 0x182   : > { %2145 = vmatprep.subr.bf16.mxu0 %v10456_v18 }
 0x185   : > { %2146 = vmatpush1.bf16.msra.mxu0 %v10454_v22 }
 0x186   : > { %2147 = vmatprep.subr.bf16.mxu0 %v10461_v27 }
 0x189   : > { %2148 = vmatpush1.bf16.msra.mxu0 %v10459_v29 }
 0x18a   : > { %2149 = vmatprep.subr.bf16.mxu0 %v10466_v35 }
 0x18d   : > { %2150 = vmatpush1.bf16.msra.mxu0 %v10464_v33 }
 0x18e   : > { %8597 = vmatprep.subr.msk.bf16.mxu0 %vm1175_vm2, %v10469_v40 }
 0x191   : > { %2152 = vmatpush1.bf16.msra.mxu0 %v2113_v45  ;;  %v10477_v45 = vld [vmem:[%s14088_s2 + $0x480] ss:$12 sps:$4 sm:$0xff]  }
 0x192   : > { %2684 = vmatprep.subr.bf16.mxu0 %v10479_v47  ;;  %v10482_v47 = vld [vmem:[%s14088_s2 + $0x49c] ss:$12 sps:$4 sm:$0xff]  }
 0x1e6   : > { %v9692_v48 = vpop.f32.mrb[12].mxu1 }
 0x1e7   : > { %v9693_v49 = vpop.f32.mrb[13].mxu1 }
 0x1e8   : > { %v9694_v50 = vadd.f32 %v9693_v49, %v9692_v48  ;;  %v9695_v23 = vpop.f32.mrb[14].mxu1  ;;  %v10480_v49 = vld [vmem:[%s14088_s2 + $0x498] ss:$12 sps:$4 sm:$0xff]  }
 0x1e9   : > { %v9696_v46 = vpop.f32.mrb[15].mxu1 }
 0x1ea   : > { %v9697_v51 = vadd.f32 %v9696_v46, %v9695_v23  ;;  %v10485_v23 = vld [vmem:[%s14088_s2 + $0x4b4] ss:$12 sps:$4 sm:$0xff]  }
 0x1ee   : > { %v9698_v43 = vpop.f32.mrb[16].mxu1 }
 0x1ef   : > { %v9699_v52 = vpop.f32.mrb[17].mxu1 }
 0x1f0   : > { %v9700_v53 = vadd.f32 %v9699_v52, %v9698_v43  ;;  %v9701_v54 = vpop.f32.mrb[18].mxu1 }
 0x1f1   : > { %v9702_v55 = vpop.f32.mrb[19].mxu1 }
 0x1f2   : > { %v9703_v56 = vadd.f32 %v9702_v55, %v9701_v54  ;;  %v10488_v54 = vld [vmem:[%s14088_s2 + $0x4cc] ss:$12 sps:$4 sm:$0xff]  }
 0x1f6   : > { %v11912_v57 = vpop.f32.mrb[20].mxu0  ;;  %v9704_v58 = vpop.f32.mrb[20].mxu1 }
 0x1f7   : > { %v11914_v59 = vpop.f32.mrb[21].mxu0  ;;  %v9705_v60 = vpop.f32.mrb[21].mxu1 }
 0x1f8   : > { %v9706_v61 = vadd.f32 %v9705_v60, %v9704_v58  ;;  %v1243_v62 = vpop.f32.mrb[22].mxu0  ;;  %v9707_v63 = vpop.f32.mrb[22].mxu1 }
 0x1f9   : > { %v1244_v1 = vpop.f32.mrb[23].mxu0  ;;  %v9708_v2 = vpop.f32.mrb[23].mxu1 }
 0x1fa   : > { %v10491_v1 = vld [vmem:[%s14088_s2 + $0x4e4] ss:$12 sps:$4 sm:$0xff]   ;;  %v10489_v2 = vld [vmem:[%s14088_s2 + $0x4e0] ss:$12 sps:$4 sm:$0xff]  }
 0x206   : > { %v9726_v3 = vpop.f32.mrb[24].mxu1 }
 0x207   : > { %v9727_v4 = vpop.f32.mrb[25].mxu1 }
 0x208   : > { %v9728_v5 = vadd.f32 %v9727_v4, %v9726_v3  ;;  %v9729_v6 = vpop.f32.mrb[26].mxu1  ;;  %v10494_v3 = vld [vmem:[%s14088_s2 + $0x4fc] ss:$12 sps:$4 sm:$0xff]  }
 0x209   : > { %v9730_v7 = vpop.f32.mrb[27].mxu1 }
 0x20a   : > { %v11916_v8 = vadd.f32 %v9728_v5, %v9694_v50  ;;  %v9731_v9 = vadd.f32 %v9730_v7, %v9729_v6  ;;  %v10504_v7 = vld [vmem:[%s14088_s2 + $0x548] ss:$12 sps:$4 sm:$0xff]  }
 0x20c   : > { %v11918_v10 = vadd.f32 %v9731_v9, %v9697_v51 }
 0x20e   : > { %v9732_v11 = vpop.f32.mrb[28].mxu1 }
 0x20f   : > { %v9733_v13 = vpop.f32.mrb[29].mxu1 }
 0x210   : > { %v9734_v14 = vadd.f32 %v9733_v13, %v9732_v11  ;;  %v9735_v16 = vpop.f32.mrb[30].mxu1  ;;  %v10492_v13 = vld [vmem:[%s14088_s2 + $0x4f8] ss:$12 sps:$4 sm:$0xff]  }
 0x211   : > { %v9736_v18 = vpop.f32.mrb[31].mxu1 }
 0x212   : > { %v11920_v19 = vadd.f32 %v9734_v14, %v9700_v53  ;;  %v9737_v22 = vadd.f32 %v9736_v18, %v9735_v16  ;;  %v10483_v53 = vld [vmem:[%s14088_s2 + $0x4b0] ss:$12 sps:$4 sm:$0xff]   ;;  %v10497_v16 = vld [vmem:[%s14088_s2 + $0x514] ss:$12 sps:$4 sm:$0xff]   ;;  %v10500_v18 = vld [vmem:[%s14088_s2 + $0x52c] ss:$12 sps:$4 sm:$0xff]  }
 0x213   : > { %v10474_v14 = vld [vmem:[%s14087_s1 + $0x3c] sm:$0xff]  }
 0x214   : > { %v11922_v24 = vadd.f32 %v9737_v22, %v9703_v56  ;;  %v10498_v22 = vld [vmem:[%s14088_s2 + $0x528] ss:$12 sps:$4 sm:$0xff]  }
 0x216   : > { %v9738_v27 = vpop.f32.mrb[32].mxu1 }
 0x217   : > { %v9739_v28 = vpop.f32.mrb[33].mxu1 }
 0x218   : > { %v9740_v29 = vadd.f32 %v9739_v28, %v9738_v27  ;;  %v9741_v32 = vpop.f32.mrb[34].mxu1  ;;  %v10475_v27 = vld [vmem:[%s14087_s1 + $0x44] sm:$0xff]  }
 0x219   : > { %v9742_v33 = vpop.f32.mrb[35].mxu1  ;;  %v10503_v28 = vld [vmem:[%s14088_s2 + $0x544] ss:$12 sps:$4 sm:$0xff]   ;;  %v10476_v32 = vld [vmem:[%s14087_s1 + $0x4c] ss:$0 sps:$4 sm:$0xff]  }
 0x21a   : > { %v11924_v35 = vadd.f32 %v9740_v29, %v9706_v61  ;;  %v10486_v61 = vld [vmem:[%s14088_s2 + $0x4c8] ss:$12 sps:$4 sm:$0xff]   ;;  %v10501_v29 = vld [vmem:[%s14088_s2 + $0x540] ss:$12 sps:$4 sm:$0xff]  }
 0x21b   : > { %v10505_v33 = vld [vmem:[%s14088_s2 + $0x488] ss:$12 sps:$4 sm:$0xff]  }
 0x21e   : > { %v1752_v37 = vpop.f32.mrb[36].mxu1 }
 0x21f   : > { %v1754_v38 = vpop.f32.mrb[37].mxu1 }
 0x220   : > { %v1756_v40 = vpop.f32.mrb[38].mxu1 }
 0x221   : > { %v1779_v41 = vpack.c.bf16 %v1756_v40, %v1752_v37  ;;  %v1758_v42 = vpop.f32.mrb[39].mxu1  ;;  %v10508_v37 = vld [vmem:[%s14088_s2 + $0x55c] ss:$12 sps:$4 sm:$0xff]   ;;  %v10506_v40 = vld [vmem:[%s14088_s2 + $0x558] ss:$12 sps:$4 sm:$0xff]  }
 0x222   : > { %v1780_v44 = vpack.c.bf16 %v1758_v42, %v1754_v38  ;;  %v10509_v38 = vld [vmem:[%s14088_s2 + $0x560] ss:$12 sps:$4 sm:$0xff]  }
 0x223   : > { %v10513_v42 = vld [vmem:[%s14088_s2 + $0x574] ss:$12 sps:$4 sm:$0xff]  }
 0x224   : > { %8598 = vmatprep.mubr.msk.bf16.mxu0 %vm1165_vm3, %v1780_v44  ;;  %8601 = vmatprep.mubr.msk.bf16.mxu1 %vm1165_vm3, %v1780_v44  ;;  %v10514_v44 = vld [vmem:[%s14088_s2 + $0x578] ss:$12 sps:$4 sm:$0xff]  }
 0x225   : > { %2154 = vmatmul.mubr.bf16.vlgmr.msra.gmra.mrb[12].mxu0 %v1779_v41  ;;  %2215 = vmatmul.mubr.bf16.vlgmr.msra.gmra.mrb[48].mxu1 %v1779_v41  ;;  %v10510_v41 = vld [vmem:[%s14088_s2 + $0x4a0] ss:$12 sps:$4 sm:$0xff]  }
 0x226   : > { %v1762_v48 = vpop.f32.mrb[40].mxu1  ;;  %2282 = vmatpush1.bf16.msra.mxu1 %v11660_v20  ;;  %2685 = vmatpush1.bf16.msra.mxu0 %v10477_v45  ;;  %v10511_v45 = vld [vmem:[%s14088_s2 + $0x570] ss:$12 sps:$4 sm:$0xff]  }
 0x227   : > { %v1764_v50 = vpop.f32.mrb[41].mxu1  ;;  %2283 = vmatprep.subr.bf16.mxu1 %v11666_v21  ;;  %2686 = vmatprep.subr.bf16.mxu0 %v10482_v47  ;;  %v10515_v47 = vld [vmem:[%s14088_s2 + $0x4b8] ss:$12 sps:$4 sm:$0xff]  }
 0x228   : > { %v1766_v46 = vpop.f32.mrb[42].mxu1 }
 0x229   : > { %v1781_v51 = vpack.c.bf16 %v1766_v46, %v1762_v48  ;;  %v1768_v43 = vpop.f32.mrb[43].mxu1  ;;  %v10518_v48 = vld [vmem:[%s14088_s2 + $0x58c] ss:$12 sps:$4 sm:$0xff]   ;;  %v10523_v46 = vld [vmem:[%s14088_s2 + $0x5a4] ss:$12 sps:$4 sm:$0xff]  }
 0x22a   : > { %v1782_v52 = vpack.c.bf16 %v1768_v43, %v1764_v50  ;;  %2284 = vmatpush1.bf16.msra.mxu1 %v11676_v25  ;;  %2687 = vmatpush1.bf16.msra.mxu0 %v10480_v49  ;;  %v10519_v49 = vld [vmem:[%s14088_s2 + $0x590] ss:$12 sps:$4 sm:$0xff]   ;;  %v10516_v50 = vld [vmem:[%s14088_s2 + $0x588] ss:$12 sps:$4 sm:$0xff]   ;;  %v10521_v43 = vld [vmem:[%s14088_s2 + $0x5a0] ss:$12 sps:$4 sm:$0xff]  }
 0x22b   : > { %2285 = vmatprep.subr.bf16.mxu1 %v11680_v26  ;;  %2688 = vmatprep.subr.bf16.mxu0 %v10485_v23  ;;  %v10520_v23 = vld [vmem:[%s14088_s2 + $0x4d0] ss:$12 sps:$4 sm:$0xff]  }
 0x22c   : > { %8599 = vmatprep.mubr.msk.bf16.mxu0 %vm1165_vm3, %v1782_v52  ;;  %8602 = vmatprep.mubr.msk.bf16.mxu1 %vm1165_vm3, %v1782_v52  ;;  %v10525_v52 = vld [vmem:[%s14088_s2 + $0x4e8] ss:$12 sps:$4 sm:$0xff]  }
 0x22d   : > { %2164 = vmatmul.mubr.bf16.gmra.mrb[16].mxu0 %v1781_v51  ;;  %2223 = vmatmul.mubr.bf16.gmra.mrb[52].mxu1 %v1781_v51  ;;  %v10524_v51 = vld [vmem:[%s14088_s2 + $0x5a8] ss:$12 sps:$4 sm:$0xff]  }
 0x22e   : > { %v1772_v55 = vpop.f32.mrb[44].mxu1  ;;  %2286 = vmatpush1.bf16.msra.mxu1 %v11693_v30  ;;  %2689 = vmatpush1.bf16.msra.mxu0 %v10483_v53  ;;  %v10528_v53 = vld [vmem:[%s14088_s2 + $0x5bc] ss:$12 sps:$4 sm:$0xff]  }
 0x22f   : > { %v1774_v56 = vpop.f32.mrb[45].mxu1  ;;  %2287 = vmatprep.subr.bf16.mxu1 %v11697_v31  ;;  %2690 = vmatprep.subr.bf16.mxu0 %v10488_v54  ;;  %v1783_v63 = vpack.c.bf16 %v1772_v55, %v1772_v55  ;;  %v10529_v54 = vld [vmem:[%s14088_s2 + $0x5c0] ss:$12 sps:$4 sm:$0xff]   ;;  %v10526_v55 = vld [vmem:[%s14088_s2 + $0x5b8] ss:$12 sps:$4 sm:$0xff]  }
 0x230   : > { %v1784_v58 = vpack.c.bf16 %v1774_v56, %v1774_v56  ;;  %v1776_v60 = vpop.f32.mrb[46].mxu1  ;;  %v10530_v56 = vld [vmem:[%s14088_s2 + $0x500] ss:$12 sps:$4 sm:$0xff]  }
 0x231   : > { %v1777_v62 = vpop.f32.mrb[47].mxu1  ;;  %v10533_v60 = vld [vmem:[%s14088_s2 + $0x5d4] ss:$12 sps:$4 sm:$0xff]  }
 0x232   : > { %2288 = vmatpush1.bf16.msra.mxu1 %v11708_v34  ;;  %8600 = vmatprep.mubr.msk.bf16.mxu0 %vm1165_vm3, %v1784_v58  ;;  %v10535_v62 = vld [vmem:[%s14088_s2 + $0x518] ss:$12 sps:$4 sm:$0xff]  }
 0x233   : > { %8603 = vmatprep.mubr.msk.bf16.mxu1 %vm1165_vm3, %v1784_v58  ;;  %2289 = vmatprep.subr.bf16.mxu1 %v11714_v36  ;;  %v10531_v58 = vld [vmem:[%s14088_s2 + $0x5d0] ss:$12 sps:$4 sm:$0xff]  }
 0x234   : > { %2691 = vmatpush1.bf16.msra.mxu0 %v10486_v61  ;;  %v10534_v61 = vld [vmem:[%s14088_s2 + $0x5d8] ss:$12 sps:$4 sm:$0xff]  }
 0x235   : > { %2174 = vmatmul.mubr.bf16.gmra.mrb[28].mxu0 %v1783_v63  ;;  %2231 = vmatmul.mubr.bf16.gmra.mrb[56].mxu1 %v1783_v63  ;;  %v10536_v63 = vld [vmem:[%s14088_s2 + $0x5ec] ss:$12 sps:$4 sm:$0x3f]  }
 0x236   : > { %v1627_v4 = vpop.f32.mrb[24].mxu0  ;;  %2290 = vmatpush1.bf16.msra.mxu1 %v11724_v39  ;;  %2313 = vmatprep.mubr.bf16.mxu1 %v11176_v0 }
 0x237   : > { %v11973_v5 = vadd.f32 %v1627_v4, %v11912_v57  ;;  %v1629_v6 = vpop.f32.mrb[25].mxu0  ;;  %8612 = vmatprep.subr.msk.bf16.mxu1 %vm614_vm0, %v11334_v12  ;;  %2692 = vmatprep.subr.bf16.mxu0 %v10491_v1  ;;  %v10538_v1 = vld [vmem:[%s14088_s2 + $0x5f0] ss:$12 sps:$4 sm:$0x3f]  }
 0x238   : > { %v11981_v9 = vadd.f32 %v1629_v6, %v11914_v59  ;;  %v1631_v11 = vpop.f32.mrb[26].mxu0  ;;  %2693 = vmatpush1.bf16.msra.mxu0 %v10489_v2  ;;  %v10495_v59 = vld [vmem:[%s14088_s2 + $0x510] ss:$12 sps:$4 sm:$0xff]   ;;  %v10539_v2 = vld [vmem:[%s14088_s2 + $0x5e8] ss:$12 sps:$4 sm:$0x3f]  }
 0x239   : > { %v1632_v57 = vpop.f32.mrb[27].mxu0  ;;  %2694 = vmatprep.subr.bf16.mxu0 %v10494_v3  ;;  %v10540_v3 = vld [vmem:[%s14088_s2 + $0x530] ss:$12 sps:$4 sm:$0xff]   ;;  %v2676_v4 = vsel %vm1175_vm2, %v10539_v2, 0 }
 0x23a   : > { %2292 = vmatpush1.bf16.msra.mxu1 %v11342_v15  ;;  %v10546_v6 = vld [vmem:[%s14088_s2 + $0x604] ss:$12 sps:$4 sm:$0xff]  }
 0x23b   : > { %9778 = vmatprep.subr.bf16.mxu1 %v10504_v7 }
 0x23c   : > { %2695 = vmatpush1.bf16.msra.mxu0 %v10492_v13 }
 0x23d   : > { %8613 = vmatmul.mubr.msk.bf16.vlgmr.msra.gmra.mrb[60].mxu1 %vm604_vm1, %v10474_v14  ;;  %2696 = vmatprep.subr.bf16.mxu0 %v10497_v16 }
 0x23e   : > { %2323 = vmatprep.mubr.bf16.mxu1 %v11176_v0  ;;  %9779 = vmatpush3.bf16.msra.mxu1 %v10505_v33 }
 0x23f   : > { %9780 = vmatprep.subr.bf16.mxu1 %v10509_v38 }
 0x240   : > { %2697 = vmatpush1.bf16.msra.mxu0 %v10495_v59 }
 0x241   : > { %2698 = vmatprep.subr.bf16.mxu0 %v10500_v18 }
 0x242   : > { %9781 = vmatpush3.bf16.msra.mxu1 %v10510_v41 }
 0x243   : > { %9782 = vmatprep.subr.bf16.mxu1 %v10514_v44 }
 0x244   : > { %2699 = vmatpush1.bf16.msra.mxu0 %v10498_v22 }
 0x245   : > { %8614 = vmatmul.mubr.msk.bf16.gmra.mrb[64].mxu1 %vm604_vm1, %v10475_v27  ;;  %2700 = vmatprep.subr.bf16.mxu0 %v10503_v28 }
 0x246   : > { %2333 = vmatprep.mubr.bf16.mxu1 %v11176_v0  ;;  %9783 = vmatpush3.bf16.msra.mxu1 %v10515_v47 }
 0x247   : > { %9784 = vmatprep.subr.bf16.mxu1 %v10519_v49 }
 0x248   : > { %2701 = vmatpush1.bf16.msra.mxu0 %v10501_v29 }
 0x249   : > { %2702 = vmatprep.subr.bf16.mxu0 %v10508_v37 }
 0x24a   : > { %9785 = vmatpush3.bf16.msra.mxu1 %v10520_v23 }
 0x24b   : > { %9786 = vmatprep.subr.bf16.mxu1 %v10524_v51 }
 0x24c   : > { %2703 = vmatpush1.bf16.msra.mxu0 %v10506_v40 }
 0x24d   : > { %8615 = vmatmul.mubr.msk.bf16.gmra.mrb[68].mxu1 %vm604_vm1, %v10476_v32  ;;  %2704 = vmatprep.subr.bf16.mxu0 %v10513_v42 }
 0x24e   : > { %9787 = vmatpush3.bf16.msra.mxu1 %v10525_v52  ;;  %v10547_v52 = vld [vmem:[%s14088_s2 + $0x618] ss:$12 sps:$4 sm:$0xff]  }
 0x24f   : > { %9788 = vmatprep.subr.bf16.mxu1 %v10529_v54  ;;  %v10552_v54 = vld [vmem:[%s14088_s2 + $0x634] ss:$12 sps:$4 sm:$0xff]  }
 0x250   : > { %2705 = vmatpush1.bf16.msra.mxu0 %v10511_v45 }
 0x251   : > { %2706 = vmatprep.subr.bf16.mxu0 %v10518_v48 }
 0x252   : > { %9789 = vmatpush3.bf16.msra.mxu1 %v10530_v56 }
 0x253   : > { %9790 = vmatprep.subr.bf16.mxu1 %v10534_v61 }
 0x254   : > { %2707 = vmatpush1.bf16.msra.mxu0 %v10516_v50 }
 0x255   : > { %2708 = vmatprep.subr.bf16.mxu0 %v10523_v46 }
 0x256   : > { %9791 = vmatpush3.bf16.msra.mxu1 %v10535_v62 }
 0x257   : > { %10208 = vmatprep.subr.msk.bf16.mxu1 %vm1175_vm2, %v10538_v1 }
 0x258   : > { %2709 = vmatpush1.bf16.msra.mxu0 %v10521_v43  ;;  %v10544_v43 = vld [vmem:[%s14088_s2 + $0x600] ss:$12 sps:$4 sm:$0xff]  }
 0x259   : > { %2710 = vmatprep.subr.bf16.mxu0 %v10528_v53 }
 0x25a   : > { %9793 = vmatpush3.bf16.msra.mxu1 %v10540_v3  ;;  %v10559_v3 = vld [vmem:[%s14088_s2 + $0x678] ss:$12 sps:$4 sm:$0xff]  }
 0x25b   : > { %2844 = vmatprep.subr.bf16.mxu1 %v11649_v17 }
 0x25c   : > { %2711 = vmatpush1.bf16.msra.mxu0 %v10526_v55 }
 0x25d   : > { %2712 = vmatprep.subr.bf16.mxu0 %v10533_v60 }
 0x260   : > { %2713 = vmatpush1.bf16.msra.mxu0 %v10531_v58 }
 0x261   : > { %8728 = vmatprep.subr.msk.bf16.mxu0 %vm1175_vm2, %v10536_v63  ;;  %v10553_v63 = vld [vmem:[%s14088_s2 + $0x648] ss:$12 sps:$4 sm:$0xff]  }
 0x264   : > { %2715 = vmatpush1.bf16.msra.mxu0 %v2676_v4  ;;  %v10541_v4 = vld [vmem:[%s14087_s1 + $0x50] sm:$0xff]  }
 0x265   : > { %3247 = vmatprep.subr.bf16.mxu0 %v10546_v6  ;;  %v10562_v6 = vld [vmem:[%s14088_s2 + $0x690] ss:$12 sps:$4 sm:$0xff]  }
 0x2f8   : > { %v9760_v7 = vpop.f32.mrb[48].mxu1 }
 0x2f9   : > { %v9761_v11 = vpop.f32.mrb[49].mxu1 }
 0x2fa   : > { %v9762_v13 = vadd.f32 %v9761_v11, %v9760_v7  ;;  %v9763_v57 = vpop.f32.mrb[50].mxu1  ;;  %v10567_v7 = vld [vmem:[%s14088_s2 + $0x6ac] ss:$12 sps:$4 sm:$0xff]   ;;  %v10565_v11 = vld [vmem:[%s14088_s2 + $0x6a8] ss:$12 sps:$4 sm:$0xff]  }
 0x2fb   : > { %v9764_v14 = vpop.f32.mrb[51].mxu1 }
 0x2fc   : > { %v12114_v16 = vadd.f32 %v9762_v13, %v11916_v8  ;;  %v9765_v59 = vadd.f32 %v9764_v14, %v9763_v57  ;;  %v10542_v13 = vld [vmem:[%s14087_s1 + $0x58] sm:$0xff]   ;;  %v10570_v57 = vld [vmem:[%s14088_s2 + $0x6c4] ss:$12 sps:$4 sm:$0xff]   ;;  %v10568_v14 = vld [vmem:[%s14088_s2 + $0x6c0] ss:$12 sps:$4 sm:$0xff]  }
 0x2fe   : > { %v12117_v18 = vadd.f32 %v9765_v59, %v11918_v10  ;;  %v10543_v59 = vld [vmem:[%s14087_s1 + $0x60] ss:$0 sps:$4 sm:$0xff]  }
 0x300   : > { %v9766_v22 = vpop.f32.mrb[52].mxu1 }
 0x301   : > { %v9767_v27 = vpop.f32.mrb[53].mxu1 }
 0x302   : > { %v9768_v17 = vadd.f32 %v9767_v27, %v9766_v22  ;;  %v9769_v28 = vpop.f32.mrb[54].mxu1  ;;  %v10572_v22 = vld [vmem:[%s14088_s2 + $0x608] ss:$12 sps:$4 sm:$0xff]  }
 0x303   : > { %v9770_v29 = vpop.f32.mrb[55].mxu1  ;;  %v10575_v27 = vld [vmem:[%s14088_s2 + $0x6dc] ss:$12 sps:$4 sm:$0xff]  }
 0x304   : > { %v12120_v32 = vadd.f32 %v9768_v17, %v11920_v19  ;;  %v9771_v33 = vadd.f32 %v9770_v29, %v9769_v28  ;;  %v10576_v17 = vld [vmem:[%s14088_s2 + $0x6e0] ss:$12 sps:$4 sm:$0xff]   ;;  %v10573_v28 = vld [vmem:[%s14088_s2 + $0x6d8] ss:$12 sps:$4 sm:$0xff]  }
 0x305   : > { %v10577_v29 = vld [vmem:[%s14088_s2 + $0x620] ss:$12 sps:$4 sm:$0xff]  }
 0x306   : > { %v12123_v37 = vadd.f32 %v9771_v33, %v11922_v24  ;;  %v10580_v33 = vld [vmem:[%s14088_s2 + $0x6f4] ss:$12 sps:$4 sm:$0xff]  }
 0x308   : > { %v2175_v38 = vpop.f32.mrb[28].mxu0  ;;  %v9772_v40 = vpop.f32.mrb[56].mxu1 }
 0x309   : > { %v12126_v8 = vadd.f32 %v2175_v38, %v11973_v5  ;;  %v2177_v41 = vpop.f32.mrb[29].mxu0  ;;  %v9773_v10 = vpop.f32.mrb[57].mxu1  ;;  %v10581_v38 = vld [vmem:[%s14088_s2 + $0x6f8] ss:$12 sps:$4 sm:$0xff]  }
 0x30a   : > { %v12129_v42 = vadd.f32 %v2177_v41, %v11981_v9  ;;  %v9774_v44 = vadd.f32 %v9773_v10, %v9772_v40  ;;  %v2179_v45 = vpop.f32.mrb[30].mxu0  ;;  %v9775_v47 = vpop.f32.mrb[58].mxu1  ;;  %v10549_v9 = vld [vmem:[%s14088_s2 + $0x61c] ss:$12 sps:$4 sm:$0xff]   ;;  %v10582_v41 = vld [vmem:[%s14088_s2 + $0x638] ss:$12 sps:$4 sm:$0xff]  }
 0x30b   : > { %v2180_v48 = vpop.f32.mrb[31].mxu0  ;;  %v9776_v19 = vpop.f32.mrb[59].mxu1  ;;  %v10578_v40 = vld [vmem:[%s14088_s2 + $0x6f0] ss:$12 sps:$4 sm:$0xff]   ;;  %v10585_v10 = vld [vmem:[%s14088_s2 + $0x70c] ss:$12 sps:$4 sm:$0xff]  }
 0x30c   : > { %v12132_v49 = vadd.f32 %v9774_v44, %v11924_v35  ;;  %v10586_v44 = vld [vmem:[%s14088_s2 + $0x710] ss:$12 sps:$4 sm:$0xff]   ;;  %v10583_v45 = vld [vmem:[%s14088_s2 + $0x708] ss:$12 sps:$4 sm:$0xff]  }
 0x30d   : > { %v10587_v47 = vld [vmem:[%s14088_s2 + $0x650] ss:$12 sps:$4 sm:$0xff]   ;;  %v10591_v19 = vld [vmem:[%s14088_s2 + $0x728] ss:$12 sps:$4 sm:$0xff]  }
 0x30e   : > { %v10590_v48 = vld [vmem:[%s14088_s2 + $0x724] ss:$12 sps:$4 sm:$0xff]  }
 0x310   : > { %v2315_v24 = vpop.f32.mrb[60].mxu1 }
 0x311   : > { %v2317_v50 = vpop.f32.mrb[61].mxu1 }
 0x312   : > { %v2319_v23 = vpop.f32.mrb[62].mxu1 }
 0x313   : > { %v2342_v46 = vpack.c.bf16 %v2319_v23, %v2315_v24  ;;  %v2321_v51 = vpop.f32.mrb[63].mxu1  ;;  %v10588_v24 = vld [vmem:[%s14088_s2 + $0x720] ss:$12 sps:$4 sm:$0xff]   ;;  %v10595_v23 = vld [vmem:[%s14088_s2 + $0x73c] ss:$12 sps:$4 sm:$0xff]  }
 0x314   : > { %v2343_v5 = vpack.c.bf16 %v2321_v51, %v2317_v50  ;;  %v10592_v50 = vld [vmem:[%s14088_s2 + $0x668] ss:$12 sps:$4 sm:$0xff]   ;;  %v10593_v51 = vld [vmem:[%s14088_s2 + $0x738] ss:$12 sps:$4 sm:$0xff]  }
 0x316   : > { %8729 = vmatprep.mubr.msk.bf16.mxu0 %vm1165_vm3, %v2343_v5  ;;  %8732 = vmatprep.mubr.msk.bf16.mxu1 %vm1165_vm3, %v2343_v5  ;;  %v10597_v5 = vld [vmem:[%s14088_s2 + $0x680] ss:$12 sps:$4 sm:$0xff]  }
 0x317   : > { %2717 = vmatmul.mubr.bf16.vlgmr.msra.gmra.mrb[12].mxu0 %v2342_v46  ;;  %2778 = vmatmul.mubr.bf16.vlgmr.msra.gmra.mrb[72].mxu1 %v2342_v46  ;;  %v10596_v46 = vld [vmem:[%s14088_s2 + $0x740] ss:$12 sps:$4 sm:$0xff]  }
 0x318   : > { %v2325_v35 = vpop.f32.mrb[64].mxu1  ;;  %2845 = vmatpush1.bf16.msra.mxu1 %v11660_v20  ;;  %3248 = vmatpush1.bf16.msra.mxu0 %v10544_v43  ;;  %v10550_v20 = vld [vmem:[%s14088_s2 + $0x630] ss:$12 sps:$4 sm:$0xff]  }
 0x319   : > { %v2327_v53 = vpop.f32.mrb[65].mxu1  ;;  %2846 = vmatprep.subr.bf16.mxu1 %v11666_v21  ;;  %3249 = vmatprep.subr.bf16.mxu0 %v10549_v9  ;;  %v10555_v21 = vld [vmem:[%s14088_s2 + $0x64c] ss:$12 sps:$4 sm:$0xff]   ;;  %v10598_v43 = vld [vmem:[%s14088_s2 + $0x750] ss:$12 sps:$4 sm:$0xff]  }
 0x31a   : > { %v2329_v55 = vpop.f32.mrb[66].mxu1  ;;  %v10600_v9 = vld [vmem:[%s14088_s2 + $0x754] ss:$12 sps:$4 sm:$0xff]  }
 0x31b   : > { %v2344_v56 = vpack.c.bf16 %v2329_v55, %v2325_v35  ;;  %v2331_v58 = vpop.f32.mrb[67].mxu1  ;;  %v10601_v35 = vld [vmem:[%s14088_s2 + $0x758] ss:$12 sps:$4 sm:$0xff]   ;;  %v10606_v55 = vld [vmem:[%s14088_s2 + $0x768] ss:$12 sps:$4 sm:$0x3f]  }
 0x31c   : > { %v2345_v60 = vpack.c.bf16 %v2331_v58, %v2327_v53  ;;  %2847 = vmatpush1.bf16.msra.mxu1 %v11676_v25  ;;  %3250 = vmatpush1.bf16.msra.mxu0 %v10547_v52  ;;  %v10602_v52 = vld [vmem:[%s14088_s2 + $0x698] ss:$12 sps:$4 sm:$0xff]   ;;  %v3239_v58 = vsel %vm1175_vm2, %v10606_v55, 0  ;;  %v10620_v55 = vld [vmem:[%s14088_s2 + $0x7c8] ss:$12 sps:$4 sm:$0xff]  }
 0x31d   : > { %2848 = vmatprep.subr.bf16.mxu1 %v11680_v26  ;;  %3251 = vmatprep.subr.bf16.mxu0 %v10552_v54  ;;  %v10603_v53 = vld [vmem:[%s14088_s2 + $0x76c] ss:$12 sps:$4 sm:$0x3f]   ;;  %v10605_v54 = vld [vmem:[%s14088_s2 + $0x770] ss:$12 sps:$4 sm:$0x3f]  }
 0x31e   : > { %8730 = vmatprep.mubr.msk.bf16.mxu0 %vm1165_vm3, %v2345_v60  ;;  %8733 = vmatprep.mubr.msk.bf16.mxu1 %vm1165_vm3, %v2345_v60  ;;  %v12312_v60 = vld [vmem:[%s11321_s29 + $0x4] ss:$8 sps:$4 sm:$0xff]  }
 0x31f   : > { %2727 = vmatmul.mubr.bf16.gmra.mrb[16].mxu0 %v2344_v56  ;;  %2786 = vmatmul.mubr.bf16.gmra.mrb[76].mxu1 %v2344_v56  ;;  %v10607_v56 = vld [vmem:[%s14088_s2 + $0x6b0] ss:$12 sps:$4 sm:$0xff]  }
 0x320   : > { %v2335_v61 = vpop.f32.mrb[68].mxu1  ;;  %2849 = vmatpush1.bf16.msra.mxu1 %v11693_v30  ;;  %3252 = vmatpush1.bf16.msra.mxu0 %v10550_v20  ;;  %v10558_v30 = vld [vmem:[%s14088_s2 + $0x664] ss:$12 sps:$4 sm:$0xff]  }
 0x321   : > { %v2337_v25 = vpop.f32.mrb[69].mxu1  ;;  %2850 = vmatprep.subr.bf16.mxu1 %v11697_v31  ;;  %3253 = vmatprep.subr.bf16.mxu0 %v10555_v21  ;;  %v2346_v2 = vpack.c.bf16 %v2335_v61, %v2335_v61  ;;  %v10556_v31 = vld [vmem:[%s14088_s2 + $0x660] ss:$12 sps:$4 sm:$0xff]   ;;  %v10613_v20 = vld [vmem:[%s14088_s2 + $0x784] ss:$12 sps:$4 sm:$0xff]  }
 0x322   : > { %v2347_v26 = vpack.c.bf16 %v2337_v25, %v2337_v25  ;;  %v2339_v62 = vpop.f32.mrb[70].mxu1 }
 0x323   : > { %v2340_v1 = vpop.f32.mrb[71].mxu1 }
 0x324   : > { %2851 = vmatpush1.bf16.msra.mxu1 %v11708_v34  ;;  %8731 = vmatprep.mubr.msk.bf16.mxu0 %vm1165_vm3, %v2347_v26  ;;  %v10561_v34 = vld [vmem:[%s14088_s2 + $0x67c] ss:$12 sps:$4 sm:$0xff]  }
 0x325   : > { %8734 = vmatprep.mubr.msk.bf16.mxu1 %vm1165_vm3, %v2347_v26  ;;  %2852 = vmatprep.subr.bf16.mxu1 %v11714_v36  ;;  %v10571_v36 = vld [vmem:[%s14088_s2 + $0x6c8] ss:$12 sps:$4 sm:$0xff]  }
 0x326   : > { %3254 = vmatpush1.bf16.msra.mxu0 %v10553_v63 }
 0x327   : > { %2737 = vmatmul.mubr.bf16.gmra.mrb[32].mxu0 %v2346_v2  ;;  %2794 = vmatmul.mubr.bf16.gmra.mrb[80].mxu1 %v2346_v2 }
 0x328   : > { %2853 = vmatpush1.bf16.msra.mxu1 %v11724_v39  ;;  %2876 = vmatprep.mubr.bf16.mxu1 %v11176_v0  ;;  %v10564_v39 = vld [vmem:[%s14088_s2 + $0x694] ss:$12 sps:$4 sm:$0xff]  }
 0x329   : > { %8743 = vmatprep.subr.msk.bf16.mxu1 %vm614_vm0, %v11334_v12  ;;  %3255 = vmatprep.subr.bf16.mxu0 %v10558_v30 }
 0x32a   : > { %3256 = vmatpush1.bf16.msra.mxu0 %v10556_v31 }
 0x32b   : > { %3257 = vmatprep.subr.bf16.mxu0 %v10561_v34 }
 0x32c   : > { %2855 = vmatpush1.bf16.msra.mxu1 %v11342_v15 }
 0x32d   : > { %9812 = vmatprep.subr.bf16.mxu1 %v10571_v36 }
 0x32e   : > { %3258 = vmatpush1.bf16.msra.mxu0 %v10559_v3 }
 0x32f   : > { %8744 = vmatmul.mubr.msk.bf16.vlgmr.msra.gmra.mrb[84].mxu1 %vm604_vm1, %v10541_v4  ;;  %3259 = vmatprep.subr.bf16.mxu0 %v10564_v39 }
 0x330   : > { %2886 = vmatprep.mubr.bf16.mxu1 %v11176_v0  ;;  %9813 = vmatpush3.bf16.msra.mxu1 %v10572_v22 }
 0x331   : > { %9814 = vmatprep.subr.bf16.mxu1 %v10576_v17 }
 0x332   : > { %3260 = vmatpush1.bf16.msra.mxu0 %v10562_v6 }
 0x333   : > { %3261 = vmatprep.subr.bf16.mxu0 %v10567_v7 }
 0x334   : > { %9815 = vmatpush3.bf16.msra.mxu1 %v10577_v29 }
 0x335   : > { %9816 = vmatprep.subr.bf16.mxu1 %v10581_v38 }
 0x336   : > { %3262 = vmatpush1.bf16.msra.mxu0 %v10565_v11 }
 0x337   : > { %8745 = vmatmul.mubr.msk.bf16.gmra.mrb[88].mxu1 %vm604_vm1, %v10542_v13  ;;  %3263 = vmatprep.subr.bf16.mxu0 %v10570_v57 }
 0x338   : > { %2896 = vmatprep.mubr.bf16.mxu1 %v11176_v0  ;;  %9817 = vmatpush3.bf16.msra.mxu1 %v10582_v41  ;;  %v12348_v41 = vld [vmem:[%s11321_s29] ss:$8 sps:$4 sm:$0xff]  }
 0x339   : > { %9818 = vmatprep.subr.bf16.mxu1 %v10586_v44 }
 0x33a   : > { %3264 = vmatpush1.bf16.msra.mxu0 %v10568_v14 }
 0x33b   : > { %3265 = vmatprep.subr.bf16.mxu0 %v10575_v27 }
 0x33c   : > { %9819 = vmatpush3.bf16.msra.mxu1 %v10587_v47  ;;  %v10619_v47 = vld [vmem:[%s14088_s2 + $0x7b4] ss:$12 sps:$4 sm:$0xff]  }
 0x33d   : > { %9820 = vmatprep.subr.bf16.mxu1 %v10591_v19 }
 0x33e   : > { %3266 = vmatpush1.bf16.msra.mxu0 %v10573_v28 }
 0x33f   : > { %8746 = vmatmul.mubr.msk.bf16.gmra.mrb[92].mxu1 %vm604_vm1, %v10543_v59  ;;  %3267 = vmatprep.subr.bf16.mxu0 %v10580_v33 }
 0x340   : > { %9821 = vmatpush3.bf16.msra.mxu1 %v10592_v50 }
 0x341   : > { %9822 = vmatprep.subr.bf16.mxu1 %v10596_v46  ;;  %v10617_v46 = vld [vmem:[%s14088_s2 + $0x7b0] ss:$12 sps:$4 sm:$0xff]  }
 0x342   : > { %3268 = vmatpush1.bf16.msra.mxu0 %v10578_v40  ;;  %v10616_v40 = vld [vmem:[%s14088_s2 + $0x79c] ss:$12 sps:$4 sm:$0xff]  }
 0x343   : > { %3269 = vmatprep.subr.bf16.mxu0 %v10585_v10  ;;  %v10614_v10 = vld [vmem:[%s14088_s2 + $0x798] ss:$12 sps:$4 sm:$0xff]  }
 0x344   : > { %9823 = vmatpush3.bf16.msra.mxu1 %v10597_v5  ;;  %v10622_v5 = vld [vmem:[%s14088_s2 + $0x7cc] ss:$12 sps:$4 sm:$0xff]  }
 0x345   : > { %9824 = vmatprep.subr.bf16.mxu1 %v10601_v35 }
 0x346   : > { %3270 = vmatpush1.bf16.msra.mxu0 %v10583_v45  ;;  %v12355_v45 = vld [vmem:[%s11321_s29 + $0x14] ss:$8 sps:$4 sm:$0xff]  }
 0x347   : > { %3271 = vmatprep.subr.bf16.mxu0 %v10590_v48 }
 0x348   : > { %9825 = vmatpush3.bf16.msra.mxu1 %v10602_v52  ;;  %v12382_v52 = vld [vmem:[%s11321_s29 + $0x34] ss:$8 sps:$4 sm:$0xff]  }
 0x349   : > { %10209 = vmatprep.subr.msk.bf16.mxu1 %vm1175_vm2, %v10605_v54 }
 0x34a   : > { %3272 = vmatpush1.bf16.msra.mxu0 %v10588_v24 }
 0x34b   : > { %3273 = vmatprep.subr.bf16.mxu0 %v10595_v23  ;;  %v12362_v23 = vld [vmem:[%s11321_s29 + $0x10] ss:$8 sps:$4 sm:$0xff]  }
 0x34c   : > { %9827 = vmatpush3.bf16.msra.mxu1 %v10607_v56 }
 0x34d   : > { %3407 = vmatprep.subr.bf16.mxu1 %v12312_v60 }
 0x34e   : > { %3274 = vmatpush1.bf16.msra.mxu0 %v10593_v51  ;;  %v12369_v51 = vld [vmem:[%s11321_s29 + $0x24] ss:$8 sps:$4 sm:$0xff]  }
 0x34f   : > { %3275 = vmatprep.subr.bf16.mxu0 %v10600_v9  ;;  %v12378_v9 = vld [vmem:[%s11321_s29 + $0x20] ss:$8 sps:$4 sm:$0xff]  }
 0x352   : > { %3276 = vmatpush1.bf16.msra.mxu0 %v10598_v43 }
 0x353   : > { %8859 = vmatprep.subr.msk.bf16.mxu0 %vm1175_vm2, %v10603_v53 }
 0x356   : > { %3278 = vmatpush1.bf16.msra.mxu0 %v3239_v58  ;;  %v12389_v58 = vld [vmem:[%s11321_s29 + $0x30] ss:$8 sps:$4 sm:$0xff]  }
 0x357   : > { %3810 = vmatprep.subr.bf16.mxu0 %v10613_v20 }
 0x3ea   : > { %v9794_v21 = vpop.f32.mrb[72].mxu1 }
 0x3eb   : > { %v9795_v61 = vpop.f32.mrb[73].mxu1 }
 0x3ec   : > { %v9796_v25 = vadd.f32 %v9795_v61, %v9794_v21  ;;  %v9797_v26 = vpop.f32.mrb[74].mxu1  ;;  %v12395_v21 = vld [vmem:[%s11321_s29 + $0x44] ss:$8 sps:$4 sm:$0xff]  }
 0x3ed   : > { %v9798_v62 = vpop.f32.mrb[75].mxu1  ;;  %v10625_v61 = vld [vmem:[%s14088_s2 + $0x7e4] ss:$12 sps:$4 sm:$0xff]  }
 0x3ee   : > { %v12319_v63 = vadd.f32 %v9796_v25, %v12114_v16  ;;  %v9799_v1 = vadd.f32 %v9798_v62, %v9797_v26  ;;  %v10623_v25 = vld [vmem:[%s14088_s2 + $0x7e0] ss:$12 sps:$4 sm:$0xff]   ;;  %v10628_v26 = vld [vmem:[%s14088_s2 + $0x7fc] ss:$12 sps:$4 sm:$0xff]  }
 0x3ef   : > { %v12408_v62 = vld [vmem:[%s11321_s29 + $0x40] ss:$8 sps:$4 sm:$0xff]   ;;  %s8208_s29 = sshll.u32 %s513_s28, 4  ;;  %s14046_s29 = int_to_ptr.vmem [resolvable:$true] %s8208_s29 }
 0x3f0   : > { %v12322_v2 = vadd.f32 %v9799_v1, %v12117_v18  ;;  %v10638_v1 = vld [vmem:[%s14088_s2 + $0x848] ss:$12 sps:$4 sm:$0xff]   ;;  %s11112_s17 = scalar_lea.vmem %s14046_s29, 16  ;;  %p11119_p0 = scmp.lt.s32.totalorder %s14046_s29, %s11117_s19 }
 0x3f1   : > { %p11113_p11 = scmp.ne.s32.totalorder %s14046_s29, %s11112_s17  ;;  %p11120_p1 = scmp.lt.s32.totalorder %s11118_s26, %s11112_s17 }
 0x3f2   : > { %v9800_v30 = vpop.f32.mrb[76].mxu1 }
 0x3f3   : > { %v9801_v31 = vpop.f32.mrb[77].mxu1  ;;  %p11114_p12 = pnand %p11113_p11, %p11304_p5  ;;  %p11121_p2 = por %p11120_p1, %p11119_p0 }
 0x3f4   : > { %v9802_v34 = vadd.f32 %v9801_v31, %v9800_v30  ;;  %v9803_v36 = vpop.f32.mrb[78].mxu1  ;;  %v10626_v30 = vld [vmem:[%s14088_s2 + $0x7f8] ss:$12 sps:$4 sm:$0xff]  }
 0x3f5   : > { %v9804_v3 = vpop.f32.mrb[79].mxu1  ;;  %v10608_v31 = vld [vmem:[%s14087_s1 + $0x64] sm:$0xff]   ;;  %p11115_p13 = pneg %p11114_p12 }
 0x3f6   : > { %v12325_v4 = vadd.f32 %v9802_v34, %v12120_v32  ;;  %v9805_v39 = vadd.f32 %v9804_v3, %v9803_v36  ;;  %v10631_v34 = vld [vmem:[%s14088_s2 + $0x814] ss:$12 sps:$4 sm:$0xff]   ;;  %v10629_v36 = vld [vmem:[%s14088_s2 + $0x810] ss:$12 sps:$4 sm:$0xff]   ;;  %v10634_v3 = vld [vmem:[%s14088_s2 + $0x82c] ss:$12 sps:$4 sm:$0xff]  }
 0x3f7   : > { %p11122_p3 = pnand %p11121_p2, %p11115_p13 }
 0x3f8   : > { %v12328_v6 = vadd.f32 %v9805_v39, %v12123_v37  ;;  %v10632_v39 = vld [vmem:[%s14088_s2 + $0x828] ss:$12 sps:$4 sm:$0xff]  }
 0x3fa   : > { %v2738_v7 = vpop.f32.mrb[32].mxu0  ;;  %v9806_v11 = vpop.f32.mrb[80].mxu1 }
 0x3fb   : > { %v12331_v16 = vadd.f32 %v2738_v7, %v12126_v8  ;;  %v2740_v13 = vpop.f32.mrb[33].mxu0  ;;  %v9807_v18 = vpop.f32.mrb[81].mxu1  ;;  %v10609_v7 = vld [vmem:[%s14087_s1 + $0x6c] sm:$0xff]  }
 0x3fc   : > { %v12334_v57 = vadd.f32 %v2740_v13, %v12129_v42  ;;  %v9808_v14 = vadd.f32 %v9807_v18, %v9806_v11  ;;  %v2742_v59 = vpop.f32.mrb[34].mxu0  ;;  %v9809_v22 = vpop.f32.mrb[82].mxu1  ;;  %v10611_v42 = vld [vmem:[%s14088_s2 + $0x780] ss:$12 sps:$4 sm:$0xff]   ;;  %v10637_v11 = vld [vmem:[%s14088_s2 + $0x844] ss:$12 sps:$4 sm:$0xff]  }
 0x3fd   : > { %v2743_v27 = vpop.f32.mrb[35].mxu0  ;;  %v9810_v32 = vpop.f32.mrb[83].mxu1  ;;  %v10635_v13 = vld [vmem:[%s14088_s2 + $0x840] ss:$12 sps:$4 sm:$0xff]   ;;  %v10610_v18 = vld [vmem:[%s14087_s1 + $0x74] ss:$0 sps:$4 sm:$0xff]  }
 0x3fe   : > { %v12337_v17 = vadd.f32 %v9808_v14, %v12132_v49  ;;  %v10639_v14 = vld [vmem:[%s14088_s2 + $0x788] ss:$12 sps:$4 sm:$0xff]   ;;  %v10643_v22 = vld [vmem:[%s14088_s2 + $0x860] ss:$12 sps:$4 sm:$0xff]   ;;  %v10640_v27 = vld [vmem:[%s14088_s2 + $0x858] ss:$12 sps:$4 sm:$0xff]  }
 0x3ff   : > { %v10642_v59 = vld [vmem:[%s14088_s2 + $0x85c] ss:$12 sps:$4 sm:$0xff]   ;;  %v10644_v32 = vld [vmem:[%s14088_s2 + $0x7a0] ss:$12 sps:$4 sm:$0xff]  }
 0x402   : > { %v2878_v37 = vpop.f32.mrb[84].mxu1 }
 0x403   : > { %v2880_v28 = vpop.f32.mrb[85].mxu1 }
 0x404   : > { %v2882_v29 = vpop.f32.mrb[86].mxu1 }
 0x405   : > { %v2905_v8 = vpack.c.bf16 %v2882_v29, %v2878_v37  ;;  %v2884_v33 = vpop.f32.mrb[87].mxu1  ;;  %v10647_v37 = vld [vmem:[%s14088_s2 + $0x874] ss:$12 sps:$4 sm:$0xff]   ;;  %v10645_v29 = vld [vmem:[%s14088_s2 + $0x870] ss:$12 sps:$4 sm:$0xff]  }
 0x406   : > { %v2906_v38 = vpack.c.bf16 %v2884_v33, %v2880_v28  ;;  %v10648_v28 = vld [vmem:[%s14088_s2 + $0x878] ss:$12 sps:$4 sm:$0xff]  }
 0x407   : > { %v10652_v33 = vld [vmem:[%s14088_s2 + $0x88c] ss:$12 sps:$4 sm:$0xff]  }
 0x408   : > { %8860 = vmatprep.mubr.msk.bf16.mxu0 %vm1165_vm3, %v2906_v38  ;;  %8863 = vmatprep.mubr.msk.bf16.mxu1 %vm1165_vm3, %v2906_v38  ;;  %v10653_v38 = vld [vmem:[%s14088_s2 + $0x890] ss:$12 sps:$4 sm:$0xff]  }
 0x409   : > { %3280 = vmatmul.mubr.bf16.vlgmr.msra.gmra.mrb[12].mxu0 %v2905_v8  ;;  %3341 = vmatmul.mubr.bf16.vlgmr.msra.gmra.mrb[96].mxu1 %v2905_v8  ;;  %v10649_v8 = vld [vmem:[%s14088_s2 + $0x7b8] ss:$12 sps:$4 sm:$0xff]  }
 0x40a   : > { %v2888_v49 = vpop.f32.mrb[88].mxu1  ;;  %3408 = vmatpush1.bf16.msra.mxu1 %v12348_v41  ;;  %3811 = vmatpush1.bf16.msra.mxu0 %v10611_v42  ;;  %v10650_v42 = vld [vmem:[%s14088_s2 + $0x888] ss:$12 sps:$4 sm:$0xff]  }
 0x40b   : > { %v2890_v44 = vpop.f32.mrb[89].mxu1  ;;  %3409 = vmatprep.subr.bf16.mxu1 %v12355_v45  ;;  %3812 = vmatprep.subr.bf16.mxu0 %v10616_v40  ;;  %v10654_v40 = vld [vmem:[%s14088_s2 + $0x7d0] ss:$12 sps:$4 sm:$0xff]  }
 0x40c   : > { %v2892_v48 = vpop.f32.mrb[90].mxu1 }
 0x40d   : > { %v2907_v19 = vpack.c.bf16 %v2892_v48, %v2888_v49  ;;  %v2894_v24 = vpop.f32.mrb[91].mxu1  ;;  %v10657_v49 = vld [vmem:[%s14088_s2 + $0x8a4] ss:$12 sps:$4 sm:$0xff]   ;;  %v10662_v48 = vld [vmem:[%s14088_s2 + $0x8bc] ss:$12 sps:$4 sm:$0xff]  }
 0x40e   : > { %v2908_v50 = vpack.c.bf16 %v2894_v24, %v2890_v44  ;;  %3410 = vmatpush1.bf16.msra.mxu1 %v12362_v23  ;;  %3813 = vmatpush1.bf16.msra.mxu0 %v10614_v10  ;;  %v10658_v10 = vld [vmem:[%s14088_s2 + $0x8a8] ss:$12 sps:$4 sm:$0xff]   ;;  %v10655_v44 = vld [vmem:[%s14088_s2 + $0x8a0] ss:$12 sps:$4 sm:$0xff]   ;;  %v10660_v24 = vld [vmem:[%s14088_s2 + $0x8b8] ss:$12 sps:$4 sm:$0xff]  }
 0x40f   : > { %3411 = vmatprep.subr.bf16.mxu1 %v12369_v51  ;;  %3814 = vmatprep.subr.bf16.mxu0 %v10619_v47  ;;  %v10659_v47 = vld [vmem:[%s14088_s2 + $0x7e8] ss:$12 sps:$4 sm:$0xff]  }
 0x410   : > { %8861 = vmatprep.mubr.msk.bf16.mxu0 %vm1165_vm3, %v2908_v50  ;;  %8864 = vmatprep.mubr.msk.bf16.mxu1 %vm1165_vm3, %v2908_v50  ;;  %v10664_v50 = vld [vmem:[%s14088_s2 + $0x800] ss:$12 sps:$4 sm:$0xff]  }
 0x411   : > { %3290 = vmatmul.mubr.bf16.gmra.mrb[16].mxu0 %v2907_v19  ;;  %3349 = vmatmul.mubr.bf16.gmra.mrb[100].mxu1 %v2907_v19  ;;  %v10663_v19 = vld [vmem:[%s14088_s2 + $0x8c0] ss:$12 sps:$4 sm:$0xff]  }
 0x412   : > { %v2898_v43 = vpop.f32.mrb[92].mxu1  ;;  %3412 = vmatpush1.bf16.msra.mxu1 %v12378_v9  ;;  %3815 = vmatpush1.bf16.msra.mxu0 %v10617_v46  ;;  %v10665_v46 = vld [vmem:[%s14088_s2 + $0x8d0] ss:$12 sps:$4 sm:$0xff]  }
 0x413   : > { %v2900_v35 = vpop.f32.mrb[93].mxu1  ;;  %3413 = vmatprep.subr.bf16.mxu1 %v12382_v52  ;;  %3816 = vmatprep.subr.bf16.mxu0 %v10622_v5  ;;  %v2909_v20 = vpack.c.bf16 %v2898_v43, %v2898_v43  ;;  %v10667_v5 = vld [vmem:[%s14088_s2 + $0x8d4] ss:$12 sps:$4 sm:$0xff]   ;;  %v10668_v43 = vld [vmem:[%s14088_s2 + $0x8d8] ss:$12 sps:$4 sm:$0xff]  }
 0x414   : > { %v2910_v53 = vpack.c.bf16 %v2900_v35, %v2900_v35  ;;  %v2902_v54 = vpop.f32.mrb[94].mxu1  ;;  %v10669_v35 = vld [vmem:[%s14088_s2 + $0x818] ss:$12 sps:$4 sm:$0xff]  }
 0x415   : > { %v2903_v56 = vpop.f32.mrb[95].mxu1  ;;  %v10672_v54 = vld [vmem:[%s14088_s2 + $0x8f0] ss:$12 sps:$4 sm:$0x3f]  }
 0x416   : > { %3414 = vmatpush1.bf16.msra.mxu1 %v12389_v58  ;;  %8862 = vmatprep.mubr.msk.bf16.mxu0 %vm1165_vm3, %v2910_v53  ;;  %v10674_v56 = vld [vmem:[%s14088_s2 + $0x830] ss:$12 sps:$4 sm:$0xff]  }
 0x417   : > { %8865 = vmatprep.mubr.msk.bf16.mxu1 %vm1165_vm3, %v2910_v53  ;;  %3415 = vmatprep.subr.bf16.mxu1 %v12395_v21  ;;  %v10670_v53 = vld [vmem:[%s14088_s2 + $0x8ec] ss:$12 sps:$4 sm:$0x3f]  }
 0x418   : > { %3817 = vmatpush1.bf16.msra.mxu0 %v10620_v55  ;;  %v10673_v55 = vld [vmem:[%s14088_s2 + $0x8e8] ss:$12 sps:$4 sm:$0x3f]  }
 0x419   : > { %3300 = vmatmul.mubr.bf16.gmra.mrb[36].mxu0 %v2909_v20  ;;  %3357 = vmatmul.mubr.bf16.gmra.mrb[104].mxu1 %v2909_v20  ;;  %v3802_v20 = vsel %vm1175_vm2, %v10673_v55, 0 }
 0x41a   : > { %3416 = vmatpush1.bf16.msra.mxu1 %v12408_v62  ;;  %3439 = vmatprep.mubr.bf16.mxu1 %v11176_v0 }
 0x41b   : > { %8874 = vmatprep.subr.msk.bf16.mxu1 %vm614_vm0, %v11334_v12  ;;  %3818 = vmatprep.subr.bf16.mxu0 %v10625_v61  ;;  %v10680_v61 = vld [vmem:[%s14088_s2 + $0x904] ss:$12 sps:$4 sm:$0xff]  }
 0x41c   : > { %3819 = vmatpush1.bf16.msra.mxu0 %v10623_v25 }
 0x41d   : > { %3820 = vmatprep.subr.bf16.mxu0 %v10628_v26 }
 0x41e   : > { %3418 = vmatpush1.bf16.msra.mxu1 %v11342_v15 }
 0x41f   : > { %9846 = vmatprep.subr.bf16.mxu1 %v10638_v1 }
 0x420   : > { %3821 = vmatpush1.bf16.msra.mxu0 %v10626_v30 }
 0x421   : > { %8875 = vmatmul.mubr.msk.bf16.vlgmr.msra.gmra.mrb[108].mxu1 %vm604_vm1, %v10608_v31  ;;  %3822 = vmatprep.subr.bf16.mxu0 %v10631_v34 }
 0x422   : > { %3449 = vmatprep.mubr.bf16.mxu1 %v11176_v0  ;;  %9847 = vmatpush3.bf16.msra.mxu1 %v10639_v14 }
 0x423   : > { %9848 = vmatprep.subr.bf16.mxu1 %v10643_v22 }
 0x424   : > { %3823 = vmatpush1.bf16.msra.mxu0 %v10629_v36 }
 0x425   : > { %3824 = vmatprep.subr.bf16.mxu0 %v10634_v3 }
 0x426   : > { %9849 = vmatpush3.bf16.msra.mxu1 %v10644_v32 }
 0x427   : > { %9850 = vmatprep.subr.bf16.mxu1 %v10648_v28 }
 0x428   : > { %3825 = vmatpush1.bf16.msra.mxu0 %v10632_v39 }
 0x429   : > { %8876 = vmatmul.mubr.msk.bf16.gmra.mrb[112].mxu1 %vm604_vm1, %v10609_v7  ;;  %3826 = vmatprep.subr.bf16.mxu0 %v10637_v11 }
 0x42a   : > { %3459 = vmatprep.mubr.bf16.mxu1 %v11176_v0  ;;  %9851 = vmatpush3.bf16.msra.mxu1 %v10649_v8 }
 0x42b   : > { %9852 = vmatprep.subr.bf16.mxu1 %v10653_v38 }
 0x42c   : > { %3827 = vmatpush1.bf16.msra.mxu0 %v10635_v13 }
 0x42d   : > { %3828 = vmatprep.subr.bf16.mxu0 %v10642_v59 }
 0x42e   : > { %9853 = vmatpush3.bf16.msra.mxu1 %v10654_v40 }
 0x42f   : > { %9854 = vmatprep.subr.bf16.mxu1 %v10658_v10 }
 0x430   : > { %3829 = vmatpush1.bf16.msra.mxu0 %v10640_v27 }
 0x431   : > { %8877 = vmatmul.mubr.msk.bf16.gmra.mrb[116].mxu1 %vm604_vm1, %v10610_v18  ;;  %3830 = vmatprep.subr.bf16.mxu0 %v10647_v37 }
 0x432   : > { %9855 = vmatpush3.bf16.msra.mxu1 %v10659_v47  ;;  %v10681_v47 = vld [vmem:[%s14088_s2 + $0x918] ss:$12 sps:$4 sm:$0xff]  }
 0x433   : > { %9856 = vmatprep.subr.bf16.mxu1 %v10663_v19  ;;  %v10686_v19 = vld [vmem:[%s14088_s2 + $0x934] ss:$12 sps:$4 sm:$0xff]  }
 0x434   : > { %3831 = vmatpush1.bf16.msra.mxu0 %v10645_v29 }
 0x435   : > { %3832 = vmatprep.subr.bf16.mxu0 %v10652_v33 }
 0x436   : > { %9857 = vmatpush3.bf16.msra.mxu1 %v10664_v50 }
 0x437   : > { %9858 = vmatprep.subr.bf16.mxu1 %v10668_v43 }
 0x438   : > { %3833 = vmatpush1.bf16.msra.mxu0 %v10650_v42 }
 0x439   : > { %3834 = vmatprep.subr.bf16.mxu0 %v10657_v49 }
 0x43a   : > { %9859 = vmatpush3.bf16.msra.mxu1 %v10669_v35 }
 0x43b   : > { %10210 = vmatprep.subr.msk.bf16.mxu1 %vm1175_vm2, %v10672_v54 }
 0x43c   : > { %3835 = vmatpush1.bf16.msra.mxu0 %v10655_v44  ;;  %v10678_v44 = vld [vmem:[%s14088_s2 + $0x900] ss:$12 sps:$4 sm:$0xff]  }
 0x43d   : > { %3836 = vmatprep.subr.bf16.mxu0 %v10662_v48 }
 0x43e   : > { %9861 = vmatpush3.bf16.msra.mxu1 %v10674_v56  ;;  %v10693_v56 = vld [vmem:[%s14088_s2 + $0x978] ss:$12 sps:$4 sm:$0xff]  }
 0x43f   : > { %3970 = vmatprep.subr.bf16.mxu1 %v12312_v60 }
 0x440   : > { %3837 = vmatpush1.bf16.msra.mxu0 %v10660_v24 }
 0x441   : > { %3838 = vmatprep.subr.bf16.mxu0 %v10667_v5 }
 0x444   : > { %3839 = vmatpush1.bf16.msra.mxu0 %v10665_v46 }
 0x445   : > { %8990 = vmatprep.subr.msk.bf16.mxu0 %vm1175_vm2, %v10670_v53  ;;  %v10687_v53 = vld [vmem:[%s14088_s2 + $0x948] ss:$12 sps:$4 sm:$0xff]  }
 0x448   : > { %3841 = vmatpush1.bf16.msra.mxu0 %v3802_v20  ;;  %v10675_v20 = vld [vmem:[%s14087_s1 + $0x78] sm:$0xff]  }
 0x449   : > { %4373 = vmatprep.subr.bf16.mxu0 %v10680_v61  ;;  %v10701_v61 = vld [vmem:[%s14088_s2 + $0x9ac] ss:$12 sps:$4 sm:$0xff]  }
 0x4dc   : > { %v9828_v25 = vpop.f32.mrb[96].mxu1 }
 0x4dd   : > { %v9829_v26 = vpop.f32.mrb[97].mxu1 }
 0x4de   : > { %v9830_v1 = vadd.f32 %v9829_v26, %v9828_v25  ;;  %v9831_v30 = vpop.f32.mrb[98].mxu1  ;;  %v10676_v25 = vld [vmem:[%s14087_s1 + $0x80] sm:$0xff]  }
 0x4df   : > { %v9832_v31 = vpop.f32.mrb[99].mxu1  ;;  %v10704_v26 = vld [vmem:[%s14088_s2 + $0x9c4] ss:$12 sps:$4 sm:$0xff]  }
 0x4e0   : > { %v12548_v34 = vadd.f32 %v9830_v1, %v12319_v63  ;;  %v9833_v36 = vadd.f32 %v9832_v31, %v9831_v30  ;;  %v10702_v1 = vld [vmem:[%s14088_s2 + $0x9c0] ss:$12 sps:$4 sm:$0xff]   ;;  %v10677_v30 = vld [vmem:[%s14087_s1 + $0x88] ss:$0 sps:$4 sm:$0xff]  }
 0x4e1   : > { %v10706_v31 = vld [vmem:[%s14088_s2 + $0x908] ss:$12 sps:$4 sm:$0xff]  }
 0x4e2   : > { %v12551_v3 = vadd.f32 %v9833_v36, %v12322_v2  ;;  %v10709_v36 = vld [vmem:[%s14088_s2 + $0x9dc] ss:$12 sps:$4 sm:$0xff]  }
 0x4e4   : > { %v9834_v39 = vpop.f32.mrb[100].mxu1 }
 0x4e5   : > { %v9835_v7 = vpop.f32.mrb[101].mxu1 }
 0x4e6   : > { %v9836_v60 = vadd.f32 %v9835_v7, %v9834_v39  ;;  %v9837_v11 = vpop.f32.mrb[102].mxu1  ;;  %v10710_v39 = vld [vmem:[%s14088_s2 + $0x9e0] ss:$12 sps:$4 sm:$0xff]   ;;  %v10707_v7 = vld [vmem:[%s14088_s2 + $0x9d8] ss:$12 sps:$4 sm:$0xff]  }
 0x4e7   : > { %v9838_v13 = vpop.f32.mrb[103].mxu1 }
 0x4e8   : > { %v12554_v18 = vadd.f32 %v9836_v60, %v12325_v4  ;;  %v9839_v14 = vadd.f32 %v9838_v13, %v9837_v11  ;;  %v10711_v60 = vld [vmem:[%s14088_s2 + $0x920] ss:$12 sps:$4 sm:$0xff]   ;;  %v10715_v13 = vld [vmem:[%s14088_s2 + $0x9f8] ss:$12 sps:$4 sm:$0xff]  }
 0x4e9   : > { %v10714_v11 = vld [vmem:[%s14088_s2 + $0x9f4] ss:$12 sps:$4 sm:$0xff]  }
 0x4ea   : > { %v12557_v59 = vadd.f32 %v9839_v14, %v12328_v6  ;;  %v10712_v14 = vld [vmem:[%s14088_s2 + $0x9f0] ss:$12 sps:$4 sm:$0xff]  }
 0x4ec   : > { %v3301_v22 = vpop.f32.mrb[36].mxu0  ;;  %v9840_v27 = vpop.f32.mrb[104].mxu1 }
 0x4ed   : > { %v12560_v63 = vadd.f32 %v3301_v22, %v12331_v16  ;;  %v3303_v32 = vpop.f32.mrb[37].mxu0  ;;  %v9841_v2 = vpop.f32.mrb[105].mxu1  ;;  %v10716_v22 = vld [vmem:[%s14088_s2 + $0x938] ss:$12 sps:$4 sm:$0xff]  }
 0x4ee   : > { %v12563_v37 = vadd.f32 %v3303_v32, %v12334_v57  ;;  %v9842_v28 = vadd.f32 %v9841_v2, %v9840_v27  ;;  %v3305_v29 = vpop.f32.mrb[38].mxu0  ;;  %v9843_v8 = vpop.f32.mrb[106].mxu1  ;;  %v10683_v57 = vld [vmem:[%s14088_s2 + $0x91c] ss:$12 sps:$4 sm:$0xff]   ;;  %v10719_v27 = vld [vmem:[%s14088_s2 + $0xa0c] ss:$12 sps:$4 sm:$0xff]  }
 0x4ef   : > { %v3306_v33 = vpop.f32.mrb[39].mxu0  ;;  %v9844_v4 = vpop.f32.mrb[107].mxu1  ;;  %v10720_v32 = vld [vmem:[%s14088_s2 + $0xa10] ss:$12 sps:$4 sm:$0xff]   ;;  %v10717_v2 = vld [vmem:[%s14088_s2 + $0xa08] ss:$12 sps:$4 sm:$0xff]  }
 0x4f0   : > { %v12566_v38 = vadd.f32 %v9842_v28, %v12337_v17  ;;  %v10721_v28 = vld [vmem:[%s14088_s2 + $0x950] ss:$12 sps:$4 sm:$0xff]   ;;  %v10725_v8 = vld [vmem:[%s14088_s2 + $0xa28] ss:$12 sps:$4 sm:$0xff]   ;;  %v10722_v33 = vld [vmem:[%s14088_s2 + $0xa20] ss:$12 sps:$4 sm:$0xff]  }
 0x4f1   : > { %v10724_v29 = vld [vmem:[%s14088_s2 + $0xa24] ss:$12 sps:$4 sm:$0xff]   ;;  %v10726_v4 = vld [vmem:[%s14088_s2 + $0x968] ss:$12 sps:$4 sm:$0xff]  }
 0x4f4   : > { %v3441_v6 = vpop.f32.mrb[108].mxu1 }
 0x4f5   : > { %v3443_v42 = vpop.f32.mrb[109].mxu1 }
 0x4f6   : > { %v3445_v40 = vpop.f32.mrb[110].mxu1 }
 0x4f7   : > { %v3468_v49 = vpack.c.bf16 %v3445_v40, %v3441_v6  ;;  %v3447_v10 = vpop.f32.mrb[111].mxu1  ;;  %v10729_v6 = vld [vmem:[%s14088_s2 + $0xa3c] ss:$12 sps:$4 sm:$0xff]   ;;  %v10727_v40 = vld [vmem:[%s14088_s2 + $0xa38] ss:$12 sps:$4 sm:$0xff]  }
 0x4f8   : > { %v3469_v16 = vpack.c.bf16 %v3447_v10, %v3443_v42  ;;  %v10730_v42 = vld [vmem:[%s14088_s2 + $0xa40] ss:$12 sps:$4 sm:$0xff]   ;;  %v10732_v10 = vld [vmem:[%s14088_s2 + $0xa50] ss:$12 sps:$4 sm:$0xff]  }
 0x4fa   : > { %8991 = vmatprep.mubr.msk.bf16.mxu0 %vm1165_vm3, %v3469_v16  ;;  %8994 = vmatprep.mubr.msk.bf16.mxu1 %vm1165_vm3, %v3469_v16  ;;  %v10734_v16 = vld [vmem:[%s14088_s2 + $0xa54] ss:$12 sps:$4 sm:$0xff]  }
 0x4fb   : > { %3843 = vmatmul.mubr.bf16.vlgmr.msra.gmra.mrb[12].mxu0 %v3468_v49  ;;  %3904 = vmatmul.mubr.bf16.vlgmr.msra.gmra.mrb[120].mxu1 %v3468_v49  ;;  %v10731_v49 = vld [vmem:[%s14088_s2 + $0x980] ss:$12 sps:$4 sm:$0xff]  }
 0x4fc   : > { %v3451_v17 = vpop.f32.mrb[112].mxu1  ;;  %3971 = vmatpush1.bf16.msra.mxu1 %v12348_v41  ;;  %4374 = vmatpush1.bf16.msra.mxu0 %v10678_v44  ;;  %v10684_v41 = vld [vmem:[%s14088_s2 + $0x930] ss:$12 sps:$4 sm:$0xff]   ;;  %v10735_v44 = vld [vmem:[%s14088_s2 + $0xa58] ss:$12 sps:$4 sm:$0xff]  }
 0x4fd   : > { %v3453_v48 = vpop.f32.mrb[113].mxu1  ;;  %3972 = vmatprep.subr.bf16.mxu1 %v12355_v45  ;;  %4375 = vmatprep.subr.bf16.mxu0 %v10683_v57  ;;  %v10689_v45 = vld [vmem:[%s14088_s2 + $0x94c] ss:$12 sps:$4 sm:$0xff]  }
 0x4fe   : > { %v3455_v24 = vpop.f32.mrb[114].mxu1  ;;  %v10736_v57 = vld [vmem:[%s14088_s2 + $0x998] ss:$12 sps:$4 sm:$0xff]  }
 0x4ff   : > { %v3470_v50 = vpack.c.bf16 %v3455_v24, %v3451_v17  ;;  %v3457_v46 = vpop.f32.mrb[115].mxu1  ;;  %v10737_v17 = vld [vmem:[%s14088_s2 + $0xa6c] ss:$12 sps:$4 sm:$0x3f]  }
 0x500   : > { %v3471_v5 = vpack.c.bf16 %v3457_v46, %v3453_v48  ;;  %3973 = vmatpush1.bf16.msra.mxu1 %v12362_v23  ;;  %4376 = vmatpush1.bf16.msra.mxu0 %v10681_v47  ;;  %v10739_v47 = vld [vmem:[%s14088_s2 + $0xa70] ss:$12 sps:$4 sm:$0x3f]   ;;  %v10740_v48 = vld [vmem:[%s14088_s2 + $0xa68] ss:$12 sps:$4 sm:$0x3f]  }
 0x501   : > { %3974 = vmatprep.subr.bf16.mxu1 %v12369_v51  ;;  %4377 = vmatprep.subr.bf16.mxu0 %v10686_v19  ;;  %v10741_v19 = vld [vmem:[%s14088_s2 + $0x9b0] ss:$12 sps:$4 sm:$0xff]   ;;  %v4365_v24 = vsel %vm1175_vm2, %v10740_v48, 0 }
 0x502   : > { %8992 = vmatprep.mubr.msk.bf16.mxu0 %vm1165_vm3, %v3471_v5  ;;  %8995 = vmatprep.mubr.msk.bf16.mxu1 %vm1165_vm3, %v3471_v5 }
 0x503   : > { %3853 = vmatmul.mubr.bf16.gmra.mrb[16].mxu0 %v3470_v50  ;;  %3912 = vmatmul.mubr.bf16.gmra.mrb[124].mxu1 %v3470_v50 }
 0x504   : > { %v3461_v43 = vpop.f32.mrb[116].mxu1  ;;  %3975 = vmatpush1.bf16.msra.mxu1 %v12378_v9  ;;  %4378 = vmatpush1.bf16.msra.mxu0 %v10684_v41  ;;  %v10692_v9 = vld [vmem:[%s14088_s2 + $0x964] ss:$12 sps:$4 sm:$0xff]  }
 0x505   : > { %v3463_v23 = vpop.f32.mrb[117].mxu1  ;;  %3976 = vmatprep.subr.bf16.mxu1 %v12382_v52  ;;  %4379 = vmatprep.subr.bf16.mxu0 %v10689_v45  ;;  %v3472_v55 = vpack.c.bf16 %v3461_v43, %v3461_v43  ;;  %v10690_v52 = vld [vmem:[%s14088_s2 + $0x960] ss:$12 sps:$4 sm:$0xff]  }
 0x506   : > { %v3473_v51 = vpack.c.bf16 %v3463_v23, %v3463_v23  ;;  %v3465_v35 = vpop.f32.mrb[118].mxu1 }
 0x507   : > { %v3466_v54 = vpop.f32.mrb[119].mxu1 }
 0x508   : > { %3977 = vmatpush1.bf16.msra.mxu1 %v12389_v58  ;;  %8993 = vmatprep.mubr.msk.bf16.mxu0 %vm1165_vm3, %v3473_v51  ;;  %v10695_v58 = vld [vmem:[%s14088_s2 + $0x97c] ss:$12 sps:$4 sm:$0xff]  }
 0x509   : > { %8996 = vmatprep.mubr.msk.bf16.mxu1 %vm1165_vm3, %v3473_v51  ;;  %3978 = vmatprep.subr.bf16.mxu1 %v12395_v21  ;;  %v10705_v21 = vld [vmem:[%s14088_s2 + $0x9c8] ss:$12 sps:$4 sm:$0xff]  }
 0x50a   : > { %4380 = vmatpush1.bf16.msra.mxu0 %v10687_v53 }
 0x50b   : > { %3863 = vmatmul.mubr.bf16.gmra.mrb[40].mxu0 %v3472_v55  ;;  %3920 = vmatmul.mubr.bf16.gmra.mrb[128].mxu1 %v3472_v55 }
 0x50c   : > { %3979 = vmatpush1.bf16.msra.mxu1 %v12408_v62  ;;  %4002 = vmatprep.mubr.bf16.mxu1 %v11176_v0  ;;  %v10698_v62 = vld [vmem:[%s14088_s2 + $0x994] ss:$12 sps:$4 sm:$0xff]  }
 0x50d   : > { %9005 = vmatprep.subr.msk.bf16.mxu1 %vm614_vm0, %v11334_v12  ;;  %4381 = vmatprep.subr.bf16.mxu0 %v10692_v9  ;;  %v10696_v12 = vld [vmem:[%s14088_s2 + $0x990] ss:$12 sps:$4 sm:$0xff]  }
 0x50e   : > { %4382 = vmatpush1.bf16.msra.mxu0 %v10690_v52 }
 0x50f   : > { %4383 = vmatprep.subr.bf16.mxu0 %v10695_v58 }
 0x510   : > { %3981 = vmatpush1.bf16.msra.mxu1 %v11342_v15  ;;  %v10699_v15 = vld [vmem:[%s14088_s2 + $0x9a8] ss:$12 sps:$4 sm:$0xff]  }
 0x511   : > { %9880 = vmatprep.subr.bf16.mxu1 %v10705_v21 }
 0x512   : > { %4384 = vmatpush1.bf16.msra.mxu0 %v10693_v56 }
 0x513   : > { %9006 = vmatmul.mubr.msk.bf16.vlgmr.msra.gmra.mrb[132].mxu1 %vm604_vm1, %v10675_v20  ;;  %4385 = vmatprep.subr.bf16.mxu0 %v10698_v62 }
 0x514   : > { %4012 = vmatprep.mubr.bf16.mxu1 %v11176_v0  ;;  %9881 = vmatpush3.bf16.msra.mxu1 %v10706_v31 }
 0x515   : > { %9882 = vmatprep.subr.bf16.mxu1 %v10710_v39 }
 0x516   : > { %4386 = vmatpush1.bf16.msra.mxu0 %v10696_v12 }
 0x517   : > { %4387 = vmatprep.subr.bf16.mxu0 %v10701_v61 }
 0x518   : > { %9883 = vmatpush3.bf16.msra.mxu1 %v10711_v60 }
 0x519   : > { %9884 = vmatprep.subr.bf16.mxu1 %v10715_v13 }
 0x51a   : > { %4388 = vmatpush1.bf16.msra.mxu0 %v10699_v15 }
 0x51b   : > { %9007 = vmatmul.mubr.msk.bf16.gmra.mrb[136].mxu1 %vm604_vm1, %v10676_v25  ;;  %4389 = vmatprep.subr.bf16.mxu0 %v10704_v26 }
 0x51c   : > { %4022 = vmatprep.mubr.bf16.mxu1 %v11176_v0  ;;  %9885 = vmatpush3.bf16.msra.mxu1 %v10716_v22 }
 0x51d   : > { %9886 = vmatprep.subr.bf16.mxu1 %v10720_v32 }
 0x51e   : > { %4390 = vmatpush1.bf16.msra.mxu0 %v10702_v1 }
 0x51f   : > { %4391 = vmatprep.subr.bf16.mxu0 %v10709_v36 }
 0x520   : > { %9887 = vmatpush3.bf16.msra.mxu1 %v10721_v28 }
 0x521   : > { %9888 = vmatprep.subr.bf16.mxu1 %v10725_v8  ;;  %v4507_v8 = vlaneseq }
 0x522   : > { %4392 = vmatpush1.bf16.msra.mxu0 %v10707_v7 }
 0x523   : > { %9008 = vmatmul.mubr.msk.bf16.gmra.mrb[140].mxu1 %vm604_vm1, %v10677_v30  ;;  %4393 = vmatprep.subr.bf16.mxu0 %v10714_v11 }
 0x524   : > { %9889 = vmatpush3.bf16.msra.mxu1 %v10726_v4 }
 0x525   : > { %9890 = vmatprep.subr.bf16.mxu1 %v10730_v42 }
 0x526   : > { %4394 = vmatpush1.bf16.msra.mxu0 %v10712_v14 }
 0x527   : > { %4395 = vmatprep.subr.bf16.mxu0 %v10719_v27 }
 0x528   : > { %9891 = vmatpush3.bf16.msra.mxu1 %v10731_v49 }
 0x529   : > { %9892 = vmatprep.subr.bf16.mxu1 %v10735_v44 }
 0x52a   : > { %4396 = vmatpush1.bf16.msra.mxu0 %v10717_v2 }
 0x52b   : > { %4397 = vmatprep.subr.bf16.mxu0 %v10724_v29  ;;  %v12776_v29 = vld [vmem:[%s14090_s4] sm:$0xff]  }
 0x52c   : > { %9893 = vmatpush3.bf16.msra.mxu1 %v10736_v57 }
 0x52d   : > { %10211 = vmatprep.subr.msk.bf16.mxu1 %vm1175_vm2, %v10739_v47 }
 0x52e   : > { %4398 = vmatpush1.bf16.msra.mxu0 %v10722_v33  ;;  %v12780_v33 = vshrl.u32 %v4507_v8, 7 }
 0x52f   : > { %4399 = vmatprep.subr.bf16.mxu0 %v10729_v6  ;;  %v4505_v6 = vld [vmem:[%s14089_s3] sm:$0x7] }
 0x530   : > { %9895 = vmatpush3.bf16.msra.mxu1 %v10741_v19  ;;  %v4509_v4 = vsub.s32 0, %v12780_v33  ;;  %v4513_v42 = vsub.s32 1, %v12780_v33 }
 0x532   : > { %4400 = vmatpush1.bf16.msra.mxu0 %v10727_v40  ;;  %v12789_v40 = vrot.slane %v4505_v6, %v4509_v4  ;;  %v12793_v49 = vrot.slane %v4505_v6, %v4513_v42 }
 0x533   : > { %4401 = vmatprep.subr.bf16.mxu0 %v10734_v16 }
 0x536   : > { %4402 = vmatpush1.bf16.msra.mxu0 %v10732_v10  ;;  %v4517_v10 = vsub.s32 2, %v12780_v33 }
 0x537   : > { %9121 = vmatprep.subr.msk.bf16.mxu0 %vm1175_vm2, %v10737_v17 }
 0x53a   : > { %4404 = vmatpush1.bf16.msra.mxu0 %v4365_v24  ;;  %v12798_v24 = vrot.slane %v4505_v6, %v4517_v10 }
 0x5ce   : > { %v9862_v50 = vpop.f32.mrb[120].mxu1 }
 0x5cf   : > { %v9863_v46 = vpop.f32.mrb[121].mxu1 }
 0x5d0   : > { %v9864_v5 = vadd.f32 %v9863_v46, %v9862_v50  ;;  %v9865_v41 = vpop.f32.mrb[122].mxu1 }
 0x5d1   : > { %v9866_v45 = vpop.f32.mrb[123].mxu1 }
 0x5d2   : > { %v12746_v43 = vadd.f32 %v9864_v5, %v12548_v34  ;;  %v9867_v23 = vadd.f32 %v9866_v45, %v9865_v41 }
 0x5d4   : > { %v12749_v51 = vadd.f32 %v9867_v23, %v12551_v3 }
 0x5d6   : > { %v9868_v35 = vpop.f32.mrb[124].mxu1 }
 0x5d7   : > { %v9869_v53 = vpop.f32.mrb[125].mxu1 }
 0x5d8   : > { %v9870_v54 = vadd.f32 %v9869_v53, %v9868_v35  ;;  %v9871_v55 = vpop.f32.mrb[126].mxu1 }
 0x5d9   : > { %v9872_v9 = vpop.f32.mrb[127].mxu1 }
 0x5da   : > { %v12752_v52 = vadd.f32 %v9870_v54, %v12554_v18  ;;  %v9873_v58 = vadd.f32 %v9872_v9, %v9871_v55 }
 0x5dc   : > { %v12755_v21 = vadd.f32 %v9873_v58, %v12557_v59 }
 0x5de   : > { %v3864_v56 = vpop.f32.mrb[40].mxu0  ;;  %v9874_v20 = vpop.f32.mrb[128].mxu1 }
 0x5df   : > { %v12758_v34 = vadd.f32 %v3864_v56, %v12560_v63  ;;  %v3866_v62 = vpop.f32.mrb[41].mxu0  ;;  %v9875_v3 = vpop.f32.mrb[129].mxu1 }
 0x5e0   : > { %v12761_v12 = vadd.f32 %v3866_v62, %v12563_v37  ;;  %v9876_v61 = vadd.f32 %v9875_v3, %v9874_v20  ;;  %v3868_v15 = vpop.f32.mrb[42].mxu0  ;;  %v9877_v25 = vpop.f32.mrb[130].mxu1 }
 0x5e1   : > { %v3869_v26 = vpop.f32.mrb[43].mxu0  ;;  %v9878_v18 = vpop.f32.mrb[131].mxu1 }
 0x5e2   : > { %v12764_v1 = vadd.f32 %v9876_v61, %v12566_v38 }
 0x5e6   : > { %v4004_v59 = vpop.f32.mrb[132].mxu1 }
 0x5e7   : > { %v4006_v30 = vpop.f32.mrb[133].mxu1 }
 0x5e8   : > { %v4008_v31 = vpop.f32.mrb[134].mxu1 }
 0x5e9   : > { %v4031_v36 = vpack.c.bf16 %v4008_v31, %v4004_v59  ;;  %v4010_v39 = vpop.f32.mrb[135].mxu1 }
 0x5ea   : > { %v4032_v63 = vpack.c.bf16 %v4010_v39, %v4006_v30 }
 0x5ec   : > { %9122 = vmatprep.mubr.msk.bf16.mxu0 %vm1165_vm3, %v4032_v63  ;;  %9125 = vmatprep.mubr.msk.bf16.mxu1 %vm1165_vm3, %v4032_v63 }
 0x5ed   : > { %4406 = vmatmul.mubr.bf16.vlgmr.msra.gmra.mrb[12].mxu0 %v4031_v36  ;;  %4467 = vmatmul.mubr.bf16.vlgmr.msra.gmra.mrb[144].mxu1 %v4031_v36 }
 0x5ee   : > { %v4014_v37 = vpop.f32.mrb[136].mxu1 }
 0x5ef   : > { %v4016_v7 = vpop.f32.mrb[137].mxu1 }
 0x5f0   : > { %v4018_v60 = vpop.f32.mrb[138].mxu1 }
 0x5f1   : > { %v4033_v11 = vpack.c.bf16 %v4018_v60, %v4014_v37  ;;  %v4020_v13 = vpop.f32.mrb[139].mxu1 }
 0x5f2   : > { %v4034_v14 = vpack.c.bf16 %v4020_v13, %v4016_v7 }
 0x5f4   : > { %9123 = vmatprep.mubr.msk.bf16.mxu0 %vm1165_vm3, %v4034_v14  ;;  %9126 = vmatprep.mubr.msk.bf16.mxu1 %vm1165_vm3, %v4034_v14 }
 0x5f5   : > { %4416 = vmatmul.mubr.bf16.gmra.mrb[16].mxu0 %v4033_v11  ;;  %4475 = vmatmul.mubr.bf16.gmra.mrb[148].mxu1 %v4033_v11 }
 0x5f6   : > { %v4024_v38 = vpop.f32.mrb[140].mxu1 }
 0x5f7   : > { %v4026_v22 = vpop.f32.mrb[141].mxu1  ;;  %v4035_v28 = vpack.c.bf16 %v4024_v38, %v4024_v38 }
 0x5f8   : > { %v4036_v27 = vpack.c.bf16 %v4026_v22, %v4026_v22  ;;  %v4028_v32 = vpop.f32.mrb[142].mxu1 }
 0x5f9   : > { %v4029_v2 = vpop.f32.mrb[143].mxu1 }
 0x5fa   : > { %9124 = vmatprep.mubr.msk.bf16.mxu0 %vm1165_vm3, %v4036_v27  ;;  %9127 = vmatprep.mubr.msk.bf16.mxu1 %vm1165_vm3, %v4036_v27 }
 0x5fd   : > { %4426 = vmatmul.mubr.bf16.gmra.mrb[44].mxu0 %v4035_v28  ;;  %4483 = vmatmul.mubr.bf16.gmra.mrb[152].mxu1 %v4035_v28 }
 0x5fe   : > { %4624 = vmatprep.mubr.bf16.mxu1 %v11176_v0  ;;  %9981 = vmatprep.mubr.msk.bf16.mxu0 %vm4572_vm4, %v12776_v29 }
 0x6c0   : > { %v4407_v16 = vpop.f32.mrb[12].mxu0  ;;  %v9896_v44 = vpop.f32.mrb[144].mxu1 }
 0x6c1   : > { %v4522_v57 = vadd.f32 %v12789_v40, %v4407_v16  ;;  %v4409_v17 = vpop.f32.mrb[13].mxu0  ;;  %v9897_v47 = vpop.f32.mrb[145].mxu1 }
 0x6c2   : > { %v4523_v48 = vadd.f32 %v12793_v49, %v4409_v17  ;;  %v9898_v19 = vadd.f32 %v9897_v47, %v9896_v44  ;;  %v4411_v50 = vpop.f32.mrb[14].mxu0  ;;  %v9899_v46 = vpop.f32.mrb[146].mxu1 }
 0x6c3   : > { %v4525_v5 = vadd.f32 %v12789_v40, %v4411_v50  ;;  %v4413_v41 = vpop.f32.mrb[15].mxu0  ;;  %v9900_v45 = vpop.f32.mrb[147].mxu1  ;;  %v4537_v54 = vmax.f32 %v4522_v57, 0.0 }
 0x6c4   : > { %v4492_v23 = vadd.f32 %v9898_v19, %v12746_v43  ;;  %v4526_v35 = vadd.f32 %v12793_v49, %v4413_v41  ;;  %v9901_v53 = vadd.f32 %v9900_v45, %v9899_v46  ;;  %v4538_v9 = vmax.f32 %v4523_v48, 0.0 }
 0x6c5   : > { %v4540_v55 = vmax.f32 %v4525_v5, 0.0 }
 0x6c6   : > { %v4524_v58 = vadd.f32 %v12798_v24, %v4492_v23  ;;  %v4541_v56 = vmax.f32 %v4526_v35, 0.0  ;;  %v4495_v20 = vadd.f32 %v9901_v53, %v12749_v51 }
 0x6c7   : > { %v12805_v62 = vpack.c.bf16 %v4540_v55, %v4537_v54 }
 0x6c8   : > { %v12807_v3 = vpack.c.bf16 %v4541_v56, %v4538_v9  ;;  %v4527_v61 = vadd.f32 %v12798_v24, %v4495_v20  ;;  %v4417_v15 = vpop.f32.mrb[16].mxu0  ;;  %v9902_v25 = vpop.f32.mrb[148].mxu1  ;;  %v4539_v59 = vmax.f32 %v4524_v58, 0.0 }
 0x6c9   : > { %v4528_v43 = vadd.f32 %v12789_v40, %v4417_v15  ;;  %v4419_v26 = vpop.f32.mrb[17].mxu0  ;;  %v9903_v18 = vpop.f32.mrb[149].mxu1 }
 0x6ca   : > { %v4542_v30 = vmax.f32 %v4527_v61, 0.0  ;;  %v4529_v31 = vadd.f32 %v12793_v49, %v4419_v26  ;;  %v9904_v36 = vadd.f32 %v9903_v18, %v9902_v25  ;;  %v4421_v39 = vpop.f32.mrb[18].mxu0  ;;  %v9905_v63 = vpop.f32.mrb[150].mxu1  ;;  %4592 = vmatprep.subr.bf16.mxu1 %v12807_v3  ;;  %v10745_v25 = vld [vmem:[%s14090_s4 + $0xc] sm:$0xff]   ;;  %v10753_v18 = vld [vmem:[%s14091_s5 + $0x13c] ss:$8 sps:$4 sm:$0xff]  }
 0x6cb   : > { %v4531_v51 = vadd.f32 %v12789_v40, %v4421_v39  ;;  %v4423_v37 = vpop.f32.mrb[19].mxu0  ;;  %v9906_v7 = vpop.f32.mrb[151].mxu1  ;;  %4593 = vmatpush1.bf16.msra.mxu1 %v12805_v62  ;;  %v4543_v14 = vmax.f32 %v4528_v43, 0.0  ;;  %v10746_v43 = vld [vmem:[%s14090_s4 + $0x20] ss:$0 sps:$4 sm:$0x11]  }
 0x6cc   : > { %v12815_v60 = vpack.c.bf16 %v4542_v30, %v4539_v59  ;;  %v4498_v11 = vadd.f32 %v9904_v36, %v12752_v52  ;;  %v4532_v13 = vadd.f32 %v12793_v49, %v4423_v37  ;;  %v9907_v22 = vadd.f32 %v9906_v7, %v9905_v63  ;;  %v10747_v26 = vld [vmem:[%s14090_s4 + $0x14] ss:$0 sps:$4 sm:$0x11]   ;;  %v10751_v59 = vld [vmem:[%s14091_s5 + $0x138] ss:$8 sps:$4 sm:$0xff]   ;;  %v10748_v63 = vld [vmem:[%s14090_s4 + $0x24] sm:$0xff]  }
 0x6cd   : > { %v4546_v38 = vmax.f32 %v4531_v51, 0.0  ;;  %v4544_v27 = vmax.f32 %v4529_v31, 0.0  ;;  %v10756_v30 = vld [vmem:[%s14091_s5 + $0x14c] ss:$8 sps:$4 sm:$0xff]   ;;  %v10754_v31 = vld [vmem:[%s14091_s5 + $0x148] ss:$8 sps:$4 sm:$0xff]  }
 0x6ce   : > { %v4547_v32 = vmax.f32 %v4532_v13, 0.0  ;;  %9975 = vmatprep.subr.bf16.mxu0 %v12815_v60  ;;  %v4530_v2 = vadd.f32 %v12798_v24, %v4498_v11  ;;  %v4501_v8 = vadd.f32 %v9907_v22, %v12755_v21  ;;  %v10759_v36 = vld [vmem:[%s14091_s5 + $0x15c] ss:$8 sps:$4 sm:$0xff]   ;;  %v10757_v39 = vld [vmem:[%s14091_s5 + $0x158] ss:$8 sps:$4 sm:$0xff]  }
 0x6cf   : > { %v12821_v28 = vpack.c.bf16 %v4546_v38, %v4543_v14  ;;  %9976 = vmatpush3.bf16.msra.mxu0 %v12815_v60  ;;  %v10762_v51 = vld [vmem:[%s14091_s5 + $0x16c] ss:$8 sps:$4 sm:$0xff]   ;;  %v10760_v37 = vld [vmem:[%s14091_s5 + $0x168] ss:$8 sps:$4 sm:$0xff]   ;;  %v10765_v7 = vld [vmem:[%s14091_s5 + $0x17c] ss:$8 sps:$4 sm:$0xff]  }
 0x6d0   : > { %v12825_v6 = vpack.c.bf16 %v4547_v32, %v4544_v27  ;;  %v4427_v52 = vpop.f32.mrb[44].mxu0  ;;  %v9908_v10 = vpop.f32.mrb[152].mxu1  ;;  %v4533_v16 = vadd.f32 %v12798_v24, %v4501_v8  ;;  %v4545_v21 = vmax.f32 %v4530_v2, 0.0  ;;  %v10763_v11 = vld [vmem:[%s14091_s5 + $0x178] ss:$8 sps:$4 sm:$0xff]  }
 0x6d1   : > { %v4502_v44 = vadd.f32 %v4427_v52, %v12758_v34  ;;  %v4429_v57 = vpop.f32.mrb[45].mxu0  ;;  %v9909_v17 = vpop.f32.mrb[153].mxu1  ;;  %v11177_v34 = vmov 65535   ;;  %v10749_v13 = vld [vmem:[%s14090_s4 + $0x2c] ss:$0 sps:$4 sm:$0x11]  }
 0x6d2   : > { %v4503_v47 = vadd.f32 %v4429_v57, %v12761_v12  ;;  %v9910_v48 = vadd.f32 %v9909_v17, %v9908_v10  ;;  %v4431_v19 = vpop.f32.mrb[46].mxu0  ;;  %v9911_v50 = vpop.f32.mrb[154].mxu1  ;;  %4594 = vmatprep.subr.bf16.mxu1 %v12825_v6  ;;  %v4548_v46 = vmax.f32 %v4533_v16, 0.0  ;;  %v4581_v23 = vsel %vm4579_vm5, 4294967295, %v11177_v34  ;;  %v10768_v14 = vld [vmem:[%s14091_s5 + $0x18c] ss:$8 sps:$4 sm:$0xff]  }
 0x6d3   : > { %v4534_v5 = vadd.f32 %v12789_v40, %v4502_v44  ;;  %v4432_v41 = vpop.f32.mrb[47].mxu0  ;;  %v9912_v45 = vpop.f32.mrb[155].mxu1  ;;  %4595 = vmatpush1.bf16.msra.mxu1 %v12821_v28  ;;  %v4582_v58 = vsel %vm4580_vm6, %v4581_v23, 0  ;;  %v10766_v38 = vld [vmem:[%s14091_s5 + $0x188] ss:$8 sps:$4 sm:$0xff]  }
 0x6d4   : > { %v4535_v12 = vadd.f32 %v12793_v49, %v4503_v47  ;;  %v4504_v35 = vadd.f32 %v9910_v48, %v12764_v1  ;;  %v12837_v53 = vpack.c.bf16 %v4548_v46, %v4545_v21  ;;  %v10771_v22 = vld [vmem:[%s14091_s5 + $0x19c] ss:$8 sps:$4 sm:$0xff]   ;;  %v10769_v27 = vld [vmem:[%s14091_s5 + $0x198] ss:$8 sps:$4 sm:$0xff]   ;;  %v10774_v32 = vld [vmem:[%s14091_s5 + $0x1ac] ss:$8 sps:$4 sm:$0xff]  }
 0x6d5   : > { %v4549_v54 = vmax.f32 %v4534_v5, 0.0  ;;  %v10772_v2 = vld [vmem:[%s14091_s5 + $0x1a8] ss:$8 sps:$4 sm:$0xff]   ;;  %v10775_v8 = vld [vmem:[%s14091_s5 + $0x1b8] ss:$8 sps:$4 sm:$0xff]  }
 0x6d6   : > { %v4550_v55 = vmax.f32 %v4535_v12, 0.0  ;;  %v4536_v9 = vadd.f32 %v12798_v24, %v4504_v35  ;;  %9977 = vmatprep.subr.bf16.mxu0 %v12837_v53  ;;  %v10743_v24 = vld [vmem:[%s14090_s4 + $0x8] ss:$0 sps:$4 sm:$0x11]   ;;  %v10780_v52 = vld [vmem:[%s14091_s5 + $0x1cc] ss:$8 sps:$4 sm:$0xff]  }
 0x6d7   : > { %v4558_v40 = vpack.c.bf16 %v4549_v54, %v4549_v54  ;;  %9978 = vmatpush3.bf16.msra.mxu0 %v12837_v53  ;;  %v10783_v10 = vld [vmem:[%s14091_s5 + $0x1dc] ss:$8 sps:$4 sm:$0xff]   ;;  %v10786_v16 = vld [vmem:[%s14091_s5 + $0x1ec] ss:$8 sps:$4 sm:$0xff]   ;;  %v10784_v44 = vld [vmem:[%s14091_s5 + $0x1e8] ss:$8 sps:$4 sm:$0xff]  }
 0x6d8   : > { %v4559_v56 = vpack.c.bf16 %v4550_v55, %v4550_v55  ;;  %v4551_v20 = vmax.f32 %v4536_v9, 0.0  ;;  %v10787_v57 = vld [vmem:[%s14091_s5 + $0x1f8] ss:$8 sps:$4 sm:$0xff]   ;;  %v10790_v17 = vld [vmem:[%s14091_s5 + $0x208] ss:$8 sps:$4 sm:$0xff]  }
 0x6d9   : > { %v12845_v15 = vand.u32 %v4582_v58, %v4558_v40  ;;  %v10792_v47 = vld [vmem:[%s14091_s5 + $0x20c] ss:$8 sps:$4 sm:$0xff]   ;;  %v10795_v48 = vld [vmem:[%s14091_s5 + $0x21c] ss:$8 sps:$4 sm:$0xff]   ;;  %v10793_v19 = vld [vmem:[%s14091_s5 + $0x218] ss:$8 sps:$4 sm:$0xff]  }
 0x6da   : > { %v12843_v61 = vand.u32 %v4582_v58, %v4559_v56  ;;  %v4560_v49 = vpack.c.bf16 %v4551_v20, %v4551_v20  ;;  %v10798_v50 = vld [vmem:[%s14091_s5 + $0x22c] ss:$8 sps:$4 sm:$0xff]   ;;  %v10796_v21 = vld [vmem:[%s14091_s5 + $0x228] ss:$8 sps:$4 sm:$0xff]   ;;  %v10801_v46 = vld [vmem:[%s14091_s5 + $0x23c] ss:$8 sps:$4 sm:$0xff]  }
 0x6db   : > { %v10881_v45 = vld [vmem:[%s14090_s4 + $0x38] ss:$0 sps:$4 sm:$0x11]  }
 0x6dc   : > { %v12847_v1 = vand.u32 %v4582_v58, %v4560_v49  ;;  %4596 = vmatprep.subr.bf16.mxu1 %v12843_v61 }
 0x6dd   : > { %4597 = vmatpush1.bf16.msra.mxu1 %v12845_v15 }
 0x6de   : > { %9979 = vmatprep.subr.bf16.mxu0 %v12847_v1  ;;  %4754 = vmatprep.subr.bf16.mxu1 %v12807_v3 }
 0x6df   : > { %9980 = vmatpush3.bf16.msra.mxu0 %v12847_v1 }
 0x6e0   : > { %9130 = vmatmul.mubr.msk.bf16.vlgmr.msra.gmra.mrb[156].mxu1 %vm4572_vm4, %v12776_v29  ;;  %5536 = vmatprep.subr.bf16.mxu0 %v12807_v3  ;;  %v10744_v29 = vld [vmem:[%s14090_s4 + $0x18] sm:$0xff]  }
 0x6e1   : > { %4755 = vmatpush1.bf16.msra.mxu1 %v12805_v62  ;;  %4634 = vmatprep.mubr.bf16.mxu1 %v11176_v0 }
 0x6e2   : > { %4756 = vmatprep.subr.bf16.mxu1 %v12825_v6  ;;  %9982 = vmatmul.mubr.msk.bf16.vlgmr.msra.gmra.mrb[48].mxu0 %vm4572_vm4, %v10743_v24 }
 0x6e3   : > { %5537 = vmatpush1.bf16.msra.mxu0 %v12805_v62  ;;  %5568 = vmatprep.mubr.bf16.mxu0 %v11176_v0 }
 0x6e4   : > { %5538 = vmatprep.subr.bf16.mxu0 %v12825_v6 }
 0x6e5   : > { %4757 = vmatpush1.bf16.msra.mxu1 %v12821_v28 }
 0x6e6   : > { %4758 = vmatprep.subr.bf16.mxu1 %v12843_v61 }
 0x6e7   : > { %5539 = vmatpush1.bf16.msra.mxu0 %v12821_v28 }
 0x6e8   : > { %9131 = vmatmul.mubr.msk.bf16.gmra.mrb[160].mxu1 %vm4572_vm4, %v10743_v24  ;;  %5540 = vmatprep.subr.bf16.mxu0 %v12843_v61 }
 0x6e9   : > { %4759 = vmatpush1.bf16.msra.mxu1 %v12845_v15  ;;  %4786 = vmatprep.mubr.bf16.mxu1 %v11176_v0 }
 0x6ea   : > { %9985 = vmatprep.subr.bf16.mxu1 %v12815_v60 }
 0x6eb   : > { %5541 = vmatpush1.bf16.msra.mxu0 %v12845_v15 }
 0x6ec   : > { %9995 = vmatprep.subr.bf16.mxu0 %v12815_v60 }
 0x6ee   : > { %9273 = vmatmul.mubr.msk.bf16.vlgmr.msra.gmra.mrb[52].mxu0 %vm4572_vm4, %v10744_v29 }
 0x6ef   : > { %9996 = vmatpush3.bf16.msra.mxu0 %v12815_v60  ;;  %5578 = vmatprep.mubr.bf16.mxu0 %v11176_v0 }
 0x6f0   : > { %9139 = vmatmul.mubr.msk.bf16.vlgmr.msra.gmra.mrb[164].mxu1 %vm4572_vm4, %v10745_v25  ;;  %9997 = vmatprep.subr.bf16.mxu0 %v12837_v53 }
 0x6f1   : > { %9986 = vmatpush3.bf16.msra.mxu1 %v12815_v60  ;;  %4796 = vmatprep.mubr.bf16.mxu1 %v11176_v0 }
 0x6f2   : > { %9987 = vmatprep.subr.bf16.mxu1 %v12837_v53 }
 0x6f3   : > { %9998 = vmatpush3.bf16.msra.mxu0 %v12837_v53 }
 0x6f4   : > { %9999 = vmatprep.subr.bf16.mxu0 %v12847_v1 }
 0x6f5   : > { %9988 = vmatpush3.bf16.msra.mxu1 %v12837_v53 }
 0x6f6   : > { %9989 = vmatprep.subr.bf16.mxu1 %v12847_v1  ;;  %9274 = vmatmul.mubr.msk.bf16.gmra.mrb[56].mxu0 %vm4572_vm4, %v10746_v43 }
 0x6f7   : > { %10000 = vmatpush3.bf16.msra.mxu0 %v12847_v1  ;;  %10001 = vmatprep.mubr.msk.bf16.mxu0 %vm4572_vm4, %v10744_v29 }
 0x6f8   : > { %9140 = vmatmul.mubr.msk.bf16.gmra.mrb[168].mxu1 %vm4572_vm4, %v10747_v26  ;;  %6014 = vmatprep.subr.bf16.mxu0 %v12807_v3 }
 0x6f9   : > { %9990 = vmatpush3.bf16.msra.mxu1 %v12847_v1  ;;  %9991 = vmatprep.mubr.msk.bf16.mxu1 %vm4572_vm4, %v10745_v25 }
 0x6fa   : > { %5107 = vmatprep.subr.bf16.mxu1 %v10753_v18  ;;  %v10804_v18 = vld [vmem:[%s14091_s5 + $0x24c] ss:$8 sps:$4 sm:$0xff]  }
 0x6fe   : > { %10002 = vmatmul.mubr.msk.bf16.vlgmr.msra.gmra.mrb[60].mxu0 %vm4572_vm4, %v10746_v43 }
 0x6ff   : > { %6015 = vmatpush1.bf16.msra.mxu0 %v12805_v62  ;;  %6046 = vmatprep.mubr.bf16.mxu0 %v11176_v0 }
 0x700   : > { %6016 = vmatprep.subr.bf16.mxu0 %v12825_v6  ;;  %9992 = vmatmul.mubr.msk.bf16.vlgmr.msra.gmra.mrb[172].mxu1 %vm4572_vm4, %v10747_v26  ;;  %v10799_v26 = vld [vmem:[%s14091_s5 + $0x238] ss:$8 sps:$4 sm:$0xff]  }
 0x701   : > { %5108 = vmatpush1.bf16.msra.mxu1 %v10751_v59 }
 0x702   : > { %5109 = vmatprep.subr.bf16.mxu1 %v10756_v30  ;;  %v10802_v30 = vld [vmem:[%s14091_s5 + $0x248] ss:$8 sps:$4 sm:$0xff]  }
 0x703   : > { %6017 = vmatpush1.bf16.msra.mxu0 %v12821_v28 }
 0x704   : > { %6018 = vmatprep.subr.bf16.mxu0 %v12843_v61 }
 0x705   : > { %5110 = vmatpush1.bf16.msra.mxu1 %v10754_v31 }
 0x706   : > { %5111 = vmatprep.subr.bf16.mxu1 %v10759_v36  ;;  %v10807_v36 = vld [vmem:[%s14091_s5 + $0x25c] ss:$8 sps:$4 sm:$0xff]  }
 0x707   : > { %6019 = vmatpush1.bf16.msra.mxu0 %v12845_v15 }
 0x708   : > { %10005 = vmatprep.subr.bf16.mxu0 %v12815_v60 }
 0x709   : > { %5112 = vmatpush1.bf16.msra.mxu1 %v10757_v39 }
 0x70a   : > { %9364 = vmatmul.mubr.msk.bf16.vlgmr.msra.gmra.mrb[64].mxu0 %vm4572_vm4, %v10748_v63  ;;  %5113 = vmatprep.subr.bf16.mxu1 %v10762_v51  ;;  %v9181_v51 = vld [vmem:[%s14091_s5 + $0x268] sm:$0xff] }
 0x70b   : > { %10006 = vmatpush3.bf16.msra.mxu0 %v12815_v60  ;;  %6056 = vmatprep.mubr.bf16.mxu0 %v11176_v0 }
 0x70c   : > { %10007 = vmatprep.subr.bf16.mxu0 %v12837_v53 }
 0x70d   : > { %5114 = vmatpush1.bf16.msra.mxu1 %v10760_v37 }
 0x70e   : > { %5115 = vmatprep.subr.bf16.mxu1 %v10765_v7  ;;  %v10805_v7 = vld [vmem:[%s14091_s5 + $0x258] ss:$8 sps:$4 sm:$0xff]  }
 0x70f   : > { %10008 = vmatpush3.bf16.msra.mxu0 %v12837_v53 }
 0x710   : > { %10009 = vmatprep.subr.bf16.mxu0 %v12847_v1 }
 0x711   : > { %5116 = vmatpush1.bf16.msra.mxu1 %v10763_v11 }
 0x712   : > { %9365 = vmatmul.mubr.msk.bf16.gmra.mrb[68].mxu0 %vm4572_vm4, %v10749_v13  ;;  %5117 = vmatprep.subr.bf16.mxu1 %v10768_v14  ;;  %v9220_v14 = vcombine.low %v9181_v51, %v9181_v51 }
 0x713   : > { %10010 = vmatpush3.bf16.msra.mxu0 %v12847_v1  ;;  %10011 = vmatprep.mubr.msk.bf16.mxu0 %vm4572_vm4, %v10748_v63 }
 0x714   : > { %6492 = vmatprep.subr.bf16.mxu0 %v12807_v3  ;;  %v10777_v3 = vld [vmem:[%s14091_s5 + $0x1bc] ss:$8 sps:$4 sm:$0xff]  }
 0x715   : > { %5118 = vmatpush1.bf16.msra.mxu1 %v10766_v38 }
 0x716   : > { %5119 = vmatprep.subr.bf16.mxu1 %v10771_v22 }
 0x719   : > { %5120 = vmatpush1.bf16.msra.mxu1 %v10769_v27  ;;  %v5102_v27 = vsel %vm4580_vm6, %v9220_v14, 0  ;;  %v10849_v14 = vld [vmem:[%s14091_s5 + $0xd0] ss:$8 sps:$4 sm:$0xff]  }
 0x71a   : > { %10012 = vmatmul.mubr.msk.bf16.vlgmr.msra.gmra.mrb[72].mxu0 %vm4572_vm4, %v10749_v13  ;;  %5121 = vmatprep.subr.bf16.mxu1 %v10774_v32  ;;  %v9221_v13 = vcombine.high %v9181_v51, %v9181_v51  ;;  %v10812_v32 = vld [vmem:[%s14091_s5 + $0x4] ss:$8 sps:$4 sm:$0xff]   ;;  %v10845_v51 = vld [vmem:[%s14091_s5 + $0xb4] ss:$8 sps:$4 sm:$0xff]  }
 0x71b   : > { %6493 = vmatpush1.bf16.msra.mxu0 %v12805_v62  ;;  %6524 = vmatprep.mubr.bf16.mxu0 %v11176_v0  ;;  %v10778_v62 = vld [vmem:[%s14091_s5 + $0x1c8] ss:$8 sps:$4 sm:$0xff]  }
 0x71c   : > { %6494 = vmatprep.subr.bf16.mxu0 %v12825_v6  ;;  %v10750_v6 = vld [vmem:[%s14090_s4 + $0x30] sm:$0xff]  }
 0x71d   : > { %5122 = vmatpush1.bf16.msra.mxu1 %v10772_v2 }
 0x71e   : > { %5123 = vmatprep.subr.bf16.mxu1 %v10777_v3 }
 0x71f   : > { %6495 = vmatpush1.bf16.msra.mxu0 %v12821_v28  ;;  %v10781_v28 = vld [vmem:[%s14091_s5 + $0x1d8] ss:$8 sps:$4 sm:$0xff]  }
 0x720   : > { %6496 = vmatprep.subr.bf16.mxu0 %v12843_v61 }
 0x721   : > { %5124 = vmatpush1.bf16.msra.mxu1 %v10775_v8 }
 0x722   : > { %5125 = vmatprep.subr.bf16.mxu1 %v10780_v52  ;;  %v10810_v52 = vld [vmem:[%s14091_s5] ss:$8 sps:$4 sm:$0xff]  }
 0x723   : > { %6497 = vmatpush1.bf16.msra.mxu0 %v12845_v15 }
 0x724   : > { %10015 = vmatprep.subr.bf16.mxu0 %v12815_v60 }
 0x725   : > { %5126 = vmatpush1.bf16.msra.mxu1 %v10778_v62  ;;  %v10815_v62 = vld [vmem:[%s14091_s5 + $0x14] ss:$8 sps:$4 sm:$0xff]  }
 0x726   : > { %9455 = vmatmul.mubr.msk.bf16.vlgmr.msra.gmra.mrb[76].mxu0 %vm4572_vm4, %v10750_v6  ;;  %5127 = vmatprep.subr.bf16.mxu1 %v10783_v10  ;;  %v10818_v10 = vld [vmem:[%s14091_s5 + $0x24] ss:$8 sps:$4 sm:$0xff]  }
 0x727   : > { %10016 = vmatpush3.bf16.msra.mxu0 %v12815_v60  ;;  %6534 = vmatprep.mubr.bf16.mxu0 %v11176_v0  ;;  %v10789_v60 = vld [vmem:[%s14091_s5 + $0x1fc] ss:$8 sps:$4 sm:$0xff]  }
 0x728   : > { %10017 = vmatprep.subr.bf16.mxu0 %v12837_v53 }
 0x729   : > { %5128 = vmatpush1.bf16.msra.mxu1 %v10781_v28  ;;  %v10816_v28 = vld [vmem:[%s14091_s5 + $0x20] ss:$8 sps:$4 sm:$0xff]  }
 0x72a   : > { %5129 = vmatprep.subr.bf16.mxu1 %v10786_v16 }
 0x72b   : > { %10018 = vmatpush3.bf16.msra.mxu0 %v12837_v53 }
 0x72c   : > { %10019 = vmatprep.subr.bf16.mxu0 %v12847_v1 }
 0x72d   : > { %5130 = vmatpush1.bf16.msra.mxu1 %v10784_v44 }
 0x72e   : > { %5131 = vmatprep.subr.bf16.mxu1 %v10789_v60  ;;  %9456 = vmatmul.mubr.msk.bf16.gmra.mrb[80].mxu0 %vm4572_vm4, %v10881_v45  ;;  %v10821_v60 = vld [vmem:[%s14091_s5 + $0x34] ss:$8 sps:$4 sm:$0xff]  }
 0x72f   : > { %10020 = vmatpush3.bf16.msra.mxu0 %v12847_v1  ;;  %10021 = vmatprep.mubr.msk.bf16.mxu0 %vm4572_vm4, %v10750_v6  ;;  %v10813_v6 = vld [vmem:[%s14091_s5 + $0x10] ss:$8 sps:$4 sm:$0xff]  }
 0x731   : > { %5132 = vmatpush1.bf16.msra.mxu1 %v10787_v57 }
 0x732   : > { %5133 = vmatprep.subr.bf16.mxu1 %v10792_v47 }
 0x735   : > { %5134 = vmatpush1.bf16.msra.mxu1 %v10790_v17 }
 0x736   : > { %5135 = vmatprep.subr.bf16.mxu1 %v10795_v48  ;;  %10022 = vmatmul.mubr.msk.bf16.vlgmr.msra.gmra.mrb[84].mxu0 %vm4572_vm4, %v10881_v45  ;;  %v10819_v48 = vld [vmem:[%s14091_s5 + $0x30] ss:$8 sps:$4 sm:$0xff]   ;;  %v10827_v45 = vld [vmem:[%s14091_s5 + $0x54] ss:$8 sps:$4 sm:$0xff]  }
 0x737   : > { %7024 = vmatprep.mubr.bf16.mxu0 %v11176_v0 }
 0x739   : > { %5136 = vmatpush1.bf16.msra.mxu1 %v10793_v19 }
 0x73a   : > { %5137 = vmatprep.subr.bf16.mxu1 %v10798_v50  ;;  %v10824_v50 = vld [vmem:[%s14091_s5 + $0x44] ss:$8 sps:$4 sm:$0xff]  }
 0x73d   : > { %5138 = vmatpush1.bf16.msra.mxu1 %v10796_v21 }
 0x73e   : > { %5158 = vmatprep.subr.bf16.mxu1 %v10801_v46  ;;  %v10822_v46 = vld [vmem:[%s14091_s5 + $0x40] ss:$8 sps:$4 sm:$0xff]  }
 0x7b3   : > { %v13050_v5 = vpop.f32.mrb[156].mxu1 }
 0x7b4   : > { %v13052_v41 = vpop.f32.mrb[157].mxu1 }
 0x7b5   : > { %v13057_v23 = vpop.f32.mrb[158].mxu1  ;;  %v13059_v12 = vpop.f32.mrb[48].mxu0 }
 0x7b6   : > { %v4691_v35 = vpack.c.bf16 %v13057_v23, %v13050_v5  ;;  %v13063_v53 = vpop.f32.mrb[159].mxu1  ;;  %v13065_v54 = vpop.f32.mrb[49].mxu0  ;;  %v10864_v5 = vld [vmem:[%s14091_s5 + $0x120] ss:$8 sps:$4 sm:$0xff]  }
 0x7b7   : > { %v4692_v55 = vpack.c.bf16 %v13063_v53, %v13052_v41  ;;  %v9984_v9 = vpop.f32.mrb[50].mxu0 }
 0x7b8   : > { %v13071_v40 = vpop.f32.mrb[51].mxu0 }
 0x7b9   : > { %v4693_v58 = vpack.c.bf16 %v13071_v40, %v13065_v54  ;;  %v4696_v40 = vpack.c.bf16 %v13059_v12, %v13059_v12 }
 0x7bb   : > { %v13075_v56 = vpop.f32.mrb[160].mxu1 }
 0x7bc   : > { %v13077_v20 = vpop.f32.mrb[161].mxu1  ;;  %v4694_v23 = vpack.c.bf16 %v13075_v56, %v13075_v56  ;;  %v10869_v56 = vld [vmem:[%s14091_s5 + $0x270] ss:$8 sps:$4 sm:$0xff]  }
 0x7bd   : > { %v4640_v61 = vpop.f32.mrb[162].mxu1 }
 0x7be   : > { %v4641_v49 = vpop.f32.mrb[163].mxu1  ;;  %v10830_v61 = vld [vmem:[%s14091_s5 + $0x64] ss:$8 sps:$4 sm:$0xff]  }
 0x7c1   : > { %v13122_v16 = vpop.f32.mrb[52].mxu0 }
 0x7c2   : > { %v13127_v57 = vpop.f32.mrb[53].mxu0 }
 0x7c3   : > { %v4788_v15 = vpop.f32.mrb[164].mxu1  ;;  %v13129_v17 = vpop.f32.mrb[54].mxu0 }
 0x7c4   : > { %v4790_v1 = vpop.f32.mrb[165].mxu1  ;;  %v5635_v47 = vpack.c.bf16 %v13129_v17, %v13122_v16  ;;  %v13140_v19 = vpop.f32.mrb[55].mxu0  ;;  %v10924_v16 = vld [vmem:[%s14091_s5 + $0x390] ss:$8 sps:$4 sm:$0xff]  }
 0x7c5   : > { %v4792_v24 = vpop.f32.mrb[166].mxu1  ;;  %v5636_v21 = vpack.c.bf16 %v13140_v19, %v13127_v57  ;;  %v10887_v57 = vld [vmem:[%s14091_s5 + $0x2c4] ss:$8 sps:$4 sm:$0xff]  }
 0x7c6   : > { %v4853_v29 = vpack.c.bf16 %v4792_v24, %v4788_v15  ;;  %v4794_v25 = vpop.f32.mrb[167].mxu1  ;;  %v10828_v15 = vld [vmem:[%s14091_s5 + $0x60] ss:$8 sps:$4 sm:$0xff]   ;;  %v10833_v24 = vld [vmem:[%s14091_s5 + $0x74] ss:$8 sps:$4 sm:$0xff]  }
 0x7c7   : > { %v4854_v43 = vpack.c.bf16 %v4794_v25, %v4790_v1  ;;  %v10831_v25 = vld [vmem:[%s14091_s5 + $0x70] ss:$8 sps:$4 sm:$0xff]  }
 0x7c9   : > { %5139 = vmatprep.mubr.bf16.mxu1 %v4854_v43  ;;  %v13150_v41 = vpop.f32.mrb[56].mxu0 }
 0x7ca   : > { %5140 = vmatmul.mubr.bf16.vlgmr.msra.gmra.mrb[176].mxu1 %v4853_v29  ;;  %v13155_v53 = vpop.f32.mrb[57].mxu0  ;;  %v5638_v17 = vpack.c.bf16 %v13150_v41, %v13150_v41  ;;  %v10929_v41 = vld [vmem:[%s14091_s5 + $0x3a8] ss:$8 sps:$4 sm:$0xff]  }
 0x7cb   : > { %5159 = vmatpush1.bf16.msra.mxu1 %v10799_v26  ;;  %v4798_v59 = vpop.f32.mrb[168].mxu1  ;;  %v5584_v9 = vpop.f32.mrb[58].mxu0  ;;  %v10836_v26 = vld [vmem:[%s14091_s5 + $0x84] ss:$8 sps:$4 sm:$0xff]  }
 0x7cc   : > { %v4800_v31 = vpop.f32.mrb[169].mxu1  ;;  %5160 = vmatprep.subr.bf16.mxu1 %v10804_v18  ;;  %v4856_v11 = vpack.c.bf16 %v4798_v59, %v4798_v59  ;;  %v5585_v49 = vpop.f32.mrb[59].mxu0 }
 0x7cd   : > { %v4857_v39 = vpack.c.bf16 %v4800_v31, %v4800_v31  ;;  %v4802_v63 = vpop.f32.mrb[170].mxu1  ;;  %v10839_v31 = vld [vmem:[%s14091_s5 + $0x94] ss:$8 sps:$4 sm:$0xff]  }
 0x7ce   : > { %v4803_v37 = vpop.f32.mrb[171].mxu1  ;;  %v10840_v63 = vld [vmem:[%s14091_s5 + $0xa0] ss:$8 sps:$4 sm:$0xff]   ;;  %v10884_v49 = vld [vmem:[%s14091_s5 + $0x2b4] ss:$8 sps:$4 sm:$0xff]  }
 0x7cf   : > { %5161 = vmatpush1.bf16.msra.mxu1 %v10802_v30  ;;  %5149 = vmatprep.mubr.bf16.mxu1 %v4857_v39  ;;  %v10834_v30 = vld [vmem:[%s14091_s5 + $0x80] ss:$8 sps:$4 sm:$0xff]   ;;  %v10842_v39 = vld [vmem:[%s14091_s5 + $0xa4] ss:$8 sps:$4 sm:$0xff]   ;;  %v10843_v37 = vld [vmem:[%s14091_s5 + $0xb0] ss:$8 sps:$4 sm:$0xff]  }
 0x7d0   : > { %5162 = vmatprep.subr.bf16.mxu1 %v10807_v36  ;;  %v10837_v36 = vld [vmem:[%s14091_s5 + $0x90] ss:$8 sps:$4 sm:$0xff]  }
 0x7d1   : > { %v13166_v1 = vpop.f32.mrb[60].mxu0 }
 0x7d2   : > { %5150 = vmatmul.mubr.bf16.gmra.mrb[180].mxu1 %v4856_v11  ;;  %v13171_v29 = vpop.f32.mrb[61].mxu0  ;;  %v10846_v11 = vld [vmem:[%s14091_s5 + $0xc0] ss:$8 sps:$4 sm:$0xff]  }
 0x7d3   : > { %5163 = vmatpush1.bf16.msra.mxu1 %v10805_v7  ;;  %v9993_v38 = vpop.f32.mrb[172].mxu1  ;;  %5190 = vmatprep.mubr.bf16.mxu1 %v11176_v0  ;;  %v10004_v43 = vpop.f32.mrb[62].mxu0  ;;  %v10848_v7 = vld [vmem:[%s14091_s5 + $0xc4] ss:$8 sps:$4 sm:$0xff]  }
 0x7d4   : > { %v4839_v22 = vpop.f32.mrb[173].mxu1  ;;  %9222 = vmatprep.subr.msk.bf16.mxu1 %vm4580_vm6, %v9221_v13  ;;  %v4858_v44 = vpack.c.bf16 %v9993_v38, %v9993_v38  ;;  %v13179_v18 = vpop.f32.mrb[63].mxu0  ;;  %v10851_v13 = vld [vmem:[%s14091_s5 + $0xd4] ss:$8 sps:$4 sm:$0xff]   ;;  %v10854_v38 = vld [vmem:[%s14091_s5 + $0xe4] ss:$8 sps:$4 sm:$0xff]  }
 0x7d5   : > { %v9994_v2 = vpop.f32.mrb[174].mxu1  ;;  %v5637_v59 = vpack.c.bf16 %v13179_v18, %v13171_v29  ;;  %v5640_v18 = vpack.c.bf16 %v13166_v1, %v13166_v1  ;;  %v10938_v1 = vld [vmem:[%s14091_s5 + $0x3d8] ss:$8 sps:$4 sm:$0xff]  }
 0x7d6   : > { %v4842_v3 = vpop.f32.mrb[175].mxu1  ;;  %v10860_v2 = vld [vmem:[%s14091_s5 + $0x104] ss:$8 sps:$4 sm:$0xff]  }
 0x7d7   : > { %v4855_v8 = vpack.c.bf16 %v4842_v3, %v4839_v22  ;;  %5165 = vmatpush1.bf16.msra.mxu1 %v5102_v27  ;;  %v10852_v22 = vld [vmem:[%s14091_s5 + $0xe0] ss:$8 sps:$4 sm:$0xff]   ;;  %v10857_v27 = vld [vmem:[%s14091_s5 + $0xf4] ss:$8 sps:$4 sm:$0xff]  }
 0x7d8   : > { %5416 = vmatprep.subr.bf16.mxu1 %v10812_v32  ;;  %v10855_v32 = vld [vmem:[%s14091_s5 + $0xf0] ss:$8 sps:$4 sm:$0xff]   ;;  %v10858_v3 = vld [vmem:[%s14091_s5 + $0x100] ss:$8 sps:$4 sm:$0xff]  }
 0x7da   : > { %9223 = vmatmul.mubr.msk.bf16.vlgmr.msra.gmra.mrb[176].mxu1 %vm5094_vm7, %v4855_v8  ;;  %v10863_v8 = vld [vmem:[%s14091_s5 + $0x114] ss:$8 sps:$4 sm:$0xff]  }
 0x7db   : > { %5417 = vmatpush1.bf16.msra.mxu1 %v10810_v52  ;;  %5200 = vmatprep.mubr.bf16.mxu1 %v11176_v0  ;;  %v4695_v52 = vpack.c.bf16 %v13077_v20, %v13077_v20 }
 0x7dc   : > { %5418 = vmatprep.subr.bf16.mxu1 %v10815_v62  ;;  %v10861_v62 = vld [vmem:[%s14091_s5 + $0x110] ss:$8 sps:$4 sm:$0xff]  }
 0x7dd   : > { %v13282_v54 = vpop.f32.mrb[64].mxu0 }
 0x7df   : > { %5419 = vmatpush1.bf16.msra.mxu1 %v10813_v6  ;;  %v10866_v6 = vld [vmem:[%s14091_s5 + $0x124] ss:$8 sps:$4 sm:$0xff]  }
 0x7e0   : > { %5420 = vmatprep.subr.bf16.mxu1 %v10818_v10  ;;  %v4735_v10 = vld [vmem:[%s14091_s5 + $0x130] sm:$0xff] }
 0x7e1   : > { %v9263_v20 = vcombine.low %v4735_v10, %v4735_v10 }
 0x7e2   : > { %9224 = vmatmul.mubr.msk.bf16.gmra.mrb[184].mxu1 %vm5094_vm7, %v4858_v44  ;;  %v10871_v44 = vld [vmem:[%s14091_s5 + $0x274] ss:$8 sps:$4 sm:$0xff]  }
 0x7e3   : > { %5421 = vmatpush1.bf16.msra.mxu1 %v10816_v28  ;;  %5448 = vmatprep.mubr.bf16.mxu1 %v4692_v55  ;;  %v10825_v55 = vld [vmem:[%s14091_s5 + $0x50] ss:$8 sps:$4 sm:$0xff]   ;;  %v5411_v28 = vsel %vm4580_vm6, %v9263_v20, 0  ;;  %v10920_v20 = vld [vmem:[%s14091_s5 + $0x374] ss:$8 sps:$4 sm:$0xff]  }
 0x7e4   : > { %5422 = vmatprep.subr.bf16.mxu1 %v10821_v60  ;;  %v10874_v60 = vld [vmem:[%s14091_s5 + $0x284] ss:$8 sps:$4 sm:$0xff]  }
 0x7e7   : > { %5423 = vmatpush1.bf16.msra.mxu1 %v10819_v48  ;;  %v10872_v48 = vld [vmem:[%s14091_s5 + $0x280] ss:$8 sps:$4 sm:$0xff]  }
 0x7e8   : > { %5424 = vmatprep.subr.bf16.mxu1 %v10824_v50  ;;  %v10877_v50 = vld [vmem:[%s14091_s5 + $0x294] ss:$8 sps:$4 sm:$0xff]  }
 0x7eb   : > { %5425 = vmatpush1.bf16.msra.mxu1 %v10822_v46  ;;  %v10875_v46 = vld [vmem:[%s14091_s5 + $0x290] ss:$8 sps:$4 sm:$0xff]  }
 0x7ec   : > { %5426 = vmatprep.subr.bf16.mxu1 %v10827_v45  ;;  %v13289_v45 = vpop.f32.mrb[65].mxu0 }
 0x7ef   : > { %5427 = vmatpush1.bf16.msra.mxu1 %v10825_v55  ;;  %v13291_v55 = vpop.f32.mrb[66].mxu0 }
 0x7f0   : > { %5428 = vmatprep.subr.bf16.mxu1 %v10830_v61  ;;  %v6113_v9 = vpack.c.bf16 %v13291_v55, %v13282_v54  ;;  %v10878_v61 = vld [vmem:[%s14091_s5 + $0x2a0] ss:$8 sps:$4 sm:$0xff]   ;;  %v13302_v12 = vpop.f32.mrb[67].mxu0 }
 0x7f1   : > { %v13315_v19 = vpop.f32.mrb[68].mxu0  ;;  %v10983_v54 = vld [vmem:[%s14091_s5 + $0x4c8] ss:$8 sps:$4 sm:$0xff]  }
 0x7f2   : > { %v6116_v55 = vpack.c.bf16 %v13315_v19, %v13315_v19  ;;  %v10988_v19 = vld [vmem:[%s14091_s5 + $0x4e0] ss:$8 sps:$4 sm:$0xff]  }
 0x7f3   : > { %5429 = vmatpush1.bf16.msra.mxu1 %v10828_v15  ;;  %v6114_v15 = vpack.c.bf16 %v13302_v12, %v13289_v45 }
 0x7f4   : > { %5430 = vmatprep.subr.bf16.mxu1 %v10833_v24  ;;  %v10882_v24 = vld [vmem:[%s14091_s5 + $0x2b0] ss:$8 sps:$4 sm:$0xff]  }
 0x7f7   : > { %5431 = vmatpush1.bf16.msra.mxu1 %v10831_v25  ;;  %v10885_v25 = vld [vmem:[%s14091_s5 + $0x2c0] ss:$8 sps:$4 sm:$0xff]  }
 0x7f8   : > { %5432 = vmatprep.subr.bf16.mxu1 %v10836_v26  ;;  %v10890_v26 = vld [vmem:[%s14091_s5 + $0x2d4] ss:$8 sps:$4 sm:$0xff]  }
 0x7fb   : > { %5433 = vmatpush1.bf16.msra.mxu1 %v10834_v30 }
 0x7fc   : > { %5434 = vmatprep.subr.bf16.mxu1 %v10839_v31  ;;  %v10888_v31 = vld [vmem:[%s14091_s5 + $0x2d0] ss:$8 sps:$4 sm:$0xff]  }
 0x7ff   : > { %5435 = vmatpush1.bf16.msra.mxu1 %v10837_v36 }
 0x800   : > { %5436 = vmatprep.subr.bf16.mxu1 %v10842_v39  ;;  %v10893_v39 = vld [vmem:[%s14091_s5 + $0x2e4] ss:$8 sps:$4 sm:$0xff]  }
 0x803   : > { %5437 = vmatpush1.bf16.msra.mxu1 %v10840_v63 }
 0x804   : > { %5438 = vmatprep.subr.bf16.mxu1 %v10845_v51  ;;  %v10891_v51 = vld [vmem:[%s14091_s5 + $0x2e0] ss:$8 sps:$4 sm:$0xff]  }
 0x807   : > { %5439 = vmatpush1.bf16.msra.mxu1 %v10843_v37 }
 0x808   : > { %5440 = vmatprep.subr.bf16.mxu1 %v10848_v7  ;;  %v10896_v7 = vld [vmem:[%s14091_s5 + $0x2f4] ss:$8 sps:$4 sm:$0xff]  }
 0x80b   : > { %5441 = vmatpush1.bf16.msra.mxu1 %v10846_v11 }
 0x80c   : > { %5442 = vmatprep.subr.bf16.mxu1 %v10851_v13 }
 0x80f   : > { %5443 = vmatpush1.bf16.msra.mxu1 %v10849_v14  ;;  %v10894_v14 = vld [vmem:[%s14091_s5 + $0x2f0] ss:$8 sps:$4 sm:$0xff]  }
 0x810   : > { %5444 = vmatprep.subr.bf16.mxu1 %v10854_v38  ;;  %v10899_v38 = vld [vmem:[%s14091_s5 + $0x304] ss:$8 sps:$4 sm:$0xff]  }
 0x813   : > { %5445 = vmatpush1.bf16.msra.mxu1 %v10852_v22  ;;  %v10897_v22 = vld [vmem:[%s14091_s5 + $0x300] ss:$8 sps:$4 sm:$0xff]  }
 0x814   : > { %5446 = vmatprep.subr.bf16.mxu1 %v10857_v27  ;;  %v10902_v27 = vld [vmem:[%s14091_s5 + $0x314] ss:$8 sps:$4 sm:$0xff]  }
 0x817   : > { %5447 = vmatpush1.bf16.msra.mxu1 %v10855_v32  ;;  %v10900_v32 = vld [vmem:[%s14091_s5 + $0x310] ss:$8 sps:$4 sm:$0xff]  }
 0x818   : > { %5467 = vmatprep.subr.bf16.mxu1 %v10860_v2  ;;  %v10905_v2 = vld [vmem:[%s14091_s5 + $0x324] ss:$8 sps:$4 sm:$0xff]  }
 0x81a   : > { %5449 = vmatmul.mubr.bf16.vlgmr.msra.gmra.mrb[176].mxu1 %v4691_v35  ;;  %v9264_v35 = vcombine.high %v4735_v10, %v4735_v10  ;;  %v10914_v10 = vld [vmem:[%s14091_s5 + $0x354] ss:$8 sps:$4 sm:$0xff]  }
 0x81b   : > { %5458 = vmatprep.mubr.bf16.mxu1 %v4695_v52  ;;  %5468 = vmatpush1.bf16.msra.mxu1 %v10858_v3  ;;  %v10903_v3 = vld [vmem:[%s14091_s5 + $0x320] ss:$8 sps:$4 sm:$0xff]   ;;  %v10906_v52 = vld [vmem:[%s14091_s5 + $0x330] ss:$8 sps:$4 sm:$0xff]  }
 0x81c   : > { %5469 = vmatprep.subr.bf16.mxu1 %v10863_v8  ;;  %v10908_v8 = vld [vmem:[%s14091_s5 + $0x334] ss:$8 sps:$4 sm:$0xff]  }
 0x81f   : > { %5470 = vmatpush1.bf16.msra.mxu1 %v10861_v62  ;;  %v10911_v62 = vld [vmem:[%s14091_s5 + $0x344] ss:$8 sps:$4 sm:$0xff]  }
 0x820   : > { %5471 = vmatprep.subr.bf16.mxu1 %v10866_v6  ;;  %v10909_v6 = vld [vmem:[%s14091_s5 + $0x340] ss:$8 sps:$4 sm:$0xff]  }
 0x822   : > { %5459 = vmatmul.mubr.bf16.gmra.mrb[188].mxu1 %v4694_v23  ;;  %v10917_v23 = vld [vmem:[%s14091_s5 + $0x364] ss:$8 sps:$4 sm:$0xff]  }
 0x823   : > { %5472 = vmatpush1.bf16.msra.mxu1 %v10864_v5  ;;  %5499 = vmatprep.mubr.bf16.mxu1 %v11176_v0  ;;  %v10912_v5 = vld [vmem:[%s14091_s5 + $0x350] ss:$8 sps:$4 sm:$0xff]  }
 0x824   : > { %9265 = vmatprep.subr.msk.bf16.mxu1 %vm4580_vm6, %v9264_v35  ;;  %v10915_v35 = vld [vmem:[%s14091_s5 + $0x360] ss:$8 sps:$4 sm:$0xff]  }
 0x827   : > { %5474 = vmatpush1.bf16.msra.mxu1 %v5411_v28  ;;  %v10918_v28 = vld [vmem:[%s14091_s5 + $0x370] ss:$8 sps:$4 sm:$0xff]  }
 0x828   : > { %5888 = vmatprep.subr.bf16.mxu1 %v10871_v44  ;;  %v5639_v44 = vpack.c.bf16 %v13155_v53, %v13155_v53  ;;  %v10926_v53 = vld [vmem:[%s14091_s5 + $0x394] ss:$8 sps:$4 sm:$0xff]  }
 0x82a   : > { %9266 = vmatmul.mubr.msk.bf16.vlgmr.msra.gmra.mrb[176].mxu1 %vm5094_vm7, %v4693_v58  ;;  %v10880_v58 = vld [vmem:[%s14091_s5 + $0x2a4] ss:$8 sps:$4 sm:$0xff]  }
 0x82b   : > { %5889 = vmatpush1.bf16.msra.mxu1 %v10869_v56  ;;  %5509 = vmatprep.mubr.bf16.mxu1 %v11176_v0  ;;  %v10923_v56 = vld [vmem:[%s14091_s5 + $0x384] ss:$8 sps:$4 sm:$0xff]  }
 0x82c   : > { %5890 = vmatprep.subr.bf16.mxu1 %v10874_v60  ;;  %v10921_v60 = vld [vmem:[%s14091_s5 + $0x380] ss:$8 sps:$4 sm:$0xff]  }
 0x82f   : > { %5891 = vmatpush1.bf16.msra.mxu1 %v10872_v48  ;;  %v9315_v48 = vld [vmem:[%s14091_s5 + $0x3a0] sm:$0xff] }
 0x830   : > { %5892 = vmatprep.subr.bf16.mxu1 %v10877_v50  ;;  %v9354_v50 = vcombine.low %v9315_v48, %v9315_v48 }
 0x832   : > { %9267 = vmatmul.mubr.msk.bf16.gmra.mrb[192].mxu1 %vm5094_vm7, %v4696_v40  ;;  %v10931_v40 = vld [vmem:[%s14091_s5 + $0x3ac] ss:$8 sps:$4 sm:$0xff]  }
 0x833   : > { %5893 = vmatpush1.bf16.msra.mxu1 %v10875_v46  ;;  %5920 = vmatprep.mubr.bf16.mxu1 %v5636_v21  ;;  %v13317_v21 = vpop.f32.mrb[69].mxu0  ;;  %v5883_v46 = vsel %vm4580_vm6, %v9354_v50, 0  ;;  %v10973_v50 = vld [vmem:[%s14091_s5 + $0x48c] ss:$8 sps:$4 sm:$0xff]  }
 0x834   : > { %5894 = vmatprep.subr.bf16.mxu1 %v10880_v58  ;;  %v6062_v43 = vpop.f32.mrb[70].mxu0  ;;  %v10934_v58 = vld [vmem:[%s14091_s5 + $0x3bc] ss:$8 sps:$4 sm:$0xff]  }
 0x835   : > { %v6063_v30 = vpop.f32.mrb[71].mxu0 }
 0x836   : > { %v13328_v36 = vpop.f32.mrb[72].mxu0 }
 0x837   : > { %5895 = vmatpush1.bf16.msra.mxu1 %v10878_v61  ;;  %v13333_v63 = vpop.f32.mrb[73].mxu0  ;;  %v10932_v61 = vld [vmem:[%s14091_s5 + $0x3b8] ss:$8 sps:$4 sm:$0xff]  }
 0x838   : > { %5896 = vmatprep.subr.bf16.mxu1 %v10884_v49  ;;  %v10014_v37 = vpop.f32.mrb[74].mxu0  ;;  %v10937_v49 = vld [vmem:[%s14091_s5 + $0x3cc] ss:$8 sps:$4 sm:$0xff]  }
 0x839   : > { %v13341_v11 = vpop.f32.mrb[75].mxu0 }
 0x83a   : > { %v6115_v13 = vpack.c.bf16 %v13341_v11, %v13333_v63  ;;  %v13444_v29 = vpop.f32.mrb[76].mxu0  ;;  %v6118_v63 = vpack.c.bf16 %v13328_v36, %v13328_v36  ;;  %v10999_v11 = vld [vmem:[%s14091_s5 + $0x514] ss:$8 sps:$4 sm:$0xff]   ;;  %v11002_v36 = vld [vmem:[%s14091_s5 + $0x524] ss:$8 sps:$4 sm:$0xff]  }
 0x83b   : > { %5897 = vmatpush1.bf16.msra.mxu1 %v10882_v24  ;;  %v10935_v24 = vld [vmem:[%s14091_s5 + $0x3c8] ss:$8 sps:$4 sm:$0xff]  }
 0x83c   : > { %5898 = vmatprep.subr.bf16.mxu1 %v10887_v57  ;;  %v13451_v57 = vpop.f32.mrb[77].mxu0 }
 0x83f   : > { %5899 = vmatpush1.bf16.msra.mxu1 %v10885_v25  ;;  %v13453_v25 = vpop.f32.mrb[78].mxu0 }
 0x840   : > { %5900 = vmatprep.subr.bf16.mxu1 %v10890_v26  ;;  %v6591_v43 = vpack.c.bf16 %v13453_v25, %v13444_v29  ;;  %v13458_v26 = vpop.f32.mrb[79].mxu0  ;;  %v11042_v29 = vld [vmem:[%s14091_s5 + $0x600] ss:$8 sps:$4 sm:$0xff]  }
 0x841   : > { %v6592_v30 = vpack.c.bf16 %v13458_v26, %v13451_v57  ;;  %v13477_v45 = vpop.f32.mrb[80].mxu0  ;;  %v11003_v57 = vld [vmem:[%s14091_s5 + $0x530] ss:$8 sps:$4 sm:$0xff]   ;;  %v11008_v26 = vld [vmem:[%s14091_s5 + $0x544] ss:$8 sps:$4 sm:$0xff]  }
 0x842   : > { %v13479_v12 = vpop.f32.mrb[81].mxu0  ;;  %v6594_v25 = vpack.c.bf16 %v13477_v45, %v13477_v45 }
 0x843   : > { %5901 = vmatpush1.bf16.msra.mxu1 %v10888_v31  ;;  %v10943_v31 = vld [vmem:[%s14091_s5 + $0x3ec] ss:$8 sps:$4 sm:$0xff]   ;;  %v6540_v37 = vpop.f32.mrb[82].mxu0 }
 0x844   : > { %5902 = vmatprep.subr.bf16.mxu1 %v10893_v39  ;;  %v10941_v39 = vld [vmem:[%s14091_s5 + $0x3e8] ss:$8 sps:$4 sm:$0xff]   ;;  %v9406_v37 = vld [vmem:[%s14091_s5 + $0x4d8] sm:$0xff] }
 0x847   : > { %5903 = vmatpush1.bf16.msra.mxu1 %v10891_v51  ;;  %v10946_v51 = vld [vmem:[%s14091_s5 + $0x3fc] ss:$8 sps:$4 sm:$0xff]  }
 0x848   : > { %5904 = vmatprep.subr.bf16.mxu1 %v10896_v7  ;;  %v10949_v7 = vld [vmem:[%s14091_s5 + $0x40c] ss:$8 sps:$4 sm:$0xff]  }
 0x84b   : > { %5905 = vmatpush1.bf16.msra.mxu1 %v10894_v14  ;;  %v6541_v14 = vpop.f32.mrb[83].mxu0 }
 0x84c   : > { %5906 = vmatprep.subr.bf16.mxu1 %v10899_v38  ;;  %v10947_v38 = vld [vmem:[%s14091_s5 + $0x408] ss:$8 sps:$4 sm:$0xff]  }
 0x84f   : > { %5907 = vmatpush1.bf16.msra.mxu1 %v10897_v22  ;;  %v10952_v22 = vld [vmem:[%s14091_s5 + $0x41c] ss:$8 sps:$4 sm:$0xff]  }
 0x850   : > { %5908 = vmatprep.subr.bf16.mxu1 %v10902_v27  ;;  %v13493_v27 = vpop.f32.mrb[84].mxu0 }
 0x851   : > { %v6596_v45 = vpack.c.bf16 %v13493_v27, %v13493_v27 }
 0x853   : > { %5909 = vmatpush1.bf16.msra.mxu1 %v10900_v32  ;;  %v13495_v32 = vpop.f32.mrb[85].mxu0 }
 0x854   : > { %5910 = vmatprep.subr.bf16.mxu1 %v10905_v2  ;;  %v10950_v2 = vld [vmem:[%s14091_s5 + $0x418] ss:$8 sps:$4 sm:$0xff]  }
 0x857   : > { %5911 = vmatpush1.bf16.msra.mxu1 %v10903_v3  ;;  %v10024_v3 = vpop.f32.mrb[86].mxu0 }
 0x858   : > { %5912 = vmatprep.subr.bf16.mxu1 %v10908_v8  ;;  %v10955_v8 = vld [vmem:[%s14091_s5 + $0x42c] ss:$8 sps:$4 sm:$0xff]  }
 0x859   : > { %v10996_v3 = vld [vmem:[%s14091_s5 + $0x504] ss:$8 sps:$4 sm:$0xff]  }
 0x85b   : > { %5913 = vmatpush1.bf16.msra.mxu1 %v10906_v52  ;;  %v13503_v52 = vpop.f32.mrb[87].mxu0 }
 0x85c   : > { %5914 = vmatprep.subr.bf16.mxu1 %v10911_v62  ;;  %v6593_v62 = vpack.c.bf16 %v13503_v52, %v13495_v32 }
 0x85f   : > { %5915 = vmatpush1.bf16.msra.mxu1 %v10909_v6  ;;  %v10953_v6 = vld [vmem:[%s14091_s5 + $0x428] ss:$8 sps:$4 sm:$0xff]  }
 0x860   : > { %5916 = vmatprep.subr.bf16.mxu1 %v10914_v10  ;;  %v10958_v10 = vld [vmem:[%s14091_s5 + $0x43c] ss:$8 sps:$4 sm:$0xff]  }
 0x863   : > { %5917 = vmatpush1.bf16.msra.mxu1 %v10912_v5  ;;  %v10956_v5 = vld [vmem:[%s14091_s5 + $0x438] ss:$8 sps:$4 sm:$0xff]  }
 0x864   : > { %5918 = vmatprep.subr.bf16.mxu1 %v10917_v23  ;;  %v10961_v23 = vld [vmem:[%s14091_s5 + $0x44c] ss:$8 sps:$4 sm:$0xff]  }
 0x867   : > { %5919 = vmatpush1.bf16.msra.mxu1 %v10915_v35  ;;  %v10959_v35 = vld [vmem:[%s14091_s5 + $0x448] ss:$8 sps:$4 sm:$0xff]  }
 0x868   : > { %5939 = vmatprep.subr.bf16.mxu1 %v10920_v20  ;;  %v10964_v20 = vld [vmem:[%s14091_s5 + $0x45c] ss:$8 sps:$4 sm:$0xff]  }
 0x86a   : > { %5921 = vmatmul.mubr.bf16.vlgmr.msra.gmra.mrb[176].mxu1 %v5635_v47  ;;  %v9355_v47 = vcombine.high %v9315_v48, %v9315_v48  ;;  %v10965_v48 = vld [vmem:[%s14091_s5 + $0x468] ss:$8 sps:$4 sm:$0xff]  }
 0x86b   : > { %5940 = vmatpush1.bf16.msra.mxu1 %v10918_v28  ;;  %5930 = vmatprep.mubr.bf16.mxu1 %v5639_v44  ;;  %v10962_v28 = vld [vmem:[%s14091_s5 + $0x458] ss:$8 sps:$4 sm:$0xff]   ;;  %v10967_v44 = vld [vmem:[%s14091_s5 + $0x46c] ss:$8 sps:$4 sm:$0xff]  }
 0x86c   : > { %5941 = vmatprep.subr.bf16.mxu1 %v10923_v56 }
 0x86f   : > { %5942 = vmatpush1.bf16.msra.mxu1 %v10921_v60 }
 0x870   : > { %5943 = vmatprep.subr.bf16.mxu1 %v10926_v53 }
 0x872   : > { %5931 = vmatmul.mubr.bf16.gmra.mrb[196].mxu1 %v5638_v17  ;;  %v10970_v17 = vld [vmem:[%s14091_s5 + $0x47c] ss:$8 sps:$4 sm:$0xff]  }
 0x873   : > { %5944 = vmatpush1.bf16.msra.mxu1 %v10924_v16  ;;  %5971 = vmatprep.mubr.bf16.mxu1 %v11176_v0 }
 0x874   : > { %9356 = vmatprep.subr.msk.bf16.mxu1 %vm4580_vm6, %v9355_v47  ;;  %v10968_v47 = vld [vmem:[%s14091_s5 + $0x478] ss:$8 sps:$4 sm:$0xff]  }
 0x877   : > { %5946 = vmatpush1.bf16.msra.mxu1 %v5883_v46  ;;  %v10971_v46 = vld [vmem:[%s14091_s5 + $0x488] ss:$8 sps:$4 sm:$0xff]  }
 0x878   : > { %6366 = vmatprep.subr.bf16.mxu1 %v10931_v40  ;;  %v10976_v40 = vld [vmem:[%s14091_s5 + $0x49c] ss:$8 sps:$4 sm:$0xff]  }
 0x87a   : > { %9357 = vmatmul.mubr.msk.bf16.vlgmr.msra.gmra.mrb[176].mxu1 %vm5094_vm7, %v5637_v59  ;;  %v10940_v59 = vld [vmem:[%s14091_s5 + $0x3dc] ss:$8 sps:$4 sm:$0xff]  }
 0x87b   : > { %6367 = vmatpush1.bf16.msra.mxu1 %v10929_v41  ;;  %5981 = vmatprep.mubr.bf16.mxu1 %v11176_v0  ;;  %v10974_v41 = vld [vmem:[%s14091_s5 + $0x498] ss:$8 sps:$4 sm:$0xff]  }
 0x87c   : > { %6368 = vmatprep.subr.bf16.mxu1 %v10934_v58  ;;  %v10979_v58 = vld [vmem:[%s14091_s5 + $0x4ac] ss:$8 sps:$4 sm:$0xff]  }
 0x87f   : > { %6369 = vmatpush1.bf16.msra.mxu1 %v10932_v61 }
 0x880   : > { %6370 = vmatprep.subr.bf16.mxu1 %v10937_v49 }
 0x882   : > { %9358 = vmatmul.mubr.msk.bf16.gmra.mrb[200].mxu1 %vm5094_vm7, %v5640_v18 }
 0x883   : > { %6371 = vmatpush1.bf16.msra.mxu1 %v10935_v24  ;;  %6398 = vmatprep.mubr.bf16.mxu1 %v6114_v15  ;;  %v10944_v15 = vld [vmem:[%s14091_s5 + $0x3f8] ss:$8 sps:$4 sm:$0xff]  }
 0x884   : > { %6372 = vmatprep.subr.bf16.mxu1 %v10940_v59 }
 0x887   : > { %6373 = vmatpush1.bf16.msra.mxu1 %v10938_v1  ;;  %v10977_v1 = vld [vmem:[%s14091_s5 + $0x4a8] ss:$8 sps:$4 sm:$0xff]  }
 0x888   : > { %6374 = vmatprep.subr.bf16.mxu1 %v10943_v31  ;;  %v6117_v31 = vpack.c.bf16 %v13317_v21, %v13317_v21  ;;  %v10985_v21 = vld [vmem:[%s14091_s5 + $0x4cc] ss:$8 sps:$4 sm:$0xff]  }
 0x88b   : > { %6375 = vmatpush1.bf16.msra.mxu1 %v10941_v39 }
 0x88c   : > { %6376 = vmatprep.subr.bf16.mxu1 %v10946_v51  ;;  %v10982_v51 = vld [vmem:[%s14091_s5 + $0x4bc] ss:$8 sps:$4 sm:$0xff]  }
 0x88f   : > { %6377 = vmatpush1.bf16.msra.mxu1 %v10944_v15  ;;  %v10980_v15 = vld [vmem:[%s14091_s5 + $0x4b8] ss:$8 sps:$4 sm:$0xff]  }
 0x890   : > { %6378 = vmatprep.subr.bf16.mxu1 %v10949_v7  ;;  %v9445_v7 = vcombine.low %v9406_v37, %v9406_v37 }
 0x892   : > { %v6361_v14 = vsel %vm4580_vm6, %v9445_v7, 0  ;;  %v11041_v7 = vld [vmem:[%s14091_s5 + $0x5f4] ss:$8 sps:$4 sm:$0xff]  }
 0x893   : > { %6379 = vmatpush1.bf16.msra.mxu1 %v10947_v38  ;;  %v10990_v38 = vld [vmem:[%s14091_s5 + $0x4e4] ss:$8 sps:$4 sm:$0xff]  }
 0x894   : > { %6380 = vmatprep.subr.bf16.mxu1 %v10952_v22  ;;  %v10993_v22 = vld [vmem:[%s14091_s5 + $0x4f4] ss:$8 sps:$4 sm:$0xff]  }
 0x897   : > { %6381 = vmatpush1.bf16.msra.mxu1 %v10950_v2  ;;  %v10991_v2 = vld [vmem:[%s14091_s5 + $0x4f0] ss:$8 sps:$4 sm:$0xff]  }
 0x898   : > { %6382 = vmatprep.subr.bf16.mxu1 %v10955_v8  ;;  %v10994_v8 = vld [vmem:[%s14091_s5 + $0x500] ss:$8 sps:$4 sm:$0xff]  }
 0x89b   : > { %6383 = vmatpush1.bf16.msra.mxu1 %v10953_v6  ;;  %v11000_v6 = vld [vmem:[%s14091_s5 + $0x520] ss:$8 sps:$4 sm:$0xff]  }
 0x89c   : > { %6384 = vmatprep.subr.bf16.mxu1 %v10958_v10  ;;  %v11005_v10 = vld [vmem:[%s14091_s5 + $0x534] ss:$8 sps:$4 sm:$0xff]  }
 0x89f   : > { %6385 = vmatpush1.bf16.msra.mxu1 %v10956_v5  ;;  %v11011_v5 = vld [vmem:[%s14091_s5 + $0x554] ss:$8 sps:$4 sm:$0xff]  }
 0x8a0   : > { %6386 = vmatprep.subr.bf16.mxu1 %v10961_v23  ;;  %v11009_v23 = vld [vmem:[%s14091_s5 + $0x550] ss:$8 sps:$4 sm:$0xff]  }
 0x8a3   : > { %6387 = vmatpush1.bf16.msra.mxu1 %v10959_v35  ;;  %v11014_v35 = vld [vmem:[%s14091_s5 + $0x564] ss:$8 sps:$4 sm:$0xff]  }
 0x8a4   : > { %6388 = vmatprep.subr.bf16.mxu1 %v10964_v20  ;;  %v11012_v20 = vld [vmem:[%s14091_s5 + $0x560] ss:$8 sps:$4 sm:$0xff]  }
 0x8a5   : > { %v5151_v56 = vpop.f32.mrb[180].mxu1 }
 0x8a6   : > { %v5153_v60 = vpop.f32.mrb[181].mxu1 }
 0x8a7   : > { %6389 = vmatpush1.bf16.msra.mxu1 %v10962_v28  ;;  %v5155_v53 = vpop.f32.mrb[182].mxu1  ;;  %v11017_v28 = vld [vmem:[%s14091_s5 + $0x574] ss:$8 sps:$4 sm:$0xff]  }
 0x8a8   : > { %v5156_v16 = vpop.f32.mrb[183].mxu1  ;;  %6390 = vmatprep.subr.bf16.mxu1 %v10967_v44  ;;  %v11015_v44 = vld [vmem:[%s14091_s5 + $0x570] ss:$8 sps:$4 sm:$0xff]   ;;  %v11023_v53 = vld [vmem:[%s14091_s5 + $0x594] ss:$8 sps:$4 sm:$0xff]  }
 0x8a9   : > { %v11026_v16 = vld [vmem:[%s14091_s5 + $0x5a4] ss:$8 sps:$4 sm:$0xff]  }
 0x8ab   : > { %6391 = vmatpush1.bf16.msra.mxu1 %v10965_v48  ;;  %v11021_v48 = vld [vmem:[%s14091_s5 + $0x590] ss:$8 sps:$4 sm:$0xff]  }
 0x8ac   : > { %6392 = vmatprep.subr.bf16.mxu1 %v10970_v17 }
 0x8af   : > { %6393 = vmatpush1.bf16.msra.mxu1 %v10968_v47 }
 0x8b0   : > { %6394 = vmatprep.subr.bf16.mxu1 %v10973_v50 }
 0x8b3   : > { %6395 = vmatpush1.bf16.msra.mxu1 %v10971_v46 }
 0x8b4   : > { %6396 = vmatprep.subr.bf16.mxu1 %v10976_v40 }
 0x8b5   : > { %v5202_v61 = vpop.f32.mrb[184].mxu1 }
 0x8b6   : > { %v13555_v49 = vadd.f32 %v5202_v61, %v5151_v56  ;;  %v5204_v24 = vpop.f32.mrb[185].mxu1  ;;  %v11020_v56 = vld [vmem:[%s14091_s5 + $0x584] ss:$8 sps:$4 sm:$0xff]   ;;  %v11029_v61 = vld [vmem:[%s14091_s5 + $0x5b4] ss:$8 sps:$4 sm:$0xff]  }
 0x8b7   : > { %v13557_v18 = vadd.f32 %v5204_v24, %v5153_v60  ;;  %6397 = vmatpush1.bf16.msra.mxu1 %v10974_v41  ;;  %v5206_v59 = vpop.f32.mrb[186].mxu1  ;;  %v11018_v60 = vld [vmem:[%s14091_s5 + $0x580] ss:$8 sps:$4 sm:$0xff]   ;;  %v11032_v24 = vld [vmem:[%s14091_s5 + $0x5c4] ss:$8 sps:$4 sm:$0xff]  }
 0x8b8   : > { %v5207_v39 = vpop.f32.mrb[187].mxu1  ;;  %6417 = vmatprep.subr.bf16.mxu1 %v10979_v58  ;;  %v11024_v41 = vld [vmem:[%s14091_s5 + $0x5a0] ss:$8 sps:$4 sm:$0xff]   ;;  %v11035_v59 = vld [vmem:[%s14091_s5 + $0x5d4] ss:$8 sps:$4 sm:$0xff]  }
 0x8ba   : > { %6399 = vmatmul.mubr.bf16.vlgmr.msra.gmra.mrb[176].mxu1 %v6113_v9  ;;  %v9446_v9 = vcombine.high %v9406_v37, %v9406_v37 }
 0x8bb   : > { %6418 = vmatpush1.bf16.msra.mxu1 %v10977_v1  ;;  %6408 = vmatprep.mubr.bf16.mxu1 %v6117_v31  ;;  %v11033_v1 = vld [vmem:[%s14091_s5 + $0x5d0] ss:$8 sps:$4 sm:$0xff]   ;;  %v11038_v31 = vld [vmem:[%s14091_s5 + $0x5e4] ss:$8 sps:$4 sm:$0xff]  }
 0x8bc   : > { %6419 = vmatprep.subr.bf16.mxu1 %v10982_v51 }
 0x8bf   : > { %6420 = vmatpush1.bf16.msra.mxu1 %v10980_v15 }
 0x8c0   : > { %6421 = vmatprep.subr.bf16.mxu1 %v10985_v21 }
 0x8c2   : > { %6409 = vmatmul.mubr.bf16.gmra.mrb[204].mxu1 %v6116_v55  ;;  %v11036_v55 = vld [vmem:[%s14091_s5 + $0x5e0] ss:$8 sps:$4 sm:$0xff]  }
 0x8c3   : > { %6422 = vmatpush1.bf16.msra.mxu1 %v10983_v54  ;;  %6449 = vmatprep.mubr.bf16.mxu1 %v11176_v0  ;;  %v6595_v54 = vpack.c.bf16 %v13479_v12, %v13479_v12  ;;  %v11044_v12 = vld [vmem:[%s14091_s5 + $0x604] ss:$8 sps:$4 sm:$0xff]  }
 0x8c4   : > { %9447 = vmatprep.subr.msk.bf16.mxu1 %vm4580_vm6, %v9446_v9 }
 0x8c7   : > { %6424 = vmatpush1.bf16.msra.mxu1 %v6361_v14  ;;  %v11039_v14 = vld [vmem:[%s14091_s5 + $0x5f0] ss:$8 sps:$4 sm:$0xff]  }
 0x8c8   : > { %6844 = vmatprep.subr.bf16.mxu1 %v10990_v38  ;;  %v9497_v38 = vld [vmem:[%s14091_s5 + $0x610] sm:$0xff] }
 0x8ca   : > { %9448 = vmatmul.mubr.msk.bf16.vlgmr.msra.gmra.mrb[176].mxu1 %vm5094_vm7, %v6115_v13  ;;  %v10997_v13 = vld [vmem:[%s14091_s5 + $0x510] ss:$8 sps:$4 sm:$0xff]  }
 0x8cb   : > { %6845 = vmatpush1.bf16.msra.mxu1 %v10988_v19  ;;  %6459 = vmatprep.mubr.bf16.mxu1 %v11176_v0  ;;  %v9536_v19 = vcombine.low %v9497_v38, %v9497_v38 }
 0x8cc   : > { %6846 = vmatprep.subr.bf16.mxu1 %v10993_v22 }
 0x8cd   : > { %v6839_v22 = vsel %vm4580_vm6, %v9536_v19, 0 }
 0x8cf   : > { %6847 = vmatpush1.bf16.msra.mxu1 %v10991_v2 }
 0x8d0   : > { %6848 = vmatprep.subr.bf16.mxu1 %v10996_v3 }
 0x8d2   : > { %9449 = vmatmul.mubr.msk.bf16.gmra.mrb[208].mxu1 %vm5094_vm7, %v6118_v63 }
 0x8d3   : > { %6849 = vmatpush1.bf16.msra.mxu1 %v10994_v8  ;;  %6876 = vmatprep.mubr.bf16.mxu1 %v6592_v30  ;;  %v11006_v30 = vld [vmem:[%s14091_s5 + $0x540] ss:$8 sps:$4 sm:$0xff]  }
 0x8d4   : > { %6850 = vmatprep.subr.bf16.mxu1 %v10999_v11 }
 0x8d7   : > { %6851 = vmatpush1.bf16.msra.mxu1 %v10997_v13 }
 0x8d8   : > { %6852 = vmatprep.subr.bf16.mxu1 %v11002_v36 }
 0x8db   : > { %6853 = vmatpush1.bf16.msra.mxu1 %v11000_v6 }
 0x8dc   : > { %6854 = vmatprep.subr.bf16.mxu1 %v11005_v10 }
 0x8df   : > { %6855 = vmatpush1.bf16.msra.mxu1 %v11003_v57 }
 0x8e0   : > { %6856 = vmatprep.subr.bf16.mxu1 %v11008_v26 }
 0x8e3   : > { %6857 = vmatpush1.bf16.msra.mxu1 %v11006_v30 }
 0x8e4   : > { %6858 = vmatprep.subr.bf16.mxu1 %v11011_v5 }
 0x8e7   : > { %6859 = vmatpush1.bf16.msra.mxu1 %v11009_v23 }
 0x8e8   : > { %6860 = vmatprep.subr.bf16.mxu1 %v11014_v35 }
 0x8eb   : > { %6861 = vmatpush1.bf16.msra.mxu1 %v11012_v20 }
 0x8ec   : > { %6862 = vmatprep.subr.bf16.mxu1 %v11017_v28 }
 0x8ef   : > { %6863 = vmatpush1.bf16.msra.mxu1 %v11015_v44 }
 0x8f0   : > { %6864 = vmatprep.subr.bf16.mxu1 %v11020_v56 }
 0x8f3   : > { %6865 = vmatpush1.bf16.msra.mxu1 %v11018_v60 }
 0x8f4   : > { %6866 = vmatprep.subr.bf16.mxu1 %v11023_v53 }
 0x8f5   : > { %v5460_v17 = vpop.f32.mrb[188].mxu1 }
 0x8f6   : > { %v5461_v47 = vadd.f32 %v5460_v17, %v13555_v49  ;;  %v5462_v50 = vpop.f32.mrb[189].mxu1  ;;  %v11027_v49 = vld [vmem:[%s14091_s5 + $0x5b0] ss:$8 sps:$4 sm:$0xff]   ;;  %v6952_v17 = vld [vmem:[%s14092_s6] sm:$0x3] }
 0x8f7   : > { %v5463_v46 = vadd.f32 %v5462_v50, %v13557_v18  ;;  %v5464_v40 = vpop.f32.mrb[190].mxu1  ;;  %6867 = vmatpush1.bf16.msra.mxu1 %v11021_v48  ;;  %v11030_v18 = vld [vmem:[%s14091_s5 + $0x5c0] ss:$8 sps:$4 sm:$0xff]   ;;  %v6957_v50 = vrot.slane %v6952_v17, %v4509_v4 }
 0x8f8   : > { %v5465_v58 = vpop.f32.mrb[191].mxu1  ;;  %6868 = vmatprep.subr.bf16.mxu1 %v11026_v16 }
 0x8fb   : > { %6869 = vmatpush1.bf16.msra.mxu1 %v11024_v41 }
 0x8fc   : > { %6870 = vmatprep.subr.bf16.mxu1 %v11029_v61 }
 0x8ff   : > { %6871 = vmatpush1.bf16.msra.mxu1 %v11027_v49 }
 0x900   : > { %6872 = vmatprep.subr.bf16.mxu1 %v11032_v24 }
 0x903   : > { %6873 = vmatpush1.bf16.msra.mxu1 %v11030_v18 }
 0x904   : > { %6874 = vmatprep.subr.bf16.mxu1 %v11035_v59 }
 0x905   : > { %v5511_v39 = vpop.f32.mrb[192].mxu1 }
 0x906   : > { %v5512_v51 = vadd.f32 %v5511_v39, %v5461_v47  ;;  %v5513_v15 = vpop.f32.mrb[193].mxu1 }
 0x907   : > { %v5514_v21 = vadd.f32 %v5513_v15, %v5463_v46  ;;  %v5515_v37 = vpop.f32.mrb[194].mxu1  ;;  %6875 = vmatpush1.bf16.msra.mxu1 %v11033_v1  ;;  %v6961_v46 = vrot.slane %v6952_v17, %v4513_v42  ;;  %v11063_v17 = vld [vmem:[%s14094_s8 + $0x38] sm:$0xff]  }
 0x908   : > { %v5516_v9 = vpop.f32.mrb[195].mxu1  ;;  %6895 = vmatprep.subr.bf16.mxu1 %v11038_v31 }
 0x90a   : > { %6877 = vmatmul.mubr.bf16.vlgmr.msra.gmra.mrb[176].mxu1 %v6591_v43  ;;  %v9537_v43 = vcombine.high %v9497_v38, %v9497_v38 }
 0x90b   : > { %6896 = vmatpush1.bf16.msra.mxu1 %v11036_v55  ;;  %6886 = vmatprep.mubr.bf16.mxu1 %v6595_v54 }
 0x90c   : > { %6897 = vmatprep.subr.bf16.mxu1 %v11041_v7 }
 0x90f   : > { %6898 = vmatpush1.bf16.msra.mxu1 %v11039_v14 }
 0x910   : > { %6899 = vmatprep.subr.bf16.mxu1 %v11044_v12 }
 0x912   : > { %6887 = vmatmul.mubr.bf16.gmra.mrb[212].mxu1 %v6594_v25 }
 0x913   : > { %6900 = vmatpush1.bf16.msra.mxu1 %v11042_v29  ;;  %6927 = vmatprep.mubr.bf16.mxu1 %v11176_v0 }
 0x914   : > { %9538 = vmatprep.subr.msk.bf16.mxu1 %vm4580_vm6, %v9537_v43 }
 0x917   : > { %6902 = vmatpush1.bf16.msra.mxu1 %v6839_v22  ;;  %v6980_v22 = vld [vmem:[%s14093_s7] sm:$0xf] }
 0x91a   : > { %9539 = vmatmul.mubr.msk.bf16.vlgmr.msra.gmra.mrb[176].mxu1 %vm5094_vm7, %v6593_v62 }
 0x91b   : > { %6937 = vmatprep.mubr.bf16.mxu1 %v11176_v0 }
 0x922   : > { %9540 = vmatmul.mubr.msk.bf16.gmra.mrb[216].mxu1 %vm5094_vm7, %v6596_v45  ;;  %v9543_v45 = vld [vmem:[%s14093_s7 + $0x4] sm:$0xf] }
 0x945   : > { %v5932_v2 = vpop.f32.mrb[196].mxu1 }
 0x946   : > { %v5934_v3 = vpop.f32.mrb[197].mxu1 }
 0x947   : > { %v5936_v8 = vpop.f32.mrb[198].mxu1 }
 0x948   : > { %v5937_v63 = vpop.f32.mrb[199].mxu1  ;;  %v11049_v8 = vld [vmem:[%s14094_s8 + $0x58] sm:$0xff]  }
 0x949   : > { %v11050_v63 = vld [vmem:[%s14094_s8 + $0x60] sm:$0xff]  }
 0x955   : > { %v5983_v11 = vpop.f32.mrb[200].mxu1 }
 0x956   : > { %v5984_v13 = vadd.f32 %v5983_v11, %v5932_v2  ;;  %v5985_v36 = vpop.f32.mrb[201].mxu1  ;;  %v11047_v2 = vld [vmem:[%s14094_s8 + $0x48] sm:$0xff]  }
 0x957   : > { %v5986_v6 = vadd.f32 %v5985_v36, %v5934_v3  ;;  %v5987_v10 = vpop.f32.mrb[202].mxu1  ;;  %v11048_v3 = vld [vmem:[%s14094_s8 + $0x50] sm:$0xff]   ;;  %v11051_v11 = vld [vmem:[%s14094_s8 + $0x68] sm:$0xff]   ;;  %v11053_v36 = vld [vmem:[%s14094_s8 + $0x78] sm:$0xff]  }
 0x958   : > { %v5994_v57 = vadd.f32 %v5984_v13, %v5512_v51  ;;  %v5988_v32 = vpop.f32.mrb[203].mxu1  ;;  %v11052_v13 = vld [vmem:[%s14094_s8 + $0x70] sm:$0xff]   ;;  %v11055_v10 = vld [vmem:[%s14094_s8 + $0x88] sm:$0xff]  }
 0x959   : > { %v5995_v52 = vadd.f32 %v5986_v6, %v5514_v21  ;;  %v11054_v6 = vld [vmem:[%s14094_s8 + $0x80] sm:$0xff]  }
 0x995   : > { %v6410_v62 = vpop.f32.mrb[204].mxu1 }
 0x996   : > { %v6412_v26 = vpop.f32.mrb[205].mxu1 }
 0x997   : > { %v6414_v30 = vpop.f32.mrb[206].mxu1 }
 0x998   : > { %v6415_v5 = vpop.f32.mrb[207].mxu1 }
 0x9a5   : > { %v6461_v23 = vpop.f32.mrb[208].mxu1 }
 0x9a6   : > { %v6462_v27 = vadd.f32 %v6461_v23, %v6410_v62  ;;  %v6463_v35 = vpop.f32.mrb[209].mxu1 }
 0x9a7   : > { %v6464_v20 = vadd.f32 %v6463_v35, %v6412_v26  ;;  %v6465_v28 = vpop.f32.mrb[210].mxu1 }
 0x9a8   : > { %v6472_v44 = vadd.f32 %v6462_v27, %v5994_v57  ;;  %v6466_v56 = vpop.f32.mrb[211].mxu1  ;;  %v11056_v27 = vld [vmem:[%s14094_s8] sm:$0xff]  }
 0x9a9   : > { %v6473_v60 = vadd.f32 %v6464_v20, %v5995_v52  ;;  %v11058_v56 = vld [vmem:[%s14094_s8 + $0x10] sm:$0xff]  }
 0x9e5   : > { %v6888_v53 = vpop.f32.mrb[212].mxu1 }
 0x9e6   : > { %v6890_v48 = vpop.f32.mrb[213].mxu1 }
 0x9e7   : > { %v6892_v16 = vpop.f32.mrb[214].mxu1 }
 0x9e8   : > { %v6893_v47 = vpop.f32.mrb[215].mxu1  ;;  %v11062_v16 = vld [vmem:[%s14094_s8 + $0x30] sm:$0xff]  }
 0x9e9   : > { %v11064_v47 = vld [vmem:[%s14094_s8 + $0x40] sm:$0xff]  }
 0x9ed   : > { %v6929_v40 = vpop.f32.mrb[176].mxu1 }
 0x9ee   : > { %v6964_v41 = vadd.f32 %v6957_v50, %v6929_v40  ;;  %v6931_v58 = vpop.f32.mrb[177].mxu1  ;;  %v11065_v40 = vld [vmem:[%s14094_s8 + $0x90] sm:$0xff]  }
 0x9ef   : > { %v6965_v61 = vadd.f32 %v6961_v46, %v6931_v58  ;;  %v6933_v49 = vpop.f32.mrb[178].mxu1  ;;  %v11067_v58 = vld [vmem:[%s14094_s8 + $0xa0] sm:$0xff]  }
 0x9f0   : > { %v6966_v24 = vadd.f32 %v6957_v50, %v6933_v49  ;;  %v6935_v18 = vpop.f32.mrb[179].mxu1  ;;  %v6970_v1 = vmax.f32 %v6964_v41, 0.0  ;;  %v11066_v41 = vld [vmem:[%s14094_s8 + $0x98] sm:$0xff]   ;;  %v11069_v49 = vld [vmem:[%s14094_s8 + $0xb0] sm:$0xff]  }
 0x9f1   : > { %v6967_v59 = vadd.f32 %v6961_v46, %v6935_v18  ;;  %v6971_v39 = vmax.f32 %v6965_v61, 0.0  ;;  %v11068_v61 = vld [vmem:[%s14094_s8 + $0xa8] sm:$0xff]   ;;  %v11071_v18 = vld [vmem:[%s14094_s8 + $0xc0] sm:$0xff]  }
 0x9f2   : > { %v6972_v31 = vmax.f32 %v6966_v24, 0.0  ;;  %v11070_v24 = vld [vmem:[%s14094_s8 + $0xb8] sm:$0xff]  }
 0x9f3   : > { %v6973_v51 = vmax.f32 %v6967_v59, 0.0  ;;  %v11072_v59 = vld [vmem:[%s14094_s8 + $0xc8] sm:$0xff]  }
 0x9f4   : > { %v13742_v15 = vpack.c.bf16 %v6972_v31, %v6970_v1  ;;  %v11073_v1 = vld [vmem:[%s14094_s8 + $0xd0] sm:$0xff]  }
 0x9f5   : > { %v13744_v21 = vpack.c.bf16 %v6973_v51, %v6971_v39  ;;  %v6939_v4 = vpop.f32.mrb[216].mxu1 }
 0x9f6   : > { %v6940_v37 = vadd.f32 %v6939_v4, %v6888_v53  ;;  %v6941_v33 = vpop.f32.mrb[217].mxu1  ;;  %v11060_v53 = vld [vmem:[%s14094_s8 + $0x20] sm:$0xff]  }
 0x9f7   : > { %v6942_v42 = vadd.f32 %v6941_v33, %v6890_v48  ;;  %v6943_v54 = vpop.f32.mrb[218].mxu1  ;;  %6992 = vmatprep.subr.bf16.mxu0 %v13744_v21  ;;  %v11061_v48 = vld [vmem:[%s14094_s8 + $0x28] sm:$0xff]  }
 0x9f8   : > { %v6950_v55 = vadd.f32 %v6940_v37, %v6472_v44  ;;  %v6944_v9 = vpop.f32.mrb[219].mxu1  ;;  %6993 = vmatpush1.bf16.msra.mxu0 %v13742_v15  ;;  %v11057_v44 = vld [vmem:[%s14094_s8 + $0x8] sm:$0xff]  }
 0x9f9   : > { %v6951_v7 = vadd.f32 %v6942_v42, %v6473_v60  ;;  %v11059_v60 = vld [vmem:[%s14094_s8 + $0x18] sm:$0xff]  }
 0x9fa   : > { %v6968_v14 = vadd.f32 %v6957_v50, %v6950_v55 }
 0x9fb   : > { %v6969_v12 = vadd.f32 %v6961_v46, %v6951_v7  ;;  %v9584_v46 = vld [vmem:[%s14093_s7 + $0x8] sm:$0xf] }
 0x9fc   : > { %v6974_v38 = vmax.f32 %v6968_v14, 0.0 }
 0x9fd   : > { %v6975_v29 = vmax.f32 %v6969_v12, 0.0  ;;  %v11178_v12 = vmov 0.0  }
 0x9fe   : > { %v6978_v25 = vpack.c.bf16 %v6974_v38, %v6974_v38 }
 0x9ff   : > { %v13748_v43 = vpack.c.bf16 %v6975_v29, %v6975_v29  ;;  %v9615_v29 = vld [vmem:[%s14095_s9] ss:$0 sm:$0xff] }
 0xa00   : > { %v13751_v19 = vsel %vm6985_vm8, %v6978_v25, 0 }
 0xa01   : > { %9541 = vmatprep.subr.msk.bf16.mxu0 %vm6985_vm8, %v13748_v43 }
 0xa02   : > { %6995 = vmatpush1.bf16.msra.mxu0 %v13751_v19 }
 0xa03   : > { %7058 = vmatprep.subr.bf16.mxu0 %v13744_v21 }
 0xa05   : > { %9542 = vmatmul.mubr.msk.bf16.vlgmr.msra.gmra.mrb[88].mxu0 %vm6981_vm9, %v6980_v22 }
 0xa06   : > { %7059 = vmatpush1.bf16.msra.mxu0 %v13742_v15  ;;  %7090 = vmatprep.mubr.bf16.mxu0 %v11176_v0 }
 0xa07   : > { %9544 = vmatprep.subr.msk.bf16.mxu0 %vm6985_vm8, %v13748_v43 }
 0xa0a   : > { %7061 = vmatpush1.bf16.msra.mxu0 %v13751_v19 }
 0xa0b   : > { %7178 = vmatprep.subr.bf16.mxu0 %v11176_v0 }
 0xa0d   : > { %9545 = vmatmul.mubr.msk.bf16.vlgmr.msra.gmra.mrb[92].mxu0 %vm6981_vm9, %v9543_v45 }
 0xa0e   : > { %7179 = vmatpush1.bf16.msra.mxu0 %v11047_v2 }
 0xa0f   : > { %7180 = vmatprep.subr.bf16.mxu0 %v11176_v0 }
 0xa12   : > { %7181 = vmatpush1.bf16.msra.mxu0 %v11048_v3 }
 0xa13   : > { %7182 = vmatprep.subr.bf16.mxu0 %v11176_v0 }
 0xa16   : > { %7183 = vmatpush1.bf16.msra.mxu0 %v11049_v8 }
 0xa17   : > { %7184 = vmatprep.subr.bf16.mxu0 %v11176_v0 }
 0xa1a   : > { %7185 = vmatpush1.bf16.msra.mxu0 %v11050_v63  ;;  %v7490_v63 = vld [vmem:[%s14096_s10] sm:$0x3] }
 0xa1b   : > { %7186 = vmatprep.subr.bf16.mxu0 %v11176_v0 }
 0xa1e   : > { %7187 = vmatpush1.bf16.msra.mxu0 %v11051_v11  ;;  %v9617_v11 = vld [vmem:[%s14096_s10 + $0x2] sm:$0x3] }
 0xa1f   : > { %7188 = vmatprep.subr.bf16.mxu0 %v11176_v0 }
 0xa22   : > { %7189 = vmatpush1.bf16.msra.mxu0 %v11052_v13  ;;  %v11074_v13 = vld [vmem:[%s14097_s11 + $0x20] sm:$0xff]  }
 0xa23   : > { %7190 = vmatprep.subr.bf16.mxu0 %v11176_v0 }
 0xa26   : > { %7191 = vmatpush1.bf16.msra.mxu0 %v11053_v36  ;;  %v11075_v36 = vld [vmem:[%s14097_s11 + $0x28] sm:$0xff]  }
 0xa27   : > { %7192 = vmatprep.subr.bf16.mxu0 %v11176_v0 }
 0xa2a   : > { %7193 = vmatpush1.bf16.msra.mxu0 %v11054_v6  ;;  %v11076_v6 = vld [vmem:[%s14097_s11 + $0x30] sm:$0xff]  }
 0xa2b   : > { %7194 = vmatprep.subr.bf16.mxu0 %v11176_v0 }
 0xa2e   : > { %7195 = vmatpush1.bf16.msra.mxu0 %v11055_v10  ;;  %v11077_v10 = vld [vmem:[%s14097_s11 + $0x38] sm:$0xff]  }
 0xa2f   : > { %7275 = vmatprep.subr.bf16.mxu0 %v11176_v0 }
 0xad8   : > { %v7026_v57 = vpop.f32.mrb[88].mxu0 }
 0xad9   : > { %v7028_v32 = vpop.f32.mrb[89].mxu0  ;;  %v7033_v50 = vpack.c.bf16 %v7026_v57, %v7026_v57 }
 0xada   : > { %v7030_v52 = vpop.f32.mrb[90].mxu0  ;;  %v7034_v28 = vpack.c.bf16 %v7028_v32, %v7028_v32 }
 0xadb   : > { %v7031_v62 = vpop.f32.mrb[91].mxu0 }
 0xae0   : > { %v7092_v26 = vpop.f32.mrb[92].mxu0 }
 0xae1   : > { %v7094_v30 = vpop.f32.mrb[93].mxu0  ;;  %v7099_v35 = vpack.c.bf16 %v7092_v26, %v7092_v26 }
 0xae2   : > { %v7100_v5 = vpack.c.bf16 %v7094_v30, %v7094_v30  ;;  %v7096_v23 = vpop.f32.mrb[94].mxu0  ;;  %v11078_v30 = vld [vmem:[%s14097_s11] sm:$0xff]  }
 0xae3   : > { %v7097_v20 = vpop.f32.mrb[95].mxu0 }
 0xae4   : > { %9573 = vmatprep.mubr.msk.bf16.mxu0 %vm7174_vm10, %v7100_v5  ;;  %v11079_v20 = vld [vmem:[%s14097_s11 + $0x8] sm:$0xff]  }
 0xae5   : > { %7211 = vmatmul.mubr.bf16.vlgmr.msra.gmra.mrb[96].mxu0 %v7099_v35 }
 0xae6   : > { %7276 = vmatpush1.bf16.msra.mxu0 %v11056_v27  ;;  %9583 = vmatprep.mubr.msk.bf16.mxu0 %vm7174_vm10, %v7034_v28  ;;  %v11080_v28 = vld [vmem:[%s14097_s11 + $0x10] sm:$0xff]  }
 0xae7   : > { %7277 = vmatprep.subr.bf16.mxu0 %v11176_v0 }
 0xaea   : > { %7278 = vmatpush1.bf16.msra.mxu0 %v11057_v44  ;;  %v11081_v44 = vld [vmem:[%s14097_s11 + $0x18] sm:$0xff]  }
 0xaeb   : > { %7279 = vmatprep.subr.bf16.mxu0 %v11176_v0 }
 0xaee   : > { %7280 = vmatpush1.bf16.msra.mxu0 %v11058_v56 }
 0xaef   : > { %7281 = vmatprep.subr.bf16.mxu0 %v11176_v0 }
 0xaf2   : > { %7282 = vmatpush1.bf16.msra.mxu0 %v11059_v60  ;;  %v9637_v60 = vld [vmem:[%s14096_s10 + $0x4] sm:$0x3] }
 0xaf3   : > { %7283 = vmatprep.subr.bf16.mxu0 %v11176_v0 }
 0xaf6   : > { %7284 = vmatpush1.bf16.msra.mxu0 %v11060_v53  ;;  %v11082_v53 = vld [vmem:[%s14097_s11 + $0x40] sm:$0xff]  }
 0xaf7   : > { %7285 = vmatprep.subr.bf16.mxu0 %v11176_v0 }
 0xafa   : > { %7286 = vmatpush1.bf16.msra.mxu0 %v11061_v48  ;;  %v11083_v48 = vld [vmem:[%s14097_s11 + $0x48] sm:$0xff]  }
 0xafb   : > { %7287 = vmatprep.subr.bf16.mxu0 %v11176_v0 }
 0xafe   : > { %7288 = vmatpush1.bf16.msra.mxu0 %v11062_v16  ;;  %v11084_v16 = vld [vmem:[%s14097_s11 + $0x50] sm:$0xff]  }
 0xaff   : > { %7289 = vmatprep.subr.bf16.mxu0 %v11176_v0 }
 0xb02   : > { %7290 = vmatpush1.bf16.msra.mxu0 %v11063_v17  ;;  %v11085_v17 = vld [vmem:[%s14097_s11 + $0x58] sm:$0xff]  }
 0xb03   : > { %7291 = vmatprep.subr.bf16.mxu0 %v11176_v0 }
 0xb06   : > { %7292 = vmatpush1.bf16.msra.mxu0 %v11064_v47 }
 0xb07   : > { %7320 = vmatprep.subr.bf16.mxu0 %v13744_v21 }
 0xb09   : > { %7308 = vmatmul.mubr.bf16.vlgmr.msra.gmra.mrb[100].mxu0 %v7033_v50 }
 0xb0a   : > { %7321 = vmatpush1.bf16.msra.mxu0 %v13742_v15  ;;  %7352 = vmatprep.mubr.bf16.mxu0 %v11176_v0 }
 0xb0b   : > { %9585 = vmatprep.subr.msk.bf16.mxu0 %vm6985_vm8, %v13748_v43 }
 0xb0e   : > { %7323 = vmatpush1.bf16.msra.mxu0 %v13751_v19 }
 0xb0f   : > { %7439 = vmatprep.subr.bf16.mxu0 %v11176_v0 }
 0xb11   : > { %9586 = vmatmul.mubr.msk.bf16.vlgmr.msra.gmra.mrb[104].mxu0 %vm6981_vm9, %v9584_v46 }
 0xb12   : > { %7440 = vmatpush1.bf16.msra.mxu0 %v11065_v40 }
 0xb13   : > { %7441 = vmatprep.subr.bf16.mxu0 %v11176_v0 }
 0xb16   : > { %7442 = vmatpush1.bf16.msra.mxu0 %v11066_v41 }
 0xb17   : > { %7443 = vmatprep.subr.bf16.mxu0 %v11176_v0 }
 0xb1a   : > { %7444 = vmatpush1.bf16.msra.mxu0 %v11067_v58 }
 0xb1b   : > { %7445 = vmatprep.subr.bf16.mxu0 %v11176_v0 }
 0xb1e   : > { %7446 = vmatpush1.bf16.msra.mxu0 %v11068_v61 }
 0xb1f   : > { %7447 = vmatprep.subr.bf16.mxu0 %v11176_v0 }
 0xb22   : > { %7448 = vmatpush1.bf16.msra.mxu0 %v11069_v49 }
 0xb23   : > { %7449 = vmatprep.subr.bf16.mxu0 %v11176_v0 }
 0xb26   : > { %7450 = vmatpush1.bf16.msra.mxu0 %v11070_v24 }
 0xb27   : > { %7451 = vmatprep.subr.bf16.mxu0 %v11176_v0 }
 0xb2a   : > { %7452 = vmatpush1.bf16.msra.mxu0 %v11071_v18 }
 0xb2b   : > { %7453 = vmatprep.subr.bf16.mxu0 %v11176_v0 }
 0xb2e   : > { %7454 = vmatpush1.bf16.msra.mxu0 %v11072_v59 }
 0xb2f   : > { %7455 = vmatprep.subr.bf16.mxu0 %v11176_v0 }
 0xb32   : > { %7456 = vmatpush1.bf16.msra.mxu0 %v11073_v1 }
 0xb33   : > { %10025 = vmatprep.subr.bf16.mxu0 %v11178_v12 }
 0xbb8   : > { %v7212_v31 = vpop.f32.mrb[96].mxu0 }
 0xbb9   : > { %v7214_v39 = vpop.f32.mrb[97].mxu0 }
 0xbba   : > { %v7215_v51 = vpop.f32.mrb[98].mxu0 }
 0xbbb   : > { %v7216_v15 = vpop.f32.mrb[99].mxu0 }
 0xbbc   : > { %v9652_v15 = vld [vmem:[%s14098_s12] ss:$0 sm:$0xff] }
 0xbdc   : > { %v7309_v21 = vpop.f32.mrb[100].mxu0 }
 0xbdd   : > { %v7310_v4 = vadd.f32 %v7309_v21, %v7212_v31  ;;  %v7311_v37 = vpop.f32.mrb[101].mxu0 }
 0xbde   : > { %v7312_v33 = vpop.f32.mrb[102].mxu0 }
 0xbdf   : > { %v7313_v42 = vpop.f32.mrb[103].mxu0 }
 0xbe0   : > { %v7875_v42 = vsel %vm6985_vm8, 4294967295, %v11177_v34  ;;  %v9654_v34 = vld [vmem:[%s14099_s13 + $0x1] sm:$0x1] }
 0xbe4   : > { %v7354_v54 = vpop.f32.mrb[104].mxu0 }
 0xbe5   : > { %v7356_v55 = vpop.f32.mrb[105].mxu0  ;;  %v7361_v14 = vpack.c.bf16 %v7354_v54, %v7354_v54 }
 0xbe6   : > { %v7362_v9 = vpack.c.bf16 %v7356_v55, %v7356_v55  ;;  %v7358_v7 = vpop.f32.mrb[106].mxu0 }
 0xbe7   : > { %v7359_v0 = vpop.f32.mrb[107].mxu0 }
 0xbe8   : > { %9614 = vmatprep.mubr.msk.bf16.mxu0 %vm7174_vm10, %v7362_v9  ;;  %v7876_v9 = vsel %vm614_vm0, %v7875_v42, 0  ;;  %v7870_v0 = vld [vmem:[%s14099_s13] sm:$0x1]  ;;  %vm8193_vm0 = vcmask 253952  }
 0xbe9   : > { %7472 = vmatmul.mubr.bf16.vlgmr.msra.gmra.mrb[108].mxu0 %v7361_v14 }
 0xbea   : > { %10027 = vmatprep.mubr.msk.bf16.mxu0 %vm11179_vm11, %v11178_v12 }
 0xcbc   : > { %v7473_v38 = vpop.f32.mrb[108].mxu0 }
 0xcbd   : > { %v7479_v25 = vadd.f32 %v7473_v38, %v7310_v4  ;;  %v7475_v43 = vpop.f32.mrb[109].mxu0  ;;  %v11086_v38 = vld [vmem:[%s14100_s14 + $0xc] sm:$0xff]  }
 0xcbe   : > { %v7476_v19 = vpop.f32.mrb[110].mxu0 }
 0xcbf   : > { %v7487_v22 = vadd.f32 %v9615_v29, %v7479_v25  ;;  %v7477_v45 = vpop.f32.mrb[111].mxu0  ;;  %v11087_v29 = vld [vmem:[%s14100_s14 + $0x14] ss:$0 sps:$4 sm:$0xff]  }
 0xcc0   : > { %v7988_v25 = vsel %vm4580_vm6, %v11087_v29, 0 }
 0xcc1   : > { %v7488_v2 = vmax.f32 %v7487_v22, 0.0 }
 0xcc3   : > { %v7489_v3 = vpack.c.bf16 %v7488_v2, %v7488_v2 }
 0xcc5   : > { %v7496_v8 = vsel %vm4580_vm6, %v7489_v3, 0  ;;  %v11088_v3 = vld [vmem:[%s14100_s14] sm:$0xff]  }
 0xcc6   : > { %10026 = vmatpush3.bf16.msra.mxu0 %v7496_v8 }
 0xcc7   : > { %10031 = vmatprep.subr.bf16.mxu0 %v11178_v12 }
 0xcc9   : > { %10028 = vmatmul.mubr.msk.bf16.vlgmr.msra.gmra.mrb[112].mxu0 %vm7491_vm12, %v7490_v63 }
 0xcca   : > { %10032 = vmatpush3.bf16.msra.mxu0 %v7496_v8  ;;  %10033 = vmatprep.mubr.msk.bf16.mxu0 %vm11179_vm11, %v11178_v12 }
 0xccb   : > { %10037 = vmatprep.subr.bf16.mxu0 %v11178_v12 }
 0xcd1   : > { %10034 = vmatmul.mubr.msk.bf16.vlgmr.msra.gmra.mrb[116].mxu0 %vm7491_vm12, %v9617_v11  ;;  %v11089_v11 = vld [vmem:[%s14100_s14 + $0x8] ss:$0 sps:$4 sm:$0xff]  }
 0xcd2   : > { %10038 = vmatpush3.bf16.msra.mxu0 %v11074_v13  ;;  %10045 = vmatprep.mubr.msk.bf16.mxu0 %vm11179_vm11, %v11178_v12 }
 0xcd3   : > { %10039 = vmatprep.subr.bf16.mxu0 %v11178_v12 }
 0xcd6   : > { %10040 = vmatpush3.bf16.msra.mxu0 %v11075_v36 }
 0xcd7   : > { %10041 = vmatprep.subr.bf16.mxu0 %v11178_v12 }
 0xcda   : > { %10042 = vmatpush3.bf16.msra.mxu0 %v11076_v6  ;;  %v8043_v6 = vsel %vm4580_vm6, %v11089_v11, 0 }
 0xcdb   : > { %10043 = vmatprep.subr.bf16.mxu0 %v11178_v12 }
 0xcde   : > { %10044 = vmatpush3.bf16.msra.mxu0 %v11077_v10 }
 0xcdf   : > { %10049 = vmatprep.subr.bf16.mxu0 %v11178_v12 }
 0xd9c   : > { %v7532_v57 = vpop.f32.mrb[112].mxu0 }
 0xd9d   : > { %v10029_v32 = vpop.f32.mrb[113].mxu0  ;;  %v7538_v56 = vpack.c.bf16 %v7532_v57, %v7532_v57  ;;  %v9665_v57 = vld [vmem:[%s14099_s13 + $0x2] sm:$0x1] }
 0xd9e   : > { %v7535_v52 = vpop.f32.mrb[114].mxu0  ;;  %v11090_v32 = vld [vmem:[%s14100_s14 + $0x18] sm:$0xff]  }
 0xd9f   : > { %v10030_v62 = vpop.f32.mrb[115].mxu0  ;;  %v11091_v52 = vld [vmem:[%s14100_s14 + $0x20] ss:$0 sps:$4 sm:$0xff]  }
 0xda0   : > { %v8148_v62 = vsel %vm4580_vm6, %v11091_v52, 0 }
 0xda4   : > { %v7586_v26 = vpop.f32.mrb[116].mxu0 }
 0xda5   : > { %v7592_v5 = vpack.c.bf16 %v7586_v26, %v7586_v26  ;;  %v10035_v23 = vpop.f32.mrb[117].mxu0 }
 0xda6   : > { %v7589_v27 = vpop.f32.mrb[118].mxu0 }
 0xda7   : > { %v10036_v35 = vpop.f32.mrb[119].mxu0  ;;  %10046 = vmatmul.mubr.msk.bf16.vlgmr.msra.gmra.mrb[120].mxu0 %vm7626_vm13, %v7592_v5 }
 0xda8   : > { %10050 = vmatpush3.bf16.msra.mxu0 %v11078_v30  ;;  %10057 = vmatprep.mubr.msk.bf16.mxu0 %vm11179_vm11, %v11178_v12 }
 0xda9   : > { %10051 = vmatprep.subr.bf16.mxu0 %v11178_v12 }
 0xdac   : > { %10052 = vmatpush3.bf16.msra.mxu0 %v11079_v20 }
 0xdad   : > { %10053 = vmatprep.subr.bf16.mxu0 %v11178_v12 }
 0xdb0   : > { %10054 = vmatpush3.bf16.msra.mxu0 %v11080_v28 }
 0xdb1   : > { %10055 = vmatprep.subr.bf16.mxu0 %v11178_v12 }
 0xdb4   : > { %10056 = vmatpush3.bf16.msra.mxu0 %v11081_v44 }
 0xdb5   : > { %10061 = vmatprep.subr.bf16.mxu0 %v11178_v12 }
 0xdb7   : > { %10058 = vmatmul.mubr.msk.bf16.vlgmr.msra.gmra.mrb[124].mxu0 %vm7626_vm13, %v7538_v56 }
 0xdb8   : > { %10062 = vmatpush3.bf16.msra.mxu0 %v7496_v8  ;;  %10063 = vmatprep.mubr.msk.bf16.mxu0 %vm11179_vm11, %v11178_v12 }
 0xdb9   : > { %10067 = vmatprep.subr.bf16.mxu0 %v11178_v12 }
 0xdbf   : > { %10064 = vmatmul.mubr.msk.bf16.vlgmr.msra.gmra.mrb[128].mxu0 %vm7491_vm12, %v9637_v60 }
 0xdc0   : > { %10075 = vmatprep.mubr.msk.bf16.mxu0 %vm11179_vm11, %v11178_v12  ;;  %10068 = vmatpush3.bf16.msra.mxu0 %v11082_v53 }
 0xdc1   : > { %10069 = vmatprep.subr.bf16.mxu0 %v11178_v12 }
 0xdc4   : > { %10070 = vmatpush3.bf16.msra.mxu0 %v11083_v48 }
 0xdc5   : > { %10071 = vmatprep.subr.bf16.mxu0 %v11178_v12 }
 0xdc8   : > { %10072 = vmatpush3.bf16.msra.mxu0 %v11084_v16 }
 0xdc9   : > { %10073 = vmatprep.subr.bf16.mxu0 %v11178_v12 }
 0xdcc   : > { %10074 = vmatpush3.bf16.msra.mxu0 %v11085_v17  ;;  %v8191_v17 = vld [vmem:[%s14101_s15] sm:$0x1] }
 0xdcd   : > { %10079 = vmatprep.subr.bf16.mxu0 %v11178_v12 }
 0xe7a   : > { %v7664_v47 = vpop.f32.mrb[120].mxu0 }
 0xe7b   : > { %v10047_v50 = vpop.f32.mrb[121].mxu0 }
 0xe7c   : > { %v7667_v46 = vpop.f32.mrb[122].mxu0 }
 0xe7d   : > { %v10048_v40 = vpop.f32.mrb[123].mxu0 }
 0xe8a   : > { %v7731_v41 = vpop.f32.mrb[124].mxu0 }
 0xe8b   : > { %v7732_v58 = vadd.f32 %v7731_v41, %v7664_v47  ;;  %v10059_v61 = vpop.f32.mrb[125].mxu0 }
 0xe8c   : > { %v7734_v49 = vpop.f32.mrb[126].mxu0 }
 0xe8d   : > { %v10060_v24 = vpop.f32.mrb[127].mxu0 }
 0xe92   : > { %v7776_v18 = vpop.f32.mrb[128].mxu0 }
 0xe93   : > { %v7782_v59 = vpack.c.bf16 %v7776_v18, %v7776_v18  ;;  %v10065_v1 = vpop.f32.mrb[129].mxu0 }
 0xe94   : > { %v7779_v31 = vpop.f32.mrb[130].mxu0 }
 0xe95   : > { %v10066_v39 = vpop.f32.mrb[131].mxu0  ;;  %10076 = vmatmul.mubr.msk.bf16.vlgmr.msra.gmra.mrb[132].mxu0 %vm7626_vm13, %v7782_v59 }
 0xe96   : > { %10081 = vmatprep.mubr.msk.bf16.mxu0 %vm11179_vm11, %v11178_v12 }
 0xf68   : > { %v7853_v51 = vpop.f32.mrb[132].mxu0 }
 0xf69   : > { %v7859_v21 = vadd.f32 %v7853_v51, %v7732_v58  ;;  %v10077_v4 = vpop.f32.mrb[133].mxu0 }
 0xf6a   : > { %v7856_v37 = vpop.f32.mrb[134].mxu0 }
 0xf6b   : > { %v7867_v33 = vadd.f32 %v9652_v15, %v7859_v21  ;;  %v10078_v54 = vpop.f32.mrb[135].mxu0 }
 0xf6d   : > { %v7868_v55 = vmax.f32 %v7867_v33, 0.0 }
 0xf6f   : > { %v7869_v7 = vpack.c.bf16 %v7868_v55, %v7868_v55 }
 0xf71   : > { %v7878_v14 = vand.u32 %v7876_v9, %v7869_v7 }
 0xf73   : > { %10080 = vmatpush3.bf16.msra.mxu0 %v7878_v14 }
 0xf74   : > { %10085 = vmatprep.subr.bf16.mxu0 %v11178_v12 }
 0xf76   : > { %10082 = vmatmul.mubr.msk.bf16.vlgmr.msra.gmra.mrb[136].mxu0 %vm7871_vm14, %v7870_v0 }
 0xf77   : > { %10086 = vmatpush3.bf16.msra.mxu0 %v7878_v14  ;;  %10087 = vmatprep.mubr.msk.bf16.mxu0 %vm11179_vm11, %v11178_v12 }
 0xf78   : > { %10091 = vmatprep.subr.bf16.mxu0 %v11178_v12 }
 0xf7e   : > { %10088 = vmatmul.mubr.msk.bf16.vlgmr.msra.gmra.mrb[140].mxu0 %vm7871_vm14, %v9654_v34 }
 0xf7f   : > { %10095 = vmatprep.mubr.msk.bf16.mxu0 %vm11179_vm11, %v11178_v12  ;;  %10092 = vmatpush3.bf16.msra.mxu0 %v11086_v38 }
 0xf80   : > { %10093 = vmatprep.subr.bf16.mxu0 %v11178_v12 }
 0xf83   : > { %10094 = vmatpush3.bf16.msra.mxu0 %v7988_v25 }
 0xf84   : > { %10099 = vmatprep.subr.bf16.mxu0 %v11178_v12 }
0x1049   : > { %v7914_v43 = vpop.f32.mrb[136].mxu0 }
0x104a   : > { %v10083_v19 = vpop.f32.mrb[137].mxu0  ;;  %v7920_v10 = vpack.c.bf16 %v7914_v43, %v7914_v43 }
0x104b   : > { %v7917_v22 = vpop.f32.mrb[138].mxu0 }
0x104c   : > { %v10084_v45 = vpop.f32.mrb[139].mxu0 }
0x1051   : > { %v7963_v2 = vpop.f32.mrb[140].mxu0 }
0x1052   : > { %v7969_v8 = vpack.c.bf16 %v7963_v2, %v7963_v2  ;;  %v10089_v63 = vpop.f32.mrb[141].mxu0 }
0x1053   : > { %v7966_v13 = vpop.f32.mrb[142].mxu0 }
0x1054   : > { %10096 = vmatmul.mubr.msk.bf16.vlgmr.msra.gmra.mrb[144].mxu0 %vm7983_vm15, %v7969_v8  ;;  %v10090_v36 = vpop.f32.mrb[143].mxu0 }
0x1055   : > { %10100 = vmatpush3.bf16.msra.mxu0 %v11088_v3  ;;  %10103 = vmatprep.mubr.msk.bf16.mxu0 %vm11179_vm11, %v11178_v12 }
0x1056   : > { %10101 = vmatprep.subr.bf16.mxu0 %v11178_v12 }
0x1059   : > { %10102 = vmatpush3.bf16.msra.mxu0 %v8043_v6 }
0x105a   : > { %10107 = vmatprep.subr.bf16.mxu0 %v11178_v12 }
0x105c   : > { %10104 = vmatmul.mubr.msk.bf16.vlgmr.msra.gmra.mrb[148].mxu0 %vm7983_vm15, %v7920_v10 }
0x105d   : > { %10108 = vmatpush3.bf16.msra.mxu0 %v7878_v14  ;;  %10109 = vmatprep.mubr.msk.bf16.mxu0 %vm11179_vm11, %v11178_v12 }
0x105e   : > { %10113 = vmatprep.subr.bf16.mxu0 %v11178_v12 }
0x1064   : > { %10110 = vmatmul.mubr.msk.bf16.vlgmr.msra.gmra.mrb[152].mxu0 %vm7871_vm14, %v9665_v57 }
0x1065   : > { %10117 = vmatprep.mubr.msk.bf16.mxu0 %vm11179_vm11, %v11178_v12  ;;  %10114 = vmatpush3.bf16.msra.mxu0 %v11090_v32 }
0x1066   : > { %10115 = vmatprep.subr.bf16.mxu0 %v11178_v12 }
0x1069   : > { %10116 = vmatpush3.bf16.msra.mxu0 %v8148_v62 }
0x1127   : > { %v8024_v26 = vpop.f32.mrb[144].mxu0 }
0x1128   : > { %v10097_v30 = vpop.f32.mrb[145].mxu0 }
0x1129   : > { %v8027_v5 = vpop.f32.mrb[146].mxu0 }
0x112a   : > { %v10098_v23 = vpop.f32.mrb[147].mxu0 }
0x112f   : > { %v8079_v27 = vpop.f32.mrb[148].mxu0 }
0x1130   : > { %v8080_v35 = vadd.f32 %v8079_v27, %v8024_v26  ;;  %v10105_v20 = vpop.f32.mrb[149].mxu0 }
0x1131   : > { %v8082_v28 = vpop.f32.mrb[150].mxu0 }
0x1132   : > { %v10106_v44 = vpop.f32.mrb[151].mxu0 }
0x1137   : > { %v8124_v56 = vpop.f32.mrb[152].mxu0 }
0x1138   : > { %v8130_v12 = vpack.c.bf16 %v8124_v56, %v8124_v56  ;;  %v10111_v60 = vpop.f32.mrb[153].mxu0 }
0x1139   : > { %v8127_v53 = vpop.f32.mrb[154].mxu0 }
0x113a   : > { %10118 = vmatmul.mubr.msk.bf16.vlgmr.msra.gmra.mrb[156].mxu0 %vm7983_vm15, %v8130_v12  ;;  %v10112_v48 = vpop.f32.mrb[155].mxu0 }
0x120d   : > { %v8184_v16 = vpop.f32.mrb[156].mxu0 }
0x120e   : > { %v8190_v47 = vadd.f32 %v8184_v16, %v8080_v35  ;;  %v10119_v50 = vpop.f32.mrb[157].mxu0 }
0x120f   : > { %v8187_v46 = vpop.f32.mrb[158].mxu0 }
0x1210   : > { %v8192_v40 = vadd.f32 %v8191_v17, %v8190_v47  ;;  %v10120_v41 = vpop.f32.mrb[159].mxu0 }
0x1212   : > { %8194 = vst.msk [vmem:[%s513_s28] sm:$0x1] %vm8193_vm0, %v8192_v40 }
0x1213   : > { %11125 = shalt.err (!%p11122_p3)
}
0x1214   : > { %s11126_s20 = scalar_lea.hbm %s14044_s21, 16  ;;  %s11130_s28 = scalar_lea.hbm %s14102_s16, 32 }
0x1215   : > { %p11127_p4 = scmp.ne.s32.totalorder %s14044_s21, %s11126_s20  ;;  %p11131_p9 = scmp.lt.u32.totalorder %s14044_s21, %s14102_s16 }
0x1216   : > { %p11132_p10 = scmp.lt.u32.totalorder %s11130_s28, %s11126_s20  ;;  %p11134_p12 = scmp.lt.u32.totalorder %s11126_s20, %s14044_s21 }
0x1217   : > { %p11128_p7 = pnand %p11127_p4, %p11304_p5 }
0x1218   : > { %p11133_p11 = por %p11132_p10, %p11131_p9 }
0x1219   : > { %p11129_p8 = pneg %p11128_p7 }
0x121a   : > { %p11135_p13 = por %p11134_p12, %p11133_p11 }
0x121c   : > { %p11136_p0 = pnand %p11135_p13, %p11129_p8 }
0x121e   : > { %11139 = shalt.err (!%p11136_p0)
}
0x121f   : > { %10213 = dma.vmem_to_hbm [thread:$0]  (%p11304_p5), %s14046_s29, 16, %s14044_s21, %s8196_s25  }
0x1220 PF: > { %s14119_s17 = sld [smem:[#allocation7_spill]]  ;;  %s14120_s27 = sld [smem:[#allocation5_spill]] }
0x1226   : > { %p10219_p1 = scmp.ge.s32.totalorder %s14119_s17, 2  ;;  %s8220_s26 = sand.u32 1, %s14120_s27  }
0x1227   : > { %s8221_s30 = scalar_lea.sflag [#allocation3], %s8220_s26 }
0x1228   : > { %p10216_p2 = pnand %p10219_p1, %p11308_p6 }
0x122a   : > { %11157 = dma.done.wait (!%p10216_p2), %s8221_s30, 16  }
0x122b   : > { %11159 = vsyncadd (!%p10216_p2), %s8221_s30, 4294967280  ;;  %s14122_s24 = sld [smem:[#allocation8_spill]]  ;;  %s14123_s20 = sld [smem:[#allocation6_spill]] }
0x122c   : > { %s14124_s23 = sld [smem:[#allocation9_spill]]  ;;  %s14125_s21 = smov %s11166_s22 }
0x1231   : > { %p26_p3 = scmp.ge.s32.totalorder %s14122_s24, 4   ;;  %s14126_s22 = smov %s14123_s20 }
0x1233   :  { %28 = sbr.rel (!%p26_p3) target bundleno = 5 (0x5), region = 151 }
0x123a   :  { %8225 = vsyncpa [#allocation3], 1 }
0x123b   :  { %8227 = vsyncpa [#allocation3 + $0x1], 1 }

</bundles_post_ra>
